<compile_context>
chip_gen: v7x
topology: tpu7x:2x2x1
jax: 0.10.0
libtpu: 0.0.40
codegen_flags: <defaults>
</compile_context>

<pallas_src>
import functools

import jax
import jax.numpy as jnp
from jax.experimental import pallas as pl
from jax.experimental.pallas import tpu as pltpu

BN_EPS = 1e-5      # nn.BatchNorm1d default eps
NORM_EPS = 1e-12   # F.normalize default eps

# Row layout of the packed f32 bias / BN-parameter array (single DMA).
(ROW_EB, ROW_B1, ROW_G1, ROW_BE1, ROW_B2,
 ROW_PB1, ROW_PG1, ROW_PBE1, ROW_PB2) = range(9)
NUM_VEC_ROWS = 9


# --------------------------------- kernel ---------------------------------- #
def byol_kernel(x1_ref, x2_ref,                      # [B, tk] bf16 each
                ew_ref,                              # [tk, feat] bf16 (K-streamed)
                w1_ref, w2_ref, pw1_ref, pw2_ref,    # head weights, bf16
                vec_ref,                             # [9, vec_w] f32 packed biases/BN
                loss_ref,                            # [1, 1] f32
                f_acc,                               # scratch [2B, feat] f32
                *, use_bn):
    k = pl.program_id(0)
    b = x1_ref.shape[0]

    @pl.when(k == 0)
    def _():
        f_acc[...] = jnp.zeros_like(f_acc)
        loss_ref[...] = jnp.zeros_like(loss_ref)

    # K-tiled encoder matmul; both views accumulate into one stacked scratch
    # (rows [0, b) = view 1 / online, rows [b, 2b) = view 2 / target).
    f_acc[:b, :] += jnp.dot(x1_ref[...], ew_ref[...],
                            preferred_element_type=jnp.float32)
    f_acc[b:, :] += jnp.dot(x2_ref[...], ew_ref[...],
                            preferred_element_type=jnp.float32)

    @pl.when(k == pl.num_programs(0) - 1)
    def _():
        feat = f_acc.shape[1]
        hidden = w1_ref.shape[1]
        proj = w2_ref.shape[1]
        inv_b = 1.0 / b

        def vec(row, n):                       # one row of the packed params
            return vec_ref[row, :n]

        def mm(x, w_ref, bias):                # bf16 MXU operands, f32 accumulate
            return jnp.dot(x.astype(jnp.bfloat16), w_ref[...],
                           preferred_element_type=jnp.float32) + bias

        def view1_mask(shape):                 # True on the first-view rows
            return jax.lax.broadcasted_iota(jnp.int32, shape, 0) < b

        # base encoder (synthetic Linear + ReLU) bias/activation on both views
        f = jnp.maximum(f_acc[...] + vec(ROW_EB, feat), 0.0)           # [2B, feat]

        # --- shared projection MLPHead (online == target weights at init) ---
        h = mm(f, w1_ref, vec(ROW_B1, hidden))                         # [2B, hidden]
        if use_bn:
            # per-view BatchNorm stats via row masks (no sublane slicing)
            is1 = view1_mask(h.shape)
            mu1 = jnp.sum(jnp.where(is1, h, 0.0), axis=0, keepdims=True) * inv_b
            mu2 = jnp.sum(jnp.where(is1, 0.0, h), axis=0, keepdims=True) * inv_b
            d = h - jnp.where(is1, mu1, mu2)
            v1 = jnp.sum(jnp.where(is1, d * d, 0.0), axis=0, keepdims=True) * inv_b
            v2 = jnp.sum(jnp.where(is1, 0.0, d * d), axis=0, keepdims=True) * inv_b
            r = jnp.where(is1, jax.lax.rsqrt(v1 + BN_EPS),
                          jax.lax.rsqrt(v2 + BN_EPS))
            h = d * r * vec(ROW_G1, hidden) + vec(ROW_BE1, hidden)
        h = jnp.maximum(h, 0.0)
        z = mm(h, w2_ref, vec(ROW_B2, proj))                           # [2B, proj]

        # --- predictor MLPHead on the stacked batch; only online rows used ---
        ph = mm(z, pw1_ref, vec(ROW_PB1, hidden))                      # [2B, hidden]
        if use_bn:
            is1 = view1_mask(ph.shape)
            mu = jnp.sum(jnp.where(is1, ph, 0.0), axis=0, keepdims=True) * inv_b
            d = ph - mu
            var = jnp.sum(jnp.where(is1, d * d, 0.0), axis=0, keepdims=True) * inv_b
            ph = (d * jax.lax.rsqrt(var + BN_EPS) * vec(ROW_PG1, hidden)
                  + vec(ROW_PBE1, hidden))
        ph = jnp.maximum(ph, 0.0)
        p = mm(ph, pw2_ref, vec(ROW_PB2, proj))    # [2B, proj]; rows >= b unused

        # --- L2 normalize + BYOL loss: 2 - 2 * mean_B(<p1, z2>) ---
        def l2n(v):
            ss = jnp.sum(v * v, axis=-1, keepdims=True)
            return v * jax.lax.rsqrt(jnp.maximum(ss, NORM_EPS * NORM_EPS))

        pn = l2n(p)
        zn = l2n(z)
        # Swap the two half-batches of pn with one XLU sublane rotate so that
        # p1_i lands on the same row as z2_i (shift b with period 2b == swap).
        pn_swapped = pltpu.roll(pn, shift=b, axis=0)
        sim = jnp.sum(pn_swapped * zn, axis=-1, keepdims=True)         # [2B, 1]
        is2 = jax.lax.broadcasted_iota(jnp.int32, sim.shape, 0) >= b
        total = jnp.sum(jnp.where(is2, sim, 0.0), axis=0, keepdims=True)  # [1, 1]
        loss_ref[...] = 2.0 - 2.0 * inv_b * total


# -------------------------------- wrapper ----------------------------------- #
def byol_forward(x1, x2, kernel_params):
    """Fused BYOL forward; kernel_params = pack_params(init_params(...))."""
    ew, w1, w2, pw1, pw2, vecs = kernel_params
    B = x1.shape[0]
    x1f = x1.reshape(B, -1).astype(jnp.bfloat16)
    x2f = x2.reshape(B, -1).astype(jnp.bfloat16)
    d_in = x1f.shape[1]

    d_pad, feat = ew.shape
    hidden = w1.shape[1]
    proj = w2.shape[1]
    if d_pad != d_in:                    # zero-pad activations to match padded ew
        x1f = jnp.pad(x1f, ((0, 0), (0, d_pad - d_in)))
        x2f = jnp.pad(x2f, ((0, 0), (0, d_pad - d_in)))

    # Largest K tile from the sweep; d_pad is a multiple of 128 by construction
    # so the untiled fallback never triggers (v7x 64 MiB VMEM safe).
    tk = next(t for t in (2048, 1024, 512, 256, 128) if d_pad % t == 0)
    nk = d_pad // tk

    def const_spec(a):
        return pl.BlockSpec(a.shape, lambda k: (0, 0))

    in_specs = [
        pl.BlockSpec((B, tk), lambda k: (0, k)),      # x1  (K-streamed)
        pl.BlockSpec((B, tk), lambda k: (0, k)),      # x2  (K-streamed)
        pl.BlockSpec((tk, feat), lambda k: (k, 0)),   # encoder weight (K-streamed)
        const_spec(w1), const_spec(w2), const_spec(pw1), const_spec(pw2),
        const_spec(vecs),                             # packed biases/BN (1 DMA)
    ]

    # advisory cost estimate: tiny, weight-stream / DMA-bound custom call
    flops = 2 * (2 * B * d_pad * feat + 2 * B * feat * hidden
                 + 2 * B * hidden * proj + 2 * B * proj * hidden
                 + 2 * B * hidden * proj)
    bytes_accessed = int(x1f.nbytes + x2f.nbytes + ew.nbytes + w1.nbytes
                         + w2.nbytes + pw1.nbytes + pw2.nbytes + vecs.nbytes + 4)
    transcendentals = 3 * hidden + 4 * B + 2

    loss = pl.pallas_call(
        functools.partial(byol_kernel, use_bn=(B > 1)),
        out_shape=jax.ShapeDtypeStruct((1, 1), jnp.float32),
        grid_spec=pltpu.PrefetchScalarGridSpec(
            num_scalar_prefetch=0,
            grid=(nk,),
            in_specs=in_specs,
            out_specs=pl.BlockSpec((1, 1), lambda k: (0, 0)),
            scratch_shapes=[pltpu.VMEM((2 * B, feat), jnp.float32)],
        ),
        compiler_params=pltpu.CompilerParams(
            dimension_semantics=("arbitrary",),
            vmem_limit_bytes=32 * 1024 * 1024),
        cost_estimate=pl.CostEstimate(flops=flops,
                                      transcendentals=transcendentals,
                                      bytes_accessed=bytes_accessed),
    )(x1f, x2f, ew, w1, w2, pw1, pw2, vecs)
    return loss[0, 0]


# -------------------------- deterministic parameters ------------------------ #
def init_params(key, d_in, feat=512, hidden=256, proj=128):
    """f32 parameters mirroring the PyTorch module (Linear + BatchNorm1d defaults)."""
    ks = jax.random.split(key, 5)

    def lin(k, fan_in, fan_out):
        bound = 1.0 / (fan_in ** 0.5)
        kw, kb = jax.random.split(k)
        w = jax.random.uniform(kw, (fan_in, fan_out), jnp.float32, -bound, bound)
        b = jax.random.uniform(kb, (fan_out,), jnp.float32, -bound, bound)
        return w, b

    ew, eb = lin(ks[0], d_in, feat)      # synthetic base_encoder: Linear + ReLU
    w1, b1 = lin(ks[1], feat, hidden)    # MLPHead(512, hidden, proj) linear1
    w2, b2 = lin(ks[2], hidden, proj)    # MLPHead linear2
    pw1, pb1 = lin(ks[3], proj, hidden)  # predictor MLPHead linear1
    pw2, pb2 = lin(ks[4], hidden, proj)  # predictor MLPHead linear2
    ones = jnp.ones((hidden,), jnp.float32)    # BatchNorm1d gamma / beta defaults
    zeros = jnp.zeros((hidden,), jnp.float32)
    return dict(ew=ew, eb=eb, w1=w1, b1=b1, g1=ones, be1=zeros, w2=w2, b2=b2,
                pw1=pw1, pb1=pb1, pg1=ones, pbe1=zeros, pw2=pw2, pb2=pb2)


def pack_params(p):
    """One-time repack into kernel-friendly buffers: bf16 weights (halved HBM
    stream), encoder weight padded to a multiple of 128 rows, and the 9 small
    f32 bias / BN vectors stacked into one (9, vec_w) array (single DMA)."""
    d_in, feat = p["ew"].shape
    d_pad = ((d_in + 127) // 128) * 128
    ew = p["ew"].astype(jnp.bfloat16)
    if d_pad != d_in:
        ew = jnp.pad(ew, ((0, d_pad - d_in), (0, 0)))
    w1 = p["w1"].astype(jnp.bfloat16)
    w2 = p["w2"].astype(jnp.bfloat16)
    pw1 = p["pw1"].astype(jnp.bfloat16)
    pw2 = p["pw2"].astype(jnp.bfloat16)

    vec_w = max(feat, w1.shape[1], w2.shape[1])

    def row(v):
        v = v.reshape(-1).astype(jnp.float32)
        return jnp.pad(v, (0, vec_w - v.shape[0]))

    vecs = jnp.stack(
        [row(p[name]) for name in
         ("eb", "b1", "g1", "be1", "b2", "pb1", "pg1", "pbe1", "pb2")], axis=0)
    assert vecs.shape[0] == NUM_VEC_ROWS
    return ew, w1, w2, pw1, pw2, vecs


# ------------------------------ pure-JAX reference --------------------------- #
def byol_reference(x1, x2, p):
    # Same numeric recipe as the kernel: bf16 matmul operands, f32 accumulate,
    # f32 BN / ReLU / normalize.  Branches computed separately (per-view BN).
    B = x1.shape[0]
    x1f = x1.reshape(B, -1)
    x2f = x2.reshape(B, -1)

    def mm(x, w, b):
        return jnp.dot(x.astype(jnp.bfloat16), w.astype(jnp.bfloat16),
                       preferred_element_type=jnp.float32) + b

    def bn(x, g, be):
        mu = x.mean(0, keepdims=True)
        var = ((x - mu) ** 2).mean(0, keepdims=True)
        return (x - mu) * jax.lax.rsqrt(var + BN_EPS) * g + be

    def mlp_head(x, w1, b1, g, be, w2, b2):
        h = mm(x, w1, b1)
        if x.shape[0] > 1:                 # MLPHead's batch-size-1 special case
            h = bn(h, g, be)
        h = jnp.maximum(h, 0.0)
        return mm(h, w2, b2)

    f1 = jnp.maximum(mm(x1f, p["ew"], p["eb"]), 0.0)
    z1 = mlp_head(f1, p["w1"], p["b1"], p["g1"], p["be1"], p["w2"], p["b2"])
    p1 = mlp_head(z1, p["pw1"], p["pb1"], p["pg1"], p["pbe1"], p["pw2"], p["pb2"])
    f2 = jnp.maximum(mm(x2f, p["ew"], p["eb"]), 0.0)
    z2 = mlp_head(f2, p["w1"], p["b1"], p["g1"], p["be1"], p["w2"], p["b2"])

    def l2n(v):
        ss = jnp.sum(v * v, axis=-1, keepdims=True)
        return v * jax.lax.rsqrt(jnp.maximum(ss, NORM_EPS * NORM_EPS))

    return 2.0 - 2.0 * jnp.mean(jnp.sum(l2n(p1) * l2n(z2), axis=-1))


if __name__ == "__main__":
    B, C, H, W = 4, 4, 16, 16           # B > 1 so the BatchNorm path is exercised
    feat, hidden, proj = 512, 256, 128  # BYOL fixes the encoder feature dim at 512

    key = jax.random.PRNGKey(0)
    k_x1, k_x2, k_p = jax.random.split(key, 3)
    x1 = jax.random.normal(k_x1, (B, C, H, W), jnp.float32)
    x2 = jax.random.normal(k_x2, (B, C, H, W), jnp.float32)

    params = init_params(k_p, C * H * W, feat=feat, hidden=hidden, proj=proj)
    kernel_params = pack_params(params)

    loss = jax.block_until_ready(byol_forward(x1, x2, kernel_params))
    ref = jax.block_until_ready(byol_reference(x1, x2, params))

    assert jnp.isfinite(loss), "non-finite loss"
    assert abs(float(loss) - float(ref)) < 5e-3, (float(loss), float(ref))
    print("KERNEL_OK")
</pallas_src>

<mosaic_0001>
module attributes {stable_mosaic.version = 11 : i64} {
  func.func @byol_kernel(%arg0: i32, %arg1: memref<4x1024xbf16, #tpu.memory_space<vmem>>, %arg2: memref<4x1024xbf16, #tpu.memory_space<vmem>>, %arg3: memref<1024x512xbf16, #tpu.memory_space<vmem>>, %arg4: memref<512x256xbf16, #tpu.memory_space<vmem>>, %arg5: memref<256x128xbf16, #tpu.memory_space<vmem>>, %arg6: memref<128x256xbf16, #tpu.memory_space<vmem>>, %arg7: memref<256x128xbf16, #tpu.memory_space<vmem>>, %arg8: memref<9x512xf32, #tpu.memory_space<vmem>>, %arg9: memref<1x1xf32, #tpu.memory_space<vmem>>, %arg10: memref<8x512xf32, #tpu.memory_space<vmem>>) attributes {dimension_semantics = [#tpu.dimension_semantics<arbitrary>], iteration_bounds = array<i64: 1>, scalar_prefetch = 0 : i64, scratch_operands = 1 : i64, tpu.core_type = #tpu.core_type<tc>, window_params = [{transform_indices = @transform_0, window_bounds = array<i64: 4, 1024>}, {transform_indices = @transform_1, window_bounds = array<i64: 4, 1024>}, {transform_indices = @transform_2, window_bounds = array<i64: 1024, 512>}, {pipeline_mode = #tpu.pipeline_mode<synchronous>, transform_indices = @transform_3, window_bounds = array<i64: 512, 256>}, {pipeline_mode = #tpu.pipeline_mode<synchronous>, transform_indices = @transform_4, window_bounds = array<i64: 256, 128>}, {pipeline_mode = #tpu.pipeline_mode<synchronous>, transform_indices = @transform_5, window_bounds = array<i64: 128, 256>}, {pipeline_mode = #tpu.pipeline_mode<synchronous>, transform_indices = @transform_6, window_bounds = array<i64: 256, 128>}, {pipeline_mode = #tpu.pipeline_mode<synchronous>, transform_indices = @transform_7, window_bounds = array<i64: 9, 512>}, {pipeline_mode = #tpu.pipeline_mode<synchronous>, transform_indices = @transform_8, window_bounds = array<i64: 1, 1>}]} {
    %c0_i32 = arith.constant 0 : i32
    %0 = arith.cmpi eq, %arg0, %c0_i32 : i32
    %1 = arith.extui %0 : i1 to i32
    %c0_i32_0 = arith.constant 0 : i32
    %2 = arith.cmpi ne, %1, %c0_i32_0 : i32
    scf.if %2 {
      %cst_18 = arith.constant 0.000000e+00 : f32
      %18 = vector.broadcast %cst_18 : f32 to vector<8x512xf32>
      %c0_19 = arith.constant 0 : index
      %c0_20 = arith.constant 0 : index
      %19 = vector.load %arg10[%c0_19, %c0_20] : memref<8x512xf32, #tpu.memory_space<vmem>>, vector<8x512xf32>
      tpu.vector_store %arg10[%c0_19, %c0_20], %18 {strides = array<i32>} : memref<8x512xf32, #tpu.memory_space<vmem>>, vector<8x512xf32>,
      %cst_21 = arith.constant 0.000000e+00 : f32
      %20 = vector.broadcast %cst_21 : f32 to vector<1x1xf32>
      %c0_22 = arith.constant 0 : index
      %c0_23 = arith.constant 0 : index
      %21 = vector.load %arg9[%c0_22, %c0_23] : memref<1x1xf32, #tpu.memory_space<vmem>>, vector<1x1xf32>
      tpu.vector_store %arg9[%c0_22, %c0_23], %20 {strides = array<i32>} : memref<1x1xf32, #tpu.memory_space<vmem>>, vector<1x1xf32>,
    } else {
    }
    %c0 = arith.constant 0 : index
    %c0_1 = arith.constant 0 : index
    %3 = vector.load %arg10[%c0, %c0_1] : memref<8x512xf32, #tpu.memory_space<vmem>>, vector<4x512xf32>
    %c0_2 = arith.constant 0 : index
    %c0_3 = arith.constant 0 : index
    %4 = vector.load %arg1[%c0_2, %c0_3] : memref<4x1024xbf16, #tpu.memory_space<vmem>>, vector<4x1024xbf16>
    %c0_4 = arith.constant 0 : index
    %c0_5 = arith.constant 0 : index
    %5 = vector.load %arg3[%c0_4, %c0_5] : memref<1024x512xbf16, #tpu.memory_space<vmem>>, vector<1024x512xbf16>
    %cst = arith.constant dense<0.000000e+00> : vector<4x512xf32>
    %6 = tpu.matmul %4, %5, %cst {dimension_numbers = #tpu.dot_dimension_numbers<[1], [0], [0], [1], [0, 0, 1, 1], [], []>} : vector<4x1024xbf16>, vector<1024x512xbf16>, vector<4x512xf32> -> vector<4x512xf32>
    %7 = arith.addf %3, %6 : vector<4x512xf32>
    %c0_6 = arith.constant 0 : index
    %c0_7 = arith.constant 0 : index
    %8 = vector.load %arg10[%c0_6, %c0_7] : memref<8x512xf32, #tpu.memory_space<vmem>>, vector<4x512xf32>
    tpu.vector_store %arg10[%c0_6, %c0_7], %7 {strides = array<i32>} : memref<8x512xf32, #tpu.memory_space<vmem>>, vector<4x512xf32>,
    %c4 = arith.constant 4 : index
    %c0_8 = arith.constant 0 : index
    %9 = vector.load %arg10[%c4, %c0_8] : memref<8x512xf32, #tpu.memory_space<vmem>>, vector<4x512xf32>
    %c0_9 = arith.constant 0 : index
    %c0_10 = arith.constant 0 : index
    %10 = vector.load %arg2[%c0_9, %c0_10] : memref<4x1024xbf16, #tpu.memory_space<vmem>>, vector<4x1024xbf16>
    %c0_11 = arith.constant 0 : index
    %c0_12 = arith.constant 0 : index
    %11 = vector.load %arg3[%c0_11, %c0_12] : memref<1024x512xbf16, #tpu.memory_space<vmem>>, vector<1024x512xbf16>
    %cst_13 = arith.constant dense<0.000000e+00> : vector<4x512xf32>
    %12 = tpu.matmul %10, %11, %cst_13 {dimension_numbers = #tpu.dot_dimension_numbers<[1], [0], [0], [1], [0, 0, 1, 1], [], []>} : vector<4x1024xbf16>, vector<1024x512xbf16>, vector<4x512xf32> -> vector<4x512xf32>
    %13 = arith.addf %9, %12 : vector<4x512xf32>
    %c4_14 = arith.constant 4 : index
    %c0_15 = arith.constant 0 : index
    %14 = vector.load %arg10[%c4_14, %c0_15] : memref<8x512xf32, #tpu.memory_space<vmem>>, vector<4x512xf32>
    tpu.vector_store %arg10[%c4_14, %c0_15], %13 {strides = array<i32>} : memref<8x512xf32, #tpu.memory_space<vmem>>, vector<4x512xf32>,
    %c0_i32_16 = arith.constant 0 : i32
    %15 = arith.cmpi eq, %arg0, %c0_i32_16 : i32
    %16 = arith.extui %15 : i1 to i32
    %c0_i32_17 = arith.constant 0 : i32
    %17 = arith.cmpi ne, %16, %c0_i32_17 : i32
    scf.if %17 {
      %c0_18 = arith.constant 0 : index
      %c0_19 = arith.constant 0 : index
      %18 = vector.load %arg10[%c0_18, %c0_19] : memref<8x512xf32, #tpu.memory_space<vmem>>, vector<8x512xf32>
      %c0_20 = arith.constant 0 : index
      %c0_21 = arith.constant 0 : index
      %19 = vector.load %arg8[%c0_20, %c0_21] : memref<9x512xf32, #tpu.memory_space<vmem>>, vector<1x512xf32>
      %20 = vector.shape_cast %19 : vector<1x512xf32> to vector<512xf32>
      %21 = vector.shape_cast %20 : vector<512xf32> to vector<1x512xf32>
      %22 = vector.broadcast %21 : vector<1x512xf32> to vector<8x512xf32>
      %23 = arith.addf %18, %22 : vector<8x512xf32>
      %cst_22 = arith.constant 0.000000e+00 : f32
      %24 = vector.broadcast %cst_22 : f32 to vector<8x512xf32>
      %25 = arith.maximumf %23, %24 : vector<8x512xf32>
      %c1 = arith.constant 1 : index
      %c0_23 = arith.constant 0 : index
      %26 = vector.load %arg8[%c1, %c0_23] : memref<9x512xf32, #tpu.memory_space<vmem>>, vector<1x256xf32>
      %27 = vector.shape_cast %26 : vector<1x256xf32> to vector<256xf32>
      %28 = arith.truncf %25 : vector<8x512xf32> to vector<8x512xbf16>
      %c0_24 = arith.constant 0 : index
      %c0_25 = arith.constant 0 : index
      %29 = vector.load %arg4[%c0_24, %c0_25] : memref<512x256xbf16, #tpu.memory_space<vmem>>, vector<512x256xbf16>
      %cst_26 = arith.constant dense<0.000000e+00> : vector<8x256xf32>
      %30 = tpu.matmul %28, %29, %cst_26 {dimension_numbers = #tpu.dot_dimension_numbers<[1], [0], [0], [1], [0, 0, 1, 1], [], []>} : vector<8x512xbf16>, vector<512x256xbf16>, vector<8x256xf32> -> vector<8x256xf32>
      %31 = vector.shape_cast %27 : vector<256xf32> to vector<1x256xf32>
      %32 = vector.broadcast %31 : vector<1x256xf32> to vector<8x256xf32>
      %33 = arith.addf %30, %32 : vector<8x256xf32>
      %34 = tpu.iota {dimensions = array<i32: 0>} : vector<8x256xi32>
      %c4_i32 = arith.constant 4 : i32
      %35 = vector.broadcast %c4_i32 : i32 to vector<8x256xi32>
      %36 = arith.cmpi slt, %34, %35 : vector<8x256xi32>
      %cst_27 = arith.constant 0.000000e+00 : f32
      %37 = vector.broadcast %cst_27 : f32 to vector<8x256xf32>
      %38 = arith.select %36, %33, %37 : vector<8x256xi1>, vector<8x256xf32>
      %cst_28 = arith.constant dense<0.000000e+00> : vector<256xf32>
      %39 = vector.multi_reduction <add>, %38, %cst_28 [0] : vector<8x256xf32> to vector<256xf32>
      %40 = vector.shape_cast %39 : vector<256xf32> to vector<1x256xf32>
      %cst_29 = arith.constant 2.500000e-01 : f32
      %41 = vector.broadcast %cst_29 : f32 to vector<1x256xf32>
      %42 = arith.mulf %40, %41 : vector<1x256xf32>
      %cst_30 = arith.constant 0.000000e+00 : f32
      %43 = vector.broadcast %cst_30 : f32 to vector<8x256xf32>
      %44 = arith.select %36, %43, %33 : vector<8x256xi1>, vector<8x256xf32>
      %cst_31 = arith.constant dense<0.000000e+00> : vector<256xf32>
      %45 = vector.multi_reduction <add>, %44, %cst_31 [0] : vector<8x256xf32> to vector<256xf32>
      %46 = vector.shape_cast %45 : vector<256xf32> to vector<1x256xf32>
      %cst_32 = arith.constant 2.500000e-01 : f32
      %47 = vector.broadcast %cst_32 : f32 to vector<1x256xf32>
      %48 = arith.mulf %46, %47 : vector<1x256xf32>
      %49 = vector.shape_cast %42 : vector<1x256xf32> to vector<1x256xf32>
      %50 = vector.broadcast %49 : vector<1x256xf32> to vector<8x256xf32>
      %51 = vector.shape_cast %48 : vector<1x256xf32> to vector<1x256xf32>
      %52 = vector.broadcast %51 : vector<1x256xf32> to vector<8x256xf32>
      %53 = arith.select %36, %50, %52 : vector<8x256xi1>, vector<8x256xf32>
      %54 = arith.subf %33, %53 : vector<8x256xf32>
      %55 = arith.mulf %54, %54 : vector<8x256xf32>
      %cst_33 = arith.constant 0.000000e+00 : f32
      %56 = vector.broadcast %cst_33 : f32 to vector<8x256xf32>
      %57 = arith.select %36, %55, %56 : vector<8x256xi1>, vector<8x256xf32>
      %cst_34 = arith.constant dense<0.000000e+00> : vector<256xf32>
      %58 = vector.multi_reduction <add>, %57, %cst_34 [0] : vector<8x256xf32> to vector<256xf32>
      %59 = vector.shape_cast %58 : vector<256xf32> to vector<1x256xf32>
      %cst_35 = arith.constant 2.500000e-01 : f32
      %60 = vector.broadcast %cst_35 : f32 to vector<1x256xf32>
      %61 = arith.mulf %59, %60 : vector<1x256xf32>
      %62 = arith.mulf %54, %54 : vector<8x256xf32>
      %cst_36 = arith.constant 0.000000e+00 : f32
      %63 = vector.broadcast %cst_36 : f32 to vector<8x256xf32>
      %64 = arith.select %36, %63, %62 : vector<8x256xi1>, vector<8x256xf32>
      %cst_37 = arith.constant dense<0.000000e+00> : vector<256xf32>
      %65 = vector.multi_reduction <add>, %64, %cst_37 [0] : vector<8x256xf32> to vector<256xf32>
      %66 = vector.shape_cast %65 : vector<256xf32> to vector<1x256xf32>
      %cst_38 = arith.constant 2.500000e-01 : f32
      %67 = vector.broadcast %cst_38 : f32 to vector<1x256xf32>
      %68 = arith.mulf %66, %67 : vector<1x256xf32>
      %cst_39 = arith.constant 9.99999974E-6 : f32
      %69 = vector.broadcast %cst_39 : f32 to vector<1x256xf32>
      %70 = arith.addf %61, %69 : vector<1x256xf32>
      %71 = math.rsqrt %70 : vector<1x256xf32>
      %cst_40 = arith.constant 9.99999974E-6 : f32
      %72 = vector.broadcast %cst_40 : f32 to vector<1x256xf32>
      %73 = arith.addf %68, %72 : vector<1x256xf32>
      %74 = math.rsqrt %73 : vector<1x256xf32>
      %75 = vector.shape_cast %71 : vector<1x256xf32> to vector<1x256xf32>
      %76 = vector.broadcast %75 : vector<1x256xf32> to vector<8x256xf32>
      %77 = vector.shape_cast %74 : vector<1x256xf32> to vector<1x256xf32>
      %78 = vector.broadcast %77 : vector<1x256xf32> to vector<8x256xf32>
      %79 = arith.select %36, %76, %78 : vector<8x256xi1>, vector<8x256xf32>
      %80 = arith.mulf %54, %79 : vector<8x256xf32>
      %c2 = arith.constant 2 : index
      %c0_41 = arith.constant 0 : index
      %81 = vector.load %arg8[%c2, %c0_41] : memref<9x512xf32, #tpu.memory_space<vmem>>, vector<1x256xf32>
      %82 = vector.shape_cast %81 : vector<1x256xf32> to vector<256xf32>
      %83 = vector.shape_cast %82 : vector<256xf32> to vector<1x256xf32>
      %84 = vector.broadcast %83 : vector<1x256xf32> to vector<8x256xf32>
      %85 = arith.mulf %80, %84 : vector<8x256xf32>
      %c3 = arith.constant 3 : index
      %c0_42 = arith.constant 0 : index
      %86 = vector.load %arg8[%c3, %c0_42] : memref<9x512xf32, #tpu.memory_space<vmem>>, vector<1x256xf32>
      %87 = vector.shape_cast %86 : vector<1x256xf32> to vector<256xf32>
      %88 = vector.shape_cast %87 : vector<256xf32> to vector<1x256xf32>
      %89 = vector.broadcast %88 : vector<1x256xf32> to vector<8x256xf32>
      %90 = arith.addf %85, %89 : vector<8x256xf32>
      %cst_43 = arith.constant 0.000000e+00 : f32
      %91 = vector.broadcast %cst_43 : f32 to vector<8x256xf32>
      %92 = arith.maximumf %90, %91 : vector<8x256xf32>
      %c4_44 = arith.constant 4 : index
      %c0_45 = arith.constant 0 : index
      %93 = vector.load %arg8[%c4_44, %c0_45] : memref<9x512xf32, #tpu.memory_space<vmem>>, vector<1x128xf32>
      %94 = vector.shape_cast %93 : vector<1x128xf32> to vector<128xf32>
      %95 = arith.truncf %92 : vector<8x256xf32> to vector<8x256xbf16>
      %c0_46 = arith.constant 0 : index
      %c0_47 = arith.constant 0 : index
      %96 = vector.load %arg5[%c0_46, %c0_47] : memref<256x128xbf16, #tpu.memory_space<vmem>>, vector<256x128xbf16>
      %cst_48 = arith.constant dense<0.000000e+00> : vector<8x128xf32>
      %97 = tpu.matmul %95, %96, %cst_48 {dimension_numbers = #tpu.dot_dimension_numbers<[1], [0], [0], [1], [0, 0, 1, 1], [], []>} : vector<8x256xbf16>, vector<256x128xbf16>, vector<8x128xf32> -> vector<8x128xf32>
      %98 = vector.shape_cast %94 : vector<128xf32> to vector<1x128xf32>
      %99 = vector.broadcast %98 : vector<1x128xf32> to vector<8x128xf32>
      %100 = arith.addf %97, %99 : vector<8x128xf32>
      %c5 = arith.constant 5 : index
      %c0_49 = arith.constant 0 : index
      %101 = vector.load %arg8[%c5, %c0_49] : memref<9x512xf32, #tpu.memory_space<vmem>>, vector<1x256xf32>
      %102 = vector.shape_cast %101 : vector<1x256xf32> to vector<256xf32>
      %103 = arith.truncf %100 : vector<8x128xf32> to vector<8x128xbf16>
      %c0_50 = arith.constant 0 : index
      %c0_51 = arith.constant 0 : index
      %104 = vector.load %arg6[%c0_50, %c0_51] : memref<128x256xbf16, #tpu.memory_space<vmem>>, vector<128x256xbf16>
      %cst_52 = arith.constant dense<0.000000e+00> : vector<8x256xf32>
      %105 = tpu.matmul %103, %104, %cst_52 {dimension_numbers = #tpu.dot_dimension_numbers<[1], [0], [0], [1], [0, 0, 1, 1], [], []>} : vector<8x128xbf16>, vector<128x256xbf16>, vector<8x256xf32> -> vector<8x256xf32>
      %106 = vector.shape_cast %102 : vector<256xf32> to vector<1x256xf32>
      %107 = vector.broadcast %106 : vector<1x256xf32> to vector<8x256xf32>
      %108 = arith.addf %105, %107 : vector<8x256xf32>
      %109 = tpu.iota {dimensions = array<i32: 0>} : vector<8x256xi32>
      %c4_i32_53 = arith.constant 4 : i32
      %110 = vector.broadcast %c4_i32_53 : i32 to vector<8x256xi32>
      %111 = arith.cmpi slt, %109, %110 : vector<8x256xi32>
      %cst_54 = arith.constant 0.000000e+00 : f32
      %112 = vector.broadcast %cst_54 : f32 to vector<8x256xf32>
      %113 = arith.select %111, %108, %112 : vector<8x256xi1>, vector<8x256xf32>
      %cst_55 = arith.constant dense<0.000000e+00> : vector<256xf32>
      %114 = vector.multi_reduction <add>, %113, %cst_55 [0] : vector<8x256xf32> to vector<256xf32>
      %115 = vector.shape_cast %114 : vector<256xf32> to vector<1x256xf32>
      %cst_56 = arith.constant 2.500000e-01 : f32
      %116 = vector.broadcast %cst_56 : f32 to vector<1x256xf32>
      %117 = arith.mulf %115, %116 : vector<1x256xf32>
      %118 = vector.broadcast %117 : vector<1x256xf32> to vector<8x256xf32>
      %119 = arith.subf %108, %118 : vector<8x256xf32>
      %120 = arith.mulf %119, %119 : vector<8x256xf32>
      %cst_57 = arith.constant 0.000000e+00 : f32
      %121 = vector.broadcast %cst_57 : f32 to vector<8x256xf32>
      %122 = arith.select %111, %120, %121 : vector<8x256xi1>, vector<8x256xf32>
      %cst_58 = arith.constant dense<0.000000e+00> : vector<256xf32>
      %123 = vector.multi_reduction <add>, %122, %cst_58 [0] : vector<8x256xf32> to vector<256xf32>
      %124 = vector.shape_cast %123 : vector<256xf32> to vector<1x256xf32>
      %cst_59 = arith.constant 2.500000e-01 : f32
      %125 = vector.broadcast %cst_59 : f32 to vector<1x256xf32>
      %126 = arith.mulf %124, %125 : vector<1x256xf32>
      %cst_60 = arith.constant 9.99999974E-6 : f32
      %127 = vector.broadcast %cst_60 : f32 to vector<1x256xf32>
      %128 = arith.addf %126, %127 : vector<1x256xf32>
      %129 = math.rsqrt %128 : vector<1x256xf32>
      %130 = vector.broadcast %129 : vector<1x256xf32> to vector<8x256xf32>
      %131 = arith.mulf %119, %130 : vector<8x256xf32>
      %c6 = arith.constant 6 : index
      %c0_61 = arith.constant 0 : index
      %132 = vector.load %arg8[%c6, %c0_61] : memref<9x512xf32, #tpu.memory_space<vmem>>, vector<1x256xf32>
      %133 = vector.shape_cast %132 : vector<1x256xf32> to vector<256xf32>
      %134 = vector.shape_cast %133 : vector<256xf32> to vector<1x256xf32>
      %135 = vector.broadcast %134 : vector<1x256xf32> to vector<8x256xf32>
      %136 = arith.mulf %131, %135 : vector<8x256xf32>
      %c7 = arith.constant 7 : index
      %c0_62 = arith.constant 0 : index
      %137 = vector.load %arg8[%c7, %c0_62] : memref<9x512xf32, #tpu.memory_space<vmem>>, vector<1x256xf32>
      %138 = vector.shape_cast %137 : vector<1x256xf32> to vector<256xf32>
      %139 = vector.shape_cast %138 : vector<256xf32> to vector<1x256xf32>
      %140 = vector.broadcast %139 : vector<1x256xf32> to vector<8x256xf32>
      %141 = arith.addf %136, %140 : vector<8x256xf32>
      %cst_63 = arith.constant 0.000000e+00 : f32
      %142 = vector.broadcast %cst_63 : f32 to vector<8x256xf32>
      %143 = arith.maximumf %141, %142 : vector<8x256xf32>
      %c8 = arith.constant 8 : index
      %c0_64 = arith.constant 0 : index
      %144 = vector.load %arg8[%c8, %c0_64] : memref<9x512xf32, #tpu.memory_space<vmem>>, vector<1x128xf32>
      %145 = vector.shape_cast %144 : vector<1x128xf32> to vector<128xf32>
      %146 = arith.truncf %143 : vector<8x256xf32> to vector<8x256xbf16>
      %c0_65 = arith.constant 0 : index
      %c0_66 = arith.constant 0 : index
      %147 = vector.load %arg7[%c0_65, %c0_66] : memref<256x128xbf16, #tpu.memory_space<vmem>>, vector<256x128xbf16>
      %cst_67 = arith.constant dense<0.000000e+00> : vector<8x128xf32>
      %148 = tpu.matmul %146, %147, %cst_67 {dimension_numbers = #tpu.dot_dimension_numbers<[1], [0], [0], [1], [0, 0, 1, 1], [], []>} : vector<8x256xbf16>, vector<256x128xbf16>, vector<8x128xf32> -> vector<8x128xf32>
      %149 = vector.shape_cast %145 : vector<128xf32> to vector<1x128xf32>
      %150 = vector.broadcast %149 : vector<1x128xf32> to vector<8x128xf32>
      %151 = arith.addf %148, %150 : vector<8x128xf32>
      %152 = arith.mulf %151, %151 : vector<8x128xf32>
      %cst_68 = arith.constant dense<0.000000e+00> : vector<8xf32>
      %153 = vector.multi_reduction <add>, %152, %cst_68 [1] : vector<8x128xf32> to vector<8xf32>
      %154 = vector.shape_cast %153 : vector<8xf32> to vector<8x1xf32>
      %cst_69 = arith.constant 1.000000e-24 : f32
      %155 = vector.broadcast %cst_69 : f32 to vector<8x1xf32>
      %156 = arith.maximumf %154, %155 : vector<8x1xf32>
      %157 = math.rsqrt %156 : vector<8x1xf32>
      %158 = vector.broadcast %157 : vector<8x1xf32> to vector<8x128xf32>
      %159 = arith.mulf %151, %158 : vector<8x128xf32>
      %160 = arith.mulf %100, %100 : vector<8x128xf32>
      %cst_70 = arith.constant dense<0.000000e+00> : vector<8xf32>
      %161 = vector.multi_reduction <add>, %160, %cst_70 [1] : vector<8x128xf32> to vector<8xf32>
      %162 = vector.shape_cast %161 : vector<8xf32> to vector<8x1xf32>
      %cst_71 = arith.constant 1.000000e-24 : f32
      %163 = vector.broadcast %cst_71 : f32 to vector<8x1xf32>
      %164 = arith.maximumf %162, %163 : vector<8x1xf32>
      %165 = math.rsqrt %164 : vector<8x1xf32>
      %166 = vector.broadcast %165 : vector<8x1xf32> to vector<8x128xf32>
      %167 = arith.mulf %100, %166 : vector<8x128xf32>
      %c4_i32_72 = arith.constant 4 : i32
      %168 = tpu.dynamic_rotate %159 by %c4_i32_72 dim 0 : vector<8x128xf32>, i32 -> vector<8x128xf32>
      %169 = arith.mulf %168, %167 : vector<8x128xf32>
      %cst_73 = arith.constant dense<0.000000e+00> : vector<8xf32>
      %170 = vector.multi_reduction <add>, %169, %cst_73 [1] : vector<8x128xf32> to vector<8xf32>
      %171 = vector.shape_cast %170 : vector<8xf32> to vector<8x1xf32>
      %172 = tpu.iota {dimensions = array<i32: 0>} : vector<8x1xi32>
      %c4_i32_74 = arith.constant 4 : i32
      %173 = vector.broadcast %c4_i32_74 : i32 to vector<8x1xi32>
      %174 = arith.cmpi sge, %172, %173 : vector<8x1xi32>
      %cst_75 = arith.constant 0.000000e+00 : f32
      %175 = vector.broadcast %cst_75 : f32 to vector<8x1xf32>
      %176 = arith.select %174, %171, %175 : vector<8x1xi1>, vector<8x1xf32>
      %cst_76 = arith.constant dense<0.000000e+00> : vector<1xf32>
      %177 = vector.multi_reduction <add>, %176, %cst_76 [0] : vector<8x1xf32> to vector<1xf32>
      %178 = vector.shape_cast %177 : vector<1xf32> to vector<1x1xf32>
      %cst_77 = arith.constant 5.000000e-01 : f32
      %179 = vector.broadcast %cst_77 : f32 to vector<1x1xf32>
      %180 = arith.mulf %179, %178 : vector<1x1xf32>
      %cst_78 = arith.constant 2.000000e+00 : f32
      %181 = vector.broadcast %cst_78 : f32 to vector<1x1xf32>
      %182 = arith.subf %181, %180 : vector<1x1xf32>
      %c0_79 = arith.constant 0 : index
      %c0_80 = arith.constant 0 : index
      %183 = vector.load %arg9[%c0_79, %c0_80] : memref<1x1xf32, #tpu.memory_space<vmem>>, vector<1x1xf32>
      tpu.vector_store %arg9[%c0_79, %c0_80], %182 {strides = array<i32>} : memref<1x1xf32, #tpu.memory_space<vmem>>, vector<1x1xf32>,
    } else {
    }
    return
  }
  func.func @transform_0(%arg0: i32) -> (i32, i32) {
    %c0_i32 = arith.constant 0 : i32
    %c0_i32_0 = arith.constant 0 : i32
    return %c0_i32, %arg0 : i32, i32
  }
  func.func @transform_1(%arg0: i32) -> (i32, i32) {
    %c0_i32 = arith.constant 0 : i32
    %c0_i32_0 = arith.constant 0 : i32
    return %c0_i32, %arg0 : i32, i32
  }
  func.func @transform_2(%arg0: i32) -> (i32, i32) {
    %c0_i32 = arith.constant 0 : i32
    %c0_i32_0 = arith.constant 0 : i32
    return %arg0, %c0_i32 : i32, i32
  }
  func.func @transform_3(%arg0: i32) -> (i32, i32) {
    %c0_i32 = arith.constant 0 : i32
    %c0_i32_0 = arith.constant 0 : i32
    %c0_i32_1 = arith.constant 0 : i32
    return %c0_i32, %c0_i32_0 : i32, i32
  }
  func.func @transform_4(%arg0: i32) -> (i32, i32) {
    %c0_i32 = arith.constant 0 : i32
    %c0_i32_0 = arith.constant 0 : i32
    %c0_i32_1 = arith.constant 0 : i32
    return %c0_i32, %c0_i32_0 : i32, i32
  }
  func.func @transform_5(%arg0: i32) -> (i32, i32) {
    %c0_i32 = arith.constant 0 : i32
    %c0_i32_0 = arith.constant 0 : i32
    %c0_i32_1 = arith.constant 0 : i32
    return %c0_i32, %c0_i32_0 : i32, i32
  }
  func.func @transform_6(%arg0: i32) -> (i32, i32) {
    %c0_i32 = arith.constant 0 : i32
    %c0_i32_0 = arith.constant 0 : i32
    %c0_i32_1 = arith.constant 0 : i32
    return %c0_i32, %c0_i32_0 : i32, i32
  }
  func.func @transform_7(%arg0: i32) -> (i32, i32) {
    %c0_i32 = arith.constant 0 : i32
    %c0_i32_0 = arith.constant 0 : i32
    %c0_i32_1 = arith.constant 0 : i32
    return %c0_i32, %c0_i32_0 : i32, i32
  }
  func.func @transform_8(%arg0: i32) -> (i32, i32) {
    %c0_i32 = arith.constant 0 : i32
    %c0_i32_0 = arith.constant 0 : i32
    %c0_i32_1 = arith.constant 0 : i32
    return %c0_i32, %c0_i32_0 : i32, i32
  }
}

</mosaic_0001>

<bundles_post_ra>
// kernel: tpu_custom_call.1
= control target key start
LH: loop header
LB: loop body
LE: loop exit
PB: predicated region body
PF: predicated region fallthrough
CT: control target
= control target key end

     0   :  { %13 = vsyncpa [#allocation4], 0  ;;  %s7554_s0 = inlined_call_operand.hbm [shape: bf16[4,1024], index: 0, kind: input, shape index: {}]   ;;  %s7555_s1 = inlined_call_operand.hbm [shape: bf16[4,1024], index: 1, kind: input, shape index: {}]   ;;  %s7556_s2 = inlined_call_operand.hbm [shape: bf16[1024,512], index: 2, kind: input, shape index: {}]   ;;  %s7557_s3 = inlined_call_operand.hbm [shape: bf16[512,256], index: 3, kind: input, shape index: {}]   ;;  %s7558_s4 = inlined_call_operand.hbm [shape: bf16[256,128], index: 4, kind: input, shape index: {}]   ;;  %s7559_s5 = inlined_call_operand.hbm [shape: bf16[128,256], index: 5, kind: input, shape index: {}]   ;;  %s7560_s6 = inlined_call_operand.hbm [shape: bf16[256,128], index: 6, kind: input, shape index: {}]   ;;  %s7561_s7 = inlined_call_operand.hbm [shape: f32[9,512], index: 7, kind: input, shape index: {}]   ;;  %s7562_s8 = inlined_call_operand.hbm [shape: f32[1,1], index: 8, kind: output, shape index: {}]  }
   0x1   :  { %14 = vsyncpa [#allocation7], 0 }
   0x2   :  { %15 = vsyncpa [#allocation10], 0 }
   0x3   :  { %16 = vsyncpa [#allocation13], 0 }
   0x4   :  { %17 = vsyncpa [#allocation16], 0 }
   0x5   :  { %18 = vsyncpa [#allocation5], 0  ;;  %s7076_s27 = smov [#allocation6]   ;;  %s7077_s29 = smov [#allocation9]  }
   0x6   :  { %s35_s28 = sshll.u32 %s7076_s27, 4  ;;  %s56_s30 = sshll.u32 %s7077_s29, 4  ;;  %s36_s28 = int_to_ptr.vmem [resolvable:$true] %s35_s28  ;;  %s7141_s30 = int_to_ptr.vmem [resolvable:$true] %s56_s30 }
   0x7   :  { %s6866_s11 = scalar_lea.hbm %s7555_s1, 256 }
   0x8   :  { %p6867_p0 = scmp.ne.s32.totalorder %s7555_s1, %s6866_s11  ;;  %p6870_p1 = scmp.lt.u32.totalorder %s6866_s11, %s7555_s1 }
   0xa   :  { %p6872_p2 = pnand %p6870_p1, %p6867_p0 }
   0xc   :  { %6875 = shalt.err (!%p6872_p2)
}
   0xd   :  { %s6876_s16 = scalar_lea.vmem %s36_s28, 256  ;;  %p6881_p4 = scmp.lt.s32.totalorder %s36_s28, %s36_s28 }
   0xe   :  { %p6877_p3 = scmp.ne.s32.totalorder %s36_s28, %s6876_s16  ;;  %p6882_p5 = scmp.lt.s32.totalorder %s6876_s16, %s6876_s16 }
  0x10   :  { %p6883_p6 = por %p6882_p5, %p6881_p4 }
  0x12   :  { %p6884_p7 = pnand %p6883_p6, %p6877_p3 }
  0x14   :  { %6887 = shalt.err (!%p6884_p7)
}
  0x15   :  { %38 = dma.hbm_to_vmem [thread:$0]  %s7555_s1, 256, %s36_s28, [#allocation7]  }
  0x16   :  { %s6888_s21 = scalar_lea.hbm %s7557_s3, 8192 }
  0x17   :  { %p6889_p8 = scmp.ne.s32.totalorder %s7557_s3, %s6888_s21  ;;  %p6892_p9 = scmp.lt.u32.totalorder %s6888_s21, %s7557_s3 }
  0x19   :  { %p6894_p10 = pnand %p6892_p9, %p6889_p8 }
  0x1b   :  { %6897 = shalt.err (!%p6894_p10)
}
  0x1c   :  { %s6898_s26 = scalar_lea.vmem %s7141_s30, 8192  ;;  %p6903_p12 = scmp.lt.s32.totalorder %s7141_s30, %s7141_s30 }
  0x1d   :  { %p6899_p11 = scmp.ne.s32.totalorder %s7141_s30, %s6898_s26  ;;  %p6904_p13 = scmp.lt.s32.totalorder %s6898_s26, %s6898_s26 }
  0x1f   :  { %p6905_p0 = por %p6904_p13, %p6903_p12 }
  0x21   :  { %p6906_p1 = pnand %p6905_p0, %p6899_p11 }
  0x23   :  { %6909 = shalt.err (!%p6906_p1)
}
  0x24   :  { %s7078_s1 = smov 128   ;;  %s7079_s27 = smov 8  }
  0x25   :  { %62 = dma.hbm_to_vmem [thread:$0]  %s7557_s3, 8192, %s7141_s30, [#allocation10], %s7078_s1, %s7078_s1, %s7079_s27  }
  0x26   :  { %s7080_s9 = smov [#allocation12]   ;;  %s7081_s11 = smov [#allocation3]  }
  0x27   :  { %s80_s10 = sshll.u32 %s7080_s9, 4  ;;  %s25_s12 = sshll.u32 %s7081_s11, 4  ;;  %s81_s10 = int_to_ptr.vmem [resolvable:$true] %s80_s10  ;;  %s26_s12 = int_to_ptr.vmem [resolvable:$true] %s25_s12 }
  0x28   :  { %s6910_s15 = scalar_lea.hbm %s7559_s5, 2048 }
  0x29   :  { %p6911_p2 = scmp.ne.s32.totalorder %s7559_s5, %s6910_s15  ;;  %p6914_p3 = scmp.lt.u32.totalorder %s6910_s15, %s7559_s5 }
  0x2b   :  { %p6916_p4 = pnand %p6914_p3, %p6911_p2 }
  0x2d   :  { %6919 = shalt.err (!%p6916_p4)
}
  0x2e   :  { %s6920_s3 = scalar_lea.vmem %s81_s10, 2048  ;;  %p6925_p6 = scmp.lt.s32.totalorder %s81_s10, %s81_s10 }
  0x2f   :  { %p6921_p5 = scmp.ne.s32.totalorder %s81_s10, %s6920_s3  ;;  %p6926_p7 = scmp.lt.s32.totalorder %s6920_s3, %s6920_s3 }
  0x31   :  { %p6927_p8 = por %p6926_p7, %p6925_p6 }
  0x33   :  { %p6928_p9 = pnand %p6927_p8, %p6921_p5 }
  0x35   :  { %6931 = shalt.err (!%p6928_p9)
}
  0x36   :  { %86 = dma.hbm_to_vmem [thread:$0]  %s7559_s5, 2048, %s81_s10, [#allocation13], %s7078_s1, %s7078_s1, %s7079_s27  }
  0x37   :  { %s6932_s23 = scalar_lea.hbm %s7554_s0, 256 }
  0x38   :  { %p6933_p10 = scmp.ne.s32.totalorder %s7554_s0, %s6932_s23  ;;  %p6936_p11 = scmp.lt.u32.totalorder %s6932_s23, %s7554_s0 }
  0x3a   :  { %p6938_p12 = pnand %p6936_p11, %p6933_p10 }
  0x3c   :  { %6941 = shalt.err (!%p6938_p12)
}
  0x3d   :  { %s6942_s29 = scalar_lea.vmem %s26_s12, 256  ;;  %p6947_p0 = scmp.lt.s32.totalorder %s26_s12, %s26_s12 }
  0x3e   :  { %p6943_p13 = scmp.ne.s32.totalorder %s26_s12, %s6942_s29  ;;  %p6948_p1 = scmp.lt.s32.totalorder %s6942_s29, %s6942_s29 }
  0x40   :  { %p6949_p2 = por %p6948_p1, %p6947_p0 }
  0x42   :  { %p6950_p3 = pnand %p6949_p2, %p6943_p13 }
  0x44   :  { %6953 = shalt.err (!%p6950_p3)
}
  0x45   :  { %28 = dma.hbm_to_vmem [thread:$0]  %s7554_s0, 256, %s26_s12, [#allocation4]  }
  0x46   :  { %s7082_s27 = smov [#allocation8]   ;;  %s6954_s13 = scalar_lea.hbm %s7556_s2, 32768 }
  0x47   :  { %s44_s9 = sshll.u32 %s7082_s27, 4  ;;  %p6955_p4 = scmp.ne.s32.totalorder %s7556_s2, %s6954_s13  ;;  %s45_s9 = int_to_ptr.vmem [resolvable:$true] %s44_s9 }
  0x48   :  { %p6958_p5 = scmp.lt.u32.totalorder %s6954_s13, %s7556_s2 }
  0x4a   :  { %p6960_p6 = pnand %p6958_p5, %p6955_p4 }
  0x4c   :  { %6963 = shalt.err (!%p6960_p6)
}
  0x4d   :  { %s6964_s18 = scalar_lea.vmem %s45_s9, 32768  ;;  %p6969_p8 = scmp.lt.s32.totalorder %s45_s9, %s45_s9 }
  0x4e   :  { %p6965_p7 = scmp.ne.s32.totalorder %s45_s9, %s6964_s18  ;;  %p6970_p9 = scmp.lt.s32.totalorder %s6964_s18, %s6964_s18 }
  0x50   :  { %p6971_p10 = por %p6970_p9, %p6969_p8 }
  0x52   :  { %p6972_p11 = pnand %p6971_p10, %p6965_p7 }
  0x54   :  { %6975 = shalt.err (!%p6972_p11)
}
  0x55   :  { %s7083_s0 = smov 256   ;;  %s7084_s12 = smov 16  }
  0x56   :  { %50 = dma.hbm_to_vmem [thread:$0]  %s7556_s2, 32768, %s45_s9, [#allocation7], %s7083_s0, %s7083_s0, %s7084_s12  }
  0x57   :  { %s7085_s30 = smov [#allocation11]   ;;  %s6976_s23 = scalar_lea.hbm %s7558_s4, 2048 }
  0x58   :  { %s68_s20 = sshll.u32 %s7085_s30, 4  ;;  %p6977_p12 = scmp.ne.s32.totalorder %s7558_s4, %s6976_s23  ;;  %s69_s20 = int_to_ptr.vmem [resolvable:$true] %s68_s20 }
  0x59   :  { %p6980_p13 = scmp.lt.u32.totalorder %s6976_s23, %s7558_s4 }
  0x5b   :  { %p6982_p0 = pnand %p6980_p13, %p6977_p12 }
  0x5d   :  { %6985 = shalt.err (!%p6982_p0)
}
  0x5e   :  { %s6986_s29 = scalar_lea.vmem %s69_s20, 2048  ;;  %p6991_p2 = scmp.lt.s32.totalorder %s69_s20, %s69_s20 }
  0x5f   :  { %p6987_p1 = scmp.ne.s32.totalorder %s69_s20, %s6986_s29  ;;  %p6992_p3 = scmp.lt.s32.totalorder %s6986_s29, %s6986_s29 }
  0x61   :  { %p6993_p4 = por %p6992_p3, %p6991_p2 }
  0x63   :  { %p6994_p5 = pnand %p6993_p4, %p6987_p1 }
  0x65   :  { %6997 = shalt.err (!%p6994_p5)
}
  0x66   :  { %s7086_s2 = smov 64   ;;  %s7087_s5 = smov 4  }
  0x67   :  { %74 = dma.hbm_to_vmem [thread:$0]  %s7558_s4, 2048, %s69_s20, [#allocation10], %s7086_s2, %s7086_s2, %s7087_s5  }
  0x68   :  { %s7088_s9 = smov [#allocation14]   ;;  %s7089_s11 = smov [#allocation15]  }
  0x69   :  { %s92_s10 = sshll.u32 %s7088_s9, 4  ;;  %s104_s13 = sshll.u32 %s7089_s11, 4  ;;  %s93_s10 = int_to_ptr.vmem [resolvable:$true] %s92_s10  ;;  %s7220_s13 = int_to_ptr.vmem [resolvable:$true] %s104_s13 }
  0x6a   :  { %s6998_s16 = scalar_lea.hbm %s7560_s6, 2048 }
  0x6b   :  { %p6999_p6 = scmp.ne.s32.totalorder %s7560_s6, %s6998_s16  ;;  %p7002_p7 = scmp.lt.u32.totalorder %s6998_s16, %s7560_s6 }
  0x6d   :  { %p7004_p8 = pnand %p7002_p7, %p6999_p6 }
  0x6f   :  { %7007 = shalt.err (!%p7004_p8)
}
  0x70   :  { %s7008_s4 = scalar_lea.vmem %s93_s10, 2048  ;;  %p7013_p10 = scmp.lt.s32.totalorder %s93_s10, %s93_s10 }
  0x71   :  { %p7009_p9 = scmp.ne.s32.totalorder %s93_s10, %s7008_s4  ;;  %p7014_p11 = scmp.lt.s32.totalorder %s7008_s4, %s7008_s4 }
  0x73   :  { %p7015_p12 = por %p7014_p11, %p7013_p10 }
  0x75   :  { %p7016_p13 = pnand %p7015_p12, %p7009_p9 }
  0x77   :  { %7019 = shalt.err (!%p7016_p13)
}
  0x78   :  { %98 = dma.hbm_to_vmem [thread:$0]  %s7560_s6, 2048, %s93_s10, [#allocation13], %s7086_s2, %s7086_s2, %s7087_s5  }
  0x79   :  { %s7020_s21 = scalar_lea.hbm %s7561_s7, 1024 }
  0x7a   :  { %p7021_p0 = scmp.ne.s32.totalorder %s7561_s7, %s7020_s21  ;;  %p7024_p1 = scmp.lt.u32.totalorder %s7020_s21, %s7561_s7 }
  0x7c   :  { %p7026_p2 = pnand %p7024_p1, %p7021_p0 }
  0x7e   :  { %7029 = shalt.err (!%p7026_p2)
}
  0x7f   :  { %s7030_s26 = scalar_lea.vmem %s7220_s13, 1024  ;;  %p7035_p4 = scmp.lt.s32.totalorder %s7220_s13, %s7220_s13 }
  0x80   :  { %p7031_p3 = scmp.ne.s32.totalorder %s7220_s13, %s7030_s26  ;;  %p7036_p5 = scmp.lt.s32.totalorder %s7030_s26, %s7030_s26 }
  0x82   :  { %p7037_p6 = por %p7036_p5, %p7035_p4 }
  0x84   :  { %p7038_p7 = pnand %p7037_p6, %p7031_p3 }
  0x86   :  { %7041 = shalt.err (!%p7038_p7)
}
  0x87   :  { %s7090_s6 = smov 512   ;;  %s7091_s28 = smov 32  }
  0x88   :  { %110 = dma.hbm_to_vmem [thread:$0]  %s7561_s7, 1024, %s7220_s13, [#allocation16], %s7090_s6, %s7090_s6, %s7091_s28  }
  0x89   :  { %7064 = dma.done.wait [#allocation4], 256  }
  0x8a   :  { %7065 = vsyncadd [#allocation4], 4294967040 }
  0x8b   :  { %7066 = dma.done.wait [#allocation7], 33024  }
  0x8c   :  { %7067 = vsyncadd [#allocation7], 4294934272 }
  0x8d   :  { %7068 = dma.done.wait [#allocation10], 10240  }
  0x8e   :  { %7069 = vsyncadd [#allocation10], 4294957056 }
  0x8f   :  { %7070 = dma.done.wait [#allocation13], 4096  }
  0x90   :  { %7071 = vsyncadd [#allocation13], 4294963200 }
  0x91   :  { %7072 = dma.done.wait [#allocation16], 1024  }
  0x92   :  { %7073 = vsyncadd [#allocation16], 4294966272  ;;  %v5971_v0 = vld [vmem:[#allocation8 + $0x4] ss:$16 sps:$4 sm:$0xff]   ;;  %v5975_v2 = vld [vmem:[#allocation8] ss:$16 sps:$4 sm:$0xff]   ;;  %v414_v38 = vlaneseq }
  0x93   :  { %v5973_v1 = vld [vmem:[#allocation8 + $0x204] ss:$16 sps:$4 sm:$0xff]   ;;  %1732 = vmatprep.subr.bf16.mxu0 %v5971_v0  ;;  %v5976_v3 = vld [vmem:[#allocation8 + $0x200] ss:$16 sps:$4 sm:$0xff]   ;;  %v7092_v36 = vmov 1983009808  }
  0x94   :  { %1773 = vmatprep.subr.bf16.mxu1 %v5973_v1  ;;  %v5977_v4 = vld [vmem:[#allocation8 + $0x24] ss:$16 sps:$4 sm:$0xff]   ;;  %1733 = vmatpush1.bf16.msra.mxu0 %v5975_v2  ;;  %v5981_v6 = vld [vmem:[#allocation8 + $0x20] ss:$16 sps:$4 sm:$0xff]   ;;  %v412_v37 = vunpack.c.l.s4 %v7092_v36  ;;  %v7251_v43 = vshrl.u32 %v414_v38, 7  ;;  %v151_v38 = vld [vmem:[#allocation3 + $0x8] sm:$0xff] }
  0x95   :  { %1774 = vmatpush1.bf16.msra.mxu1 %v5976_v3  ;;  %v5979_v5 = vld [vmem:[#allocation8 + $0x224] ss:$16 sps:$4 sm:$0xff]   ;;  %1734 = vmatprep.subr.bf16.mxu0 %v5977_v4  ;;  %v5982_v7 = vld [vmem:[#allocation8 + $0x220] ss:$16 sps:$4 sm:$0xff]   ;;  %vm144_vm1 = vcmask 0   ;;  %s7095_s7 = smov [#allocation17]  }
  0x96   :  { %1775 = vmatprep.subr.bf16.mxu1 %v5979_v5  ;;  %v5983_v8 = vld [vmem:[#allocation8 + $0x44] ss:$16 sps:$4 sm:$0xff]   ;;  %v5987_v10 = vld [vmem:[#allocation8 + $0x40] ss:$16 sps:$4 sm:$0xff]   ;;  %v413_v42 = vunpack.c.0.s8 %v412_v37  ;;  %vm4524_vm0 = vcmp.lt.s32.totalorder %v7251_v43, 4  ;;  %vm5222_vm2 = vcmp.ge.s32.totalorder %v7251_v43, 4 }
  0x97   :  { %v5985_v9 = vld [vmem:[#allocation8 + $0x244] ss:$16 sps:$4 sm:$0xff]   ;;  %v5988_v11 = vld [vmem:[#allocation8 + $0x240] ss:$16 sps:$4 sm:$0xff]   ;;  %s5240_s5 = sshll.u32 %s7095_s7, 4  ;;  %s5241_s5 = int_to_ptr.vmem [resolvable:$true] %s5240_s5 }
  0x98   :  { %1735 = vmatpush1.bf16.msra.mxu0 %v5981_v6  ;;  %v5989_v12 = vld [vmem:[#allocation8 + $0x64] ss:$16 sps:$4 sm:$0xff]   ;;  %v5993_v14 = vld [vmem:[#allocation8 + $0x60] ss:$16 sps:$4 sm:$0xff]   ;;  %v7254_v49 = vsub.s32 %v413_v42, %v7251_v43  ;;  %s7042_s1 = scalar_lea.vmem %s5241_s5, 16  ;;  %s7046_s27 = scalar_lea.vmem %s5241_s5, 32 }
  0x99   :  { %1776 = vmatpush1.bf16.msra.mxu1 %v5982_v7  ;;  %1736 = vmatprep.subr.bf16.mxu0 %v5983_v8  ;;  %v5991_v13 = vld [vmem:[#allocation8 + $0x264] ss:$16 sps:$4 sm:$0xff]   ;;  %v5994_v15 = vld [vmem:[#allocation8 + $0x260] ss:$16 sps:$4 sm:$0xff]   ;;  %p7043_p8 = scmp.ne.s32.totalorder %s5241_s5, %s7042_s1  ;;  %p7047_p9 = scmp.lt.s32.totalorder %s5241_s5, %s5241_s5 }
  0x9a   :  { %1777 = vmatprep.subr.bf16.mxu1 %v5985_v9  ;;  %v5995_v16 = vld [vmem:[#allocation8 + $0x84] ss:$16 sps:$4 sm:$0xff]   ;;  %v5999_v18 = vld [vmem:[#allocation8 + $0x80] ss:$16 sps:$4 sm:$0xff]   ;;  %p7048_p10 = scmp.lt.s32.totalorder %s7046_s27, %s7042_s1 }
  0x9b   :  { %v5997_v17 = vld [vmem:[#allocation8 + $0x284] ss:$16 sps:$4 sm:$0xff]   ;;  %v6000_v19 = vld [vmem:[#allocation8 + $0x280] ss:$16 sps:$4 sm:$0xff]  }
  0x9c   :  { %1737 = vmatpush1.bf16.msra.mxu0 %v5987_v10  ;;  %v6001_v20 = vld [vmem:[#allocation8 + $0xa4] ss:$16 sps:$4 sm:$0xff]   ;;  %v6005_v22 = vld [vmem:[#allocation8 + $0xa0] ss:$16 sps:$4 sm:$0xff]   ;;  %p7049_p11 = por %p7048_p10, %p7047_p9 }
  0x9d   :  { %1778 = vmatpush1.bf16.msra.mxu1 %v5988_v11  ;;  %1738 = vmatprep.subr.bf16.mxu0 %v5989_v12  ;;  %v6003_v21 = vld [vmem:[#allocation8 + $0x2a4] ss:$16 sps:$4 sm:$0xff]   ;;  %v6006_v23 = vld [vmem:[#allocation8 + $0x2a0] ss:$16 sps:$4 sm:$0xff]  }
  0x9e   :  { %1779 = vmatprep.subr.bf16.mxu1 %v5991_v13  ;;  %v6007_v24 = vld [vmem:[#allocation8 + $0xc4] ss:$16 sps:$4 sm:$0xff]   ;;  %v6011_v26 = vld [vmem:[#allocation8 + $0xc0] ss:$16 sps:$4 sm:$0xff]   ;;  %p7050_p12 = pnand %p7049_p11, %p7043_p8 }
  0x9f   :  { %v6009_v25 = vld [vmem:[#allocation8 + $0x2c4] ss:$16 sps:$4 sm:$0xff]   ;;  %v6012_v27 = vld [vmem:[#allocation8 + $0x2c0] ss:$16 sps:$4 sm:$0xff]  }
  0xa0   :  { %1739 = vmatpush1.bf16.msra.mxu0 %v5993_v14  ;;  %v6013_v28 = vld [vmem:[#allocation8 + $0xe4] ss:$16 sps:$4 sm:$0xff]   ;;  %v6017_v30 = vld [vmem:[#allocation8 + $0xe0] ss:$16 sps:$4 sm:$0xff]  }
  0xa1   :  { %1780 = vmatpush1.bf16.msra.mxu1 %v5994_v15  ;;  %1740 = vmatprep.subr.bf16.mxu0 %v5995_v16  ;;  %v6015_v29 = vld [vmem:[#allocation8 + $0x2e4] ss:$16 sps:$4 sm:$0xff]   ;;  %v6018_v31 = vld [vmem:[#allocation8 + $0x2e0] ss:$16 sps:$4 sm:$0xff]  }
  0xa2   :  { %1781 = vmatprep.subr.bf16.mxu1 %v5997_v17  ;;  %v6019_v32 = vld [vmem:[#allocation8 + $0x104] ss:$16 sps:$4 sm:$0xff]   ;;  %v6023_v34 = vld [vmem:[#allocation8 + $0x100] ss:$16 sps:$4 sm:$0xff]  }
  0xa3   :  { %v6021_v33 = vld [vmem:[#allocation8 + $0x304] ss:$16 sps:$4 sm:$0xff]   ;;  %v6024_v35 = vld [vmem:[#allocation8 + $0x300] ss:$16 sps:$4 sm:$0xff]  }
  0xa4   :  { %1741 = vmatpush1.bf16.msra.mxu0 %v5999_v18  ;;  %v6025_v39 = vld [vmem:[#allocation8 + $0x124] ss:$16 sps:$4 sm:$0xff]   ;;  %v6029_v41 = vld [vmem:[#allocation8 + $0x120] ss:$16 sps:$4 sm:$0xff]  }
  0xa5   :  { %1782 = vmatpush1.bf16.msra.mxu1 %v6000_v19  ;;  %1742 = vmatprep.subr.bf16.mxu0 %v6001_v20  ;;  %v6027_v40 = vld [vmem:[#allocation8 + $0x324] ss:$16 sps:$4 sm:$0xff]   ;;  %v6030_v44 = vld [vmem:[#allocation8 + $0x320] ss:$16 sps:$4 sm:$0xff]  }
  0xa6   :  { %1783 = vmatprep.subr.bf16.mxu1 %v6003_v21  ;;  %v6031_v45 = vld [vmem:[#allocation8 + $0x144] ss:$16 sps:$4 sm:$0xff]   ;;  %v6035_v47 = vld [vmem:[#allocation8 + $0x140] ss:$16 sps:$4 sm:$0xff]  }
  0xa7   :  { %v6033_v46 = vld [vmem:[#allocation8 + $0x344] ss:$16 sps:$4 sm:$0xff]   ;;  %v6036_v48 = vld [vmem:[#allocation8 + $0x340] ss:$16 sps:$4 sm:$0xff]  }
  0xa8   :  { %1743 = vmatpush1.bf16.msra.mxu0 %v6005_v22  ;;  %v6037_v50 = vld [vmem:[#allocation8 + $0x164] ss:$16 sps:$4 sm:$0xff]   ;;  %v6041_v53 = vld [vmem:[#allocation8 + $0x160] ss:$16 sps:$4 sm:$0xff]  }
  0xa9   :  { %1784 = vmatpush1.bf16.msra.mxu1 %v6006_v23  ;;  %1744 = vmatprep.subr.bf16.mxu0 %v6007_v24  ;;  %v6039_v51 = vld [vmem:[#allocation8 + $0x364] ss:$16 sps:$4 sm:$0xff]   ;;  %v6042_v56 = vld [vmem:[#allocation8 + $0x360] ss:$16 sps:$4 sm:$0xff]  }
  0xaa   :  { %1785 = vmatprep.subr.bf16.mxu1 %v6009_v25  ;;  %v150_v52 = vld [vmem:[#allocation3] sm:$0xff] }
  0xab   :  { %v7257_v54 = vrot.slane %v150_v52, %v7254_v49  ;;  %v410_v55 = vcombine.high %v150_v52, %v150_v52  ;;  %v6043_v57 = vld [vmem:[#allocation8 + $0x184] ss:$16 sps:$4 sm:$0xff]   ;;  %v6047_v61 = vld [vmem:[#allocation8 + $0x180] ss:$16 sps:$4 sm:$0xff]  }
  0xac   :  { %1745 = vmatpush1.bf16.msra.mxu0 %v6011_v26  ;;  %v6045_v58 = vld [vmem:[#allocation8 + $0x384] ss:$16 sps:$4 sm:$0xff]   ;;  %v6048_v63 = vld [vmem:[#allocation8 + $0x380] ss:$16 sps:$4 sm:$0xff]  }
  0xad   :  { %1786 = vmatpush1.bf16.msra.mxu1 %v6012_v27  ;;  %1746 = vmatprep.subr.bf16.mxu0 %v6013_v28  ;;  %v7261_v59 = vcombine.high %v7257_v54, %v7257_v54  ;;  %v7264_v60 = vrot.slane %v410_v55, %v7254_v49  ;;  %v6049_v0 = vld [vmem:[#allocation8 + $0x1a4] ss:$16 sps:$4 sm:$0xff]   ;;  %v6053_v2 = vld [vmem:[#allocation8 + $0x1a0] ss:$16 sps:$4 sm:$0xff]  }
  0xae   :  { %1787 = vmatprep.subr.bf16.mxu1 %v6015_v29  ;;  %v6051_v1 = vld [vmem:[#allocation8 + $0x3a4] ss:$16 sps:$4 sm:$0xff]   ;;  %v6054_v3 = vld [vmem:[#allocation8 + $0x3a0] ss:$16 sps:$4 sm:$0xff]  }
  0xaf   :  { %1764 = vmatprep.mubr.bf16.mxu0 %v7261_v59  ;;  %v7269_v62 = vcombine.high %v7264_v60, %v7264_v60  ;;  %v6055_v4 = vld [vmem:[#allocation8 + $0x1c4] ss:$16 sps:$4 sm:$0xff]   ;;  %v6059_v6 = vld [vmem:[#allocation8 + $0x1c0] ss:$16 sps:$4 sm:$0xff]  }
  0xb0   :  { %1747 = vmatpush1.bf16.msra.mxu0 %v6017_v30  ;;  %v6057_v5 = vld [vmem:[#allocation8 + $0x3c4] ss:$16 sps:$4 sm:$0xff]   ;;  %v6060_v7 = vld [vmem:[#allocation8 + $0x3c0] ss:$16 sps:$4 sm:$0xff]  }
  0xb1   :  { %1788 = vmatpush1.bf16.msra.mxu1 %v6018_v31  ;;  %1748 = vmatprep.subr.bf16.mxu0 %v6019_v32  ;;  %v6061_v8 = vld [vmem:[#allocation8 + $0x1e4] ss:$16 sps:$4 sm:$0xff]   ;;  %v6065_v10 = vld [vmem:[#allocation8 + $0x1e0] ss:$16 sps:$4 sm:$0xff]  }
  0xb2   :  { %1789 = vmatprep.subr.bf16.mxu1 %v6021_v33  ;;  %1805 = vmatprep.mubr.bf16.mxu1 %v7269_v62  ;;  %v6063_v9 = vld [vmem:[#allocation8 + $0x3e4] ss:$16 sps:$4 sm:$0xff]   ;;  %v6066_v11 = vld [vmem:[#allocation8 + $0x3e0] ss:$16 sps:$4 sm:$0xff]  }
  0xb3   :  { %v6070_v12 = vld [vmem:[#allocation8 + $0x404] ss:$16 sps:$4 sm:$0xff]   ;;  %v6068_v14 = vld [vmem:[#allocation8 + $0x400] ss:$16 sps:$4 sm:$0xff]  }
  0xb4   :  { %1749 = vmatpush1.bf16.msra.mxu0 %v6023_v34  ;;  %v6073_v13 = vld [vmem:[#allocation8 + $0x604] ss:$16 sps:$4 sm:$0xff]   ;;  %v6071_v15 = vld [vmem:[#allocation8 + $0x600] ss:$16 sps:$4 sm:$0xff]  }
  0xb5   :  { %1790 = vmatpush1.bf16.msra.mxu1 %v6024_v35  ;;  %1750 = vmatprep.subr.bf16.mxu0 %v6025_v39  ;;  %v6076_v16 = vld [vmem:[#allocation8 + $0x424] ss:$16 sps:$4 sm:$0xff]   ;;  %v6074_v18 = vld [vmem:[#allocation8 + $0x420] ss:$16 sps:$4 sm:$0xff]   ;;  %v7275_v39 = vrot.slane %v151_v38, %v7254_v49 }
  0xb6   :  { %1791 = vmatprep.subr.bf16.mxu1 %v6027_v40  ;;  %v6079_v17 = vld [vmem:[#allocation8 + $0x624] ss:$16 sps:$4 sm:$0xff]   ;;  %v6077_v19 = vld [vmem:[#allocation8 + $0x620] ss:$16 sps:$4 sm:$0xff]   ;;  %v427_v40 = vcombine.high %v151_v38, %v151_v38  ;;  %v7314_v38 = vld [vmem:[#allocation8 + $0x68] ss:$16 sps:$4 sm:$0xff]  }
  0xb7   :  { %v6082_v20 = vld [vmem:[#allocation8 + $0x444] ss:$16 sps:$4 sm:$0xff]   ;;  %v6080_v22 = vld [vmem:[#allocation8 + $0x440] ss:$16 sps:$4 sm:$0xff]  }
  0xb8   :  { %1751 = vmatpush1.bf16.msra.mxu0 %v6029_v41  ;;  %v6085_v21 = vld [vmem:[#allocation8 + $0x644] ss:$16 sps:$4 sm:$0xff]   ;;  %v6083_v23 = vld [vmem:[#allocation8 + $0x640] ss:$16 sps:$4 sm:$0xff]  }
  0xb9   :  { %1792 = vmatpush1.bf16.msra.mxu1 %v6030_v44  ;;  %1752 = vmatprep.subr.bf16.mxu0 %v6031_v45  ;;  %v6088_v24 = vld [vmem:[#allocation8 + $0x464] ss:$16 sps:$4 sm:$0xff]   ;;  %v6086_v26 = vld [vmem:[#allocation8 + $0x460] ss:$16 sps:$4 sm:$0xff]   ;;  %v7279_v44 = vcombine.high %v7275_v39, %v7275_v39  ;;  %v7282_v45 = vrot.slane %v427_v40, %v7254_v49  ;;  %v6194_v40 = vld [vmem:[#allocation8 + $0x28c] ss:$16 sps:$4 sm:$0xff]  }
  0xba   :  { %1793 = vmatprep.subr.bf16.mxu1 %v6033_v46  ;;  %v6091_v25 = vld [vmem:[#allocation8 + $0x664] ss:$16 sps:$4 sm:$0xff]   ;;  %v6089_v27 = vld [vmem:[#allocation8 + $0x660] ss:$16 sps:$4 sm:$0xff]  }
  0xbb   :  { %v6094_v28 = vld [vmem:[#allocation8 + $0x484] ss:$16 sps:$4 sm:$0xff]   ;;  %v6092_v30 = vld [vmem:[#allocation8 + $0x480] ss:$16 sps:$4 sm:$0xff]  }
  0xbc   :  { %1753 = vmatpush1.bf16.msra.mxu0 %v6035_v47  ;;  %v6097_v29 = vld [vmem:[#allocation8 + $0x684] ss:$16 sps:$4 sm:$0xff]   ;;  %v6095_v31 = vld [vmem:[#allocation8 + $0x680] ss:$16 sps:$4 sm:$0xff]  }
  0xbd   :  { %1794 = vmatpush1.bf16.msra.mxu1 %v6036_v48  ;;  %1754 = vmatprep.subr.bf16.mxu0 %v6037_v50  ;;  %v6100_v32 = vld [vmem:[#allocation8 + $0x4a4] ss:$16 sps:$4 sm:$0xff]   ;;  %v6098_v34 = vld [vmem:[#allocation8 + $0x4a0] ss:$16 sps:$4 sm:$0xff]   ;;  %v7287_v48 = vcombine.high %v7282_v45, %v7282_v45 }
  0xbe   :  { %1795 = vmatprep.subr.bf16.mxu1 %v6039_v51  ;;  %v6103_v33 = vld [vmem:[#allocation8 + $0x6a4] ss:$16 sps:$4 sm:$0xff]   ;;  %v6101_v35 = vld [vmem:[#allocation8 + $0x6a0] ss:$16 sps:$4 sm:$0xff]  }
  0xbf   :  { %v6106_v36 = vld [vmem:[#allocation8 + $0x4c4] ss:$16 sps:$4 sm:$0xff]   ;;  %v6104_v41 = vld [vmem:[#allocation8 + $0x4c0] ss:$16 sps:$4 sm:$0xff]  }
  0xc0   :  { %1755 = vmatpush1.bf16.msra.mxu0 %v6041_v53  ;;  %v6109_v37 = vld [vmem:[#allocation8 + $0x6c4] ss:$16 sps:$4 sm:$0xff]   ;;  %v6107_v42 = vld [vmem:[#allocation8 + $0x6c0] ss:$16 sps:$4 sm:$0xff]  }
  0xc1   :  { %1796 = vmatpush1.bf16.msra.mxu1 %v6042_v56  ;;  %1756 = vmatprep.subr.bf16.mxu0 %v6043_v57  ;;  %v6112_v46 = vld [vmem:[#allocation8 + $0x4e4] ss:$16 sps:$4 sm:$0xff]   ;;  %v6110_v50 = vld [vmem:[#allocation8 + $0x4e0] ss:$16 sps:$4 sm:$0xff]  }
  0xc2   :  { %1797 = vmatprep.subr.bf16.mxu1 %v6045_v58  ;;  %v6115_v47 = vld [vmem:[#allocation8 + $0x6e4] ss:$16 sps:$4 sm:$0xff]   ;;  %v6113_v51 = vld [vmem:[#allocation8 + $0x6e0] ss:$16 sps:$4 sm:$0xff]  }
  0xc3   :  { %v6118_v52 = vld [vmem:[#allocation8 + $0x504] ss:$16 sps:$4 sm:$0xff]   ;;  %v6116_v55 = vld [vmem:[#allocation8 + $0x500] ss:$16 sps:$4 sm:$0xff]  }
  0xc4   :  { %1757 = vmatpush1.bf16.msra.mxu0 %v6047_v61  ;;  %v6121_v53 = vld [vmem:[#allocation8 + $0x704] ss:$16 sps:$4 sm:$0xff]   ;;  %v6119_v56 = vld [vmem:[#allocation8 + $0x700] ss:$16 sps:$4 sm:$0xff]  }
  0xc5   :  { %1798 = vmatpush1.bf16.msra.mxu1 %v6048_v63  ;;  %1758 = vmatprep.subr.bf16.mxu0 %v6049_v0  ;;  %v6124_v57 = vld [vmem:[#allocation8 + $0x524] ss:$16 sps:$4 sm:$0xff]   ;;  %v6122_v61 = vld [vmem:[#allocation8 + $0x520] ss:$16 sps:$4 sm:$0xff]  }
  0xc6   :  { %1799 = vmatprep.subr.bf16.mxu1 %v6051_v1  ;;  %v6127_v58 = vld [vmem:[#allocation8 + $0x724] ss:$16 sps:$4 sm:$0xff]   ;;  %v6125_v63 = vld [vmem:[#allocation8 + $0x720] ss:$16 sps:$4 sm:$0xff]  }
  0xc7   :  { %v6130_v0 = vld [vmem:[#allocation8 + $0x544] ss:$16 sps:$4 sm:$0xff]  }
  0xc8   :  { %1759 = vmatpush1.bf16.msra.mxu0 %v6053_v2  ;;  %v6133_v1 = vld [vmem:[#allocation8 + $0x744] ss:$16 sps:$4 sm:$0xff]   ;;  %v6128_v2 = vld [vmem:[#allocation8 + $0x540] ss:$16 sps:$4 sm:$0xff]  }
  0xc9   :  { %1800 = vmatpush1.bf16.msra.mxu1 %v6054_v3  ;;  %1760 = vmatprep.subr.bf16.mxu0 %v6055_v4  ;;  %v6131_v3 = vld [vmem:[#allocation8 + $0x740] ss:$16 sps:$4 sm:$0xff]   ;;  %v6136_v4 = vld [vmem:[#allocation8 + $0x564] ss:$16 sps:$4 sm:$0xff]  }
  0xca   :  { %1801 = vmatprep.subr.bf16.mxu1 %v6057_v5  ;;  %v6139_v5 = vld [vmem:[#allocation8 + $0x764] ss:$16 sps:$4 sm:$0xff]  }
  0xcc   :  { %1761 = vmatpush1.bf16.msra.mxu0 %v6059_v6  ;;  %v6134_v6 = vld [vmem:[#allocation8 + $0x560] ss:$16 sps:$4 sm:$0xff]  }
  0xcd   :  { %1802 = vmatpush1.bf16.msra.mxu1 %v6060_v7  ;;  %1762 = vmatprep.subr.bf16.mxu0 %v6061_v8  ;;  %v6137_v7 = vld [vmem:[#allocation8 + $0x760] ss:$16 sps:$4 sm:$0xff]   ;;  %v6142_v8 = vld [vmem:[#allocation8 + $0x584] ss:$16 sps:$4 sm:$0xff]  }
  0xce   :  { %1803 = vmatprep.subr.bf16.mxu1 %v6063_v9  ;;  %v6145_v9 = vld [vmem:[#allocation8 + $0x784] ss:$16 sps:$4 sm:$0xff]  }
  0xd0   :  { %1763 = vmatpush1.bf16.msra.mxu0 %v6065_v10  ;;  %v6140_v10 = vld [vmem:[#allocation8 + $0x580] ss:$16 sps:$4 sm:$0xff]  }
  0xd1   :  { %1804 = vmatpush1.bf16.msra.mxu1 %v6066_v11  ;;  %1814 = vmatprep.subr.bf16.mxu0 %v6070_v12  ;;  %v6143_v11 = vld [vmem:[#allocation8 + $0x780] ss:$16 sps:$4 sm:$0xff]   ;;  %v6148_v12 = vld [vmem:[#allocation8 + $0x5a4] ss:$16 sps:$4 sm:$0xff]  }
  0xd2   :  { %1855 = vmatprep.subr.bf16.mxu1 %v6073_v13  ;;  %v6151_v13 = vld [vmem:[#allocation8 + $0x7a4] ss:$16 sps:$4 sm:$0xff]  }
  0xd3   :  { %1765 = vmatmul.mubr.bf16.vlgmr.msra.gmra.mrb[0].mxu0 %v7257_v54 }
  0xd4   :  { %1806 = vmatmul.mubr.bf16.vlgmr.msra.gmra.mrb[0].mxu1 %v7264_v60  ;;  %1815 = vmatpush1.bf16.msra.mxu0 %v6068_v14  ;;  %v6146_v14 = vld [vmem:[#allocation8 + $0x5a0] ss:$16 sps:$4 sm:$0xff]  }
  0xd5   :  { %1856 = vmatpush1.bf16.msra.mxu1 %v6071_v15  ;;  %1816 = vmatprep.subr.bf16.mxu0 %v6076_v16  ;;  %v6149_v15 = vld [vmem:[#allocation8 + $0x7a0] ss:$16 sps:$4 sm:$0xff]   ;;  %v6154_v16 = vld [vmem:[#allocation8 + $0x5c4] ss:$16 sps:$4 sm:$0xff]  }
  0xd6   :  { %1857 = vmatprep.subr.bf16.mxu1 %v6079_v17  ;;  %1846 = vmatprep.mubr.bf16.mxu0 %v7279_v44  ;;  %v6157_v17 = vld [vmem:[#allocation8 + $0x7c4] ss:$16 sps:$4 sm:$0xff]  }
  0xd7   :  { %1887 = vmatprep.mubr.bf16.mxu1 %v7287_v48 }
  0xd8   :  { %1817 = vmatpush1.bf16.msra.mxu0 %v6074_v18  ;;  %v6152_v18 = vld [vmem:[#allocation8 + $0x5c0] ss:$16 sps:$4 sm:$0xff]  }
  0xd9   :  { %1858 = vmatpush1.bf16.msra.mxu1 %v6077_v19  ;;  %1818 = vmatprep.subr.bf16.mxu0 %v6082_v20  ;;  %v6155_v19 = vld [vmem:[#allocation8 + $0x7c0] ss:$16 sps:$4 sm:$0xff]   ;;  %v6160_v20 = vld [vmem:[#allocation8 + $0x5e4] ss:$16 sps:$4 sm:$0xff]  }
  0xda   :  { %1859 = vmatprep.subr.bf16.mxu1 %v6085_v21  ;;  %v6163_v21 = vld [vmem:[#allocation8 + $0x7e4] ss:$16 sps:$4 sm:$0xff]  }
  0xdc   :  { %1819 = vmatpush1.bf16.msra.mxu0 %v6080_v22  ;;  %v6158_v22 = vld [vmem:[#allocation8 + $0x5e0] ss:$16 sps:$4 sm:$0xff]  }
  0xdd   :  { %1860 = vmatpush1.bf16.msra.mxu1 %v6083_v23  ;;  %1820 = vmatprep.subr.bf16.mxu0 %v6088_v24  ;;  %v6161_v23 = vld [vmem:[#allocation8 + $0x7e0] ss:$16 sps:$4 sm:$0xff]   ;;  %v7290_v24 = vld [vmem:[#allocation8 + $0xc] ss:$16 sps:$4 sm:$0xff]  }
  0xde   :  { %1861 = vmatprep.subr.bf16.mxu1 %v6091_v25  ;;  %v6170_v25 = vld [vmem:[#allocation8 + $0x20c] ss:$16 sps:$4 sm:$0xff]  }
  0xe0   :  { %1821 = vmatpush1.bf16.msra.mxu0 %v6086_v26  ;;  %v7292_v26 = vld [vmem:[#allocation8 + $0x8] ss:$16 sps:$4 sm:$0xff]  }
  0xe1   :  { %1862 = vmatpush1.bf16.msra.mxu1 %v6089_v27  ;;  %1822 = vmatprep.subr.bf16.mxu0 %v6094_v28  ;;  %v6168_v27 = vld [vmem:[#allocation8 + $0x208] ss:$16 sps:$4 sm:$0xff]   ;;  %v7295_v28 = vld [vmem:[#allocation8 + $0x2c] ss:$16 sps:$4 sm:$0xff]  }
  0xe2   :  { %1863 = vmatprep.subr.bf16.mxu1 %v6097_v29  ;;  %v6176_v29 = vld [vmem:[#allocation8 + $0x22c] ss:$16 sps:$4 sm:$0xff]  }
  0xe4   :  { %1823 = vmatpush1.bf16.msra.mxu0 %v6092_v30  ;;  %v7300_v30 = vld [vmem:[#allocation8 + $0x28] ss:$16 sps:$4 sm:$0xff]  }
  0xe5   :  { %1864 = vmatpush1.bf16.msra.mxu1 %v6095_v31  ;;  %1824 = vmatprep.subr.bf16.mxu0 %v6100_v32  ;;  %v6174_v31 = vld [vmem:[#allocation8 + $0x228] ss:$16 sps:$4 sm:$0xff]   ;;  %v7303_v32 = vld [vmem:[#allocation8 + $0x4c] ss:$16 sps:$4 sm:$0xff]  }
  0xe6   :  { %1865 = vmatprep.subr.bf16.mxu1 %v6103_v33  ;;  %v6182_v33 = vld [vmem:[#allocation8 + $0x24c] ss:$16 sps:$4 sm:$0xff]  }
  0xe8   :  { %1825 = vmatpush1.bf16.msra.mxu0 %v6098_v34  ;;  %v7308_v34 = vld [vmem:[#allocation8 + $0x48] ss:$16 sps:$4 sm:$0xff]  }
  0xe9   :  { %1866 = vmatpush1.bf16.msra.mxu1 %v6101_v35  ;;  %1826 = vmatprep.subr.bf16.mxu0 %v6106_v36  ;;  %v6180_v35 = vld [vmem:[#allocation8 + $0x248] ss:$16 sps:$4 sm:$0xff]   ;;  %v7311_v36 = vld [vmem:[#allocation8 + $0x6c] ss:$16 sps:$4 sm:$0xff]  }
  0xea   :  { %1867 = vmatprep.subr.bf16.mxu1 %v6109_v37  ;;  %v6188_v37 = vld [vmem:[#allocation8 + $0x26c] ss:$16 sps:$4 sm:$0xff]  }
  0xec   :  { %1827 = vmatpush1.bf16.msra.mxu0 %v6104_v41  ;;  %v7320_v41 = vld [vmem:[#allocation8 + $0x88] ss:$16 sps:$4 sm:$0xff]  }
  0xed   :  { %1868 = vmatpush1.bf16.msra.mxu1 %v6107_v42  ;;  %1828 = vmatprep.subr.bf16.mxu0 %v6112_v46  ;;  %v6192_v42 = vld [vmem:[#allocation8 + $0x288] ss:$16 sps:$4 sm:$0xff]   ;;  %v7323_v46 = vld [vmem:[#allocation8 + $0xac] ss:$16 sps:$4 sm:$0xff]  }
  0xee   :  { %1869 = vmatprep.subr.bf16.mxu1 %v6115_v47  ;;  %v6200_v47 = vld [vmem:[#allocation8 + $0x2ac] ss:$16 sps:$4 sm:$0xff]  }
  0xf0   :  { %1829 = vmatpush1.bf16.msra.mxu0 %v6110_v50  ;;  %v7326_v50 = vld [vmem:[#allocation8 + $0xa8] ss:$16 sps:$4 sm:$0xff]  }
  0xf1   :  { %1870 = vmatpush1.bf16.msra.mxu1 %v6113_v51  ;;  %1830 = vmatprep.subr.bf16.mxu0 %v6118_v52  ;;  %v6198_v51 = vld [vmem:[#allocation8 + $0x2a8] ss:$16 sps:$4 sm:$0xff]   ;;  %v6203_v52 = vld [vmem:[#allocation8 + $0xcc] ss:$16 sps:$4 sm:$0xff]  }
  0xf2   :  { %1871 = vmatprep.subr.bf16.mxu1 %v6121_v53  ;;  %v6206_v53 = vld [vmem:[#allocation8 + $0x2cc] ss:$16 sps:$4 sm:$0xff]  }
  0xf4   :  { %1831 = vmatpush1.bf16.msra.mxu0 %v6116_v55  ;;  %v7330_v55 = vld [vmem:[#allocation8 + $0xc8] ss:$16 sps:$4 sm:$0xff]  }
  0xf5   :  { %1872 = vmatpush1.bf16.msra.mxu1 %v6119_v56  ;;  %1832 = vmatprep.subr.bf16.mxu0 %v6124_v57  ;;  %v6204_v56 = vld [vmem:[#allocation8 + $0x2c8] ss:$16 sps:$4 sm:$0xff]   ;;  %v7332_v57 = vld [vmem:[#allocation8 + $0xec] ss:$16 sps:$4 sm:$0xff]  }
  0xf6   :  { %1873 = vmatprep.subr.bf16.mxu1 %v6127_v58  ;;  %v6212_v58 = vld [vmem:[#allocation8 + $0x2ec] ss:$16 sps:$4 sm:$0xff]  }
  0xf8   :  { %1833 = vmatpush1.bf16.msra.mxu0 %v6122_v61  ;;  %v7335_v61 = vld [vmem:[#allocation8 + $0xe8] ss:$16 sps:$4 sm:$0xff]  }
  0xf9   :  { %1874 = vmatpush1.bf16.msra.mxu1 %v6125_v63  ;;  %1834 = vmatprep.subr.bf16.mxu0 %v6130_v0  ;;  %v6210_v63 = vld [vmem:[#allocation8 + $0x2e8] ss:$16 sps:$4 sm:$0xff]   ;;  %v7338_v0 = vld [vmem:[#allocation8 + $0x10c] ss:$16 sps:$4 sm:$0xff]  }
  0xfa   :  { %1875 = vmatprep.subr.bf16.mxu1 %v6133_v1  ;;  %v6218_v1 = vld [vmem:[#allocation8 + $0x30c] ss:$16 sps:$4 sm:$0xff]  }
  0xfc   :  { %1835 = vmatpush1.bf16.msra.mxu0 %v6128_v2  ;;  %v7341_v2 = vld [vmem:[#allocation8 + $0x108] ss:$16 sps:$4 sm:$0xff]  }
  0xfd   :  { %1876 = vmatpush1.bf16.msra.mxu1 %v6131_v3  ;;  %1836 = vmatprep.subr.bf16.mxu0 %v6136_v4  ;;  %v6216_v3 = vld [vmem:[#allocation8 + $0x308] ss:$16 sps:$4 sm:$0xff]   ;;  %v7344_v4 = vld [vmem:[#allocation8 + $0x12c] ss:$16 sps:$4 sm:$0xff]  }
  0xfe   :  { %1877 = vmatprep.subr.bf16.mxu1 %v6139_v5  ;;  %v6224_v5 = vld [vmem:[#allocation8 + $0x32c] ss:$16 sps:$4 sm:$0xff]  }
 0x100   :  { %1837 = vmatpush1.bf16.msra.mxu0 %v6134_v6  ;;  %v7347_v6 = vld [vmem:[#allocation8 + $0x128] ss:$16 sps:$4 sm:$0xff]  }
 0x101   :  { %1878 = vmatpush1.bf16.msra.mxu1 %v6137_v7  ;;  %1838 = vmatprep.subr.bf16.mxu0 %v6142_v8  ;;  %v6222_v7 = vld [vmem:[#allocation8 + $0x328] ss:$16 sps:$4 sm:$0xff]   ;;  %v7350_v8 = vld [vmem:[#allocation8 + $0x14c] ss:$16 sps:$4 sm:$0xff]  }
 0x102   :  { %1879 = vmatprep.subr.bf16.mxu1 %v6145_v9  ;;  %v6230_v9 = vld [vmem:[#allocation8 + $0x34c] ss:$16 sps:$4 sm:$0xff]  }
 0x104   :  { %1839 = vmatpush1.bf16.msra.mxu0 %v6140_v10  ;;  %v7353_v10 = vld [vmem:[#allocation8 + $0x148] ss:$16 sps:$4 sm:$0xff]  }
 0x105   :  { %1880 = vmatpush1.bf16.msra.mxu1 %v6143_v11  ;;  %1840 = vmatprep.subr.bf16.mxu0 %v6148_v12  ;;  %v6228_v11 = vld [vmem:[#allocation8 + $0x348] ss:$16 sps:$4 sm:$0xff]   ;;  %v7356_v12 = vld [vmem:[#allocation8 + $0x16c] ss:$16 sps:$4 sm:$0xff]  }
 0x106   :  { %1881 = vmatprep.subr.bf16.mxu1 %v6151_v13  ;;  %v6236_v13 = vld [vmem:[#allocation8 + $0x36c] ss:$16 sps:$4 sm:$0xff]  }
 0x108   :  { %1841 = vmatpush1.bf16.msra.mxu0 %v6146_v14  ;;  %v7359_v14 = vld [vmem:[#allocation8 + $0x168] ss:$16 sps:$4 sm:$0xff]  }
 0x109   :  { %1882 = vmatpush1.bf16.msra.mxu1 %v6149_v15  ;;  %1842 = vmatprep.subr.bf16.mxu0 %v6154_v16  ;;  %v6234_v15 = vld [vmem:[#allocation8 + $0x368] ss:$16 sps:$4 sm:$0xff]   ;;  %v7362_v16 = vld [vmem:[#allocation8 + $0x18c] ss:$16 sps:$4 sm:$0xff]  }
 0x10a   :  { %1883 = vmatprep.subr.bf16.mxu1 %v6157_v17  ;;  %v6242_v17 = vld [vmem:[#allocation8 + $0x38c] ss:$16 sps:$4 sm:$0xff]  }
 0x10c   :  { %1843 = vmatpush1.bf16.msra.mxu0 %v6152_v18  ;;  %v7365_v18 = vld [vmem:[#allocation8 + $0x188] ss:$16 sps:$4 sm:$0xff]  }
 0x10d   :  { %1884 = vmatpush1.bf16.msra.mxu1 %v6155_v19  ;;  %1844 = vmatprep.subr.bf16.mxu0 %v6160_v20  ;;  %v6240_v19 = vld [vmem:[#allocation8 + $0x388] ss:$16 sps:$4 sm:$0xff]   ;;  %v7368_v20 = vld [vmem:[#allocation8 + $0x1ac] ss:$16 sps:$4 sm:$0xff]  }
 0x10e   :  { %1885 = vmatprep.subr.bf16.mxu1 %v6163_v21  ;;  %v6248_v21 = vld [vmem:[#allocation8 + $0x3ac] ss:$16 sps:$4 sm:$0xff]  }
 0x110   :  { %1845 = vmatpush1.bf16.msra.mxu0 %v6158_v22  ;;  %v7371_v22 = vld [vmem:[#allocation8 + $0x1a8] ss:$16 sps:$4 sm:$0xff]  }
 0x111   :  { %1886 = vmatpush1.bf16.msra.mxu1 %v6161_v23  ;;  %1896 = vmatprep.subr.bf16.mxu0 %v7290_v24  ;;  %v6246_v23 = vld [vmem:[#allocation8 + $0x3a8] ss:$16 sps:$4 sm:$0xff]  }
 0x112   :  { %1937 = vmatprep.subr.bf16.mxu1 %v6170_v25  ;;  %v7374_v25 = vld [vmem:[#allocation8 + $0x1cc] ss:$16 sps:$4 sm:$0xff]  }
 0x113   :  { %1847 = vmatmul.mubr.bf16.vlgmr.msra.gmra.mrb[4].mxu0 %v7275_v39 }
 0x114   :  { %1888 = vmatmul.mubr.bf16.vlgmr.msra.gmra.mrb[4].mxu1 %v7282_v45  ;;  %1897 = vmatpush1.bf16.msra.mxu0 %v7292_v26 }
 0x115   :  { %1938 = vmatpush1.bf16.msra.mxu1 %v6168_v27  ;;  %1898 = vmatprep.subr.bf16.mxu0 %v7295_v28  ;;  %v6254_v27 = vld [vmem:[#allocation8 + $0x3cc] ss:$16 sps:$4 sm:$0xff]  }
 0x116   :  { %1939 = vmatprep.subr.bf16.mxu1 %v6176_v29  ;;  %1928 = vmatprep.mubr.bf16.mxu0 %v7261_v59  ;;  %v6186_v59 = vld [vmem:[#allocation8 + $0x268] ss:$16 sps:$4 sm:$0xff]  }
 0x117   :  { %1969 = vmatprep.mubr.bf16.mxu1 %v7269_v62  ;;  %v7317_v62 = vld [vmem:[#allocation8 + $0x8c] ss:$16 sps:$4 sm:$0xff]   ;;  %v6249_v29 = vld [vmem:[#allocation8 + $0x1c8] ss:$16 sps:$4 sm:$0xff]  }
 0x118   :  { %1899 = vmatpush1.bf16.msra.mxu0 %v7300_v30 }
 0x119   :  { %1940 = vmatpush1.bf16.msra.mxu1 %v6174_v31  ;;  %1900 = vmatprep.subr.bf16.mxu0 %v7303_v32  ;;  %v6252_v31 = vld [vmem:[#allocation8 + $0x3c8] ss:$16 sps:$4 sm:$0xff]  }
 0x11a   :  { %1941 = vmatprep.subr.bf16.mxu1 %v6182_v33  ;;  %v7378_v33 = vld [vmem:[#allocation8 + $0x1ec] ss:$16 sps:$4 sm:$0xff]  }
 0x11c   :  { %1901 = vmatpush1.bf16.msra.mxu0 %v7308_v34 }
 0x11d   :  { %1942 = vmatpush1.bf16.msra.mxu1 %v6180_v35  ;;  %1902 = vmatprep.subr.bf16.mxu0 %v7311_v36  ;;  %v6260_v35 = vld [vmem:[#allocation8 + $0x3ec] ss:$16 sps:$4 sm:$0xff]  }
 0x11e   :  { %1943 = vmatprep.subr.bf16.mxu1 %v6188_v37  ;;  %v6255_v37 = vld [vmem:[#allocation8 + $0x1e8] ss:$16 sps:$4 sm:$0xff]  }
 0x120   :  { %1903 = vmatpush1.bf16.msra.mxu0 %v7314_v38 }
 0x121   :  { %1944 = vmatpush1.bf16.msra.mxu1 %v6186_v59  ;;  %1904 = vmatprep.subr.bf16.mxu0 %v7317_v62  ;;  %v6258_v59 = vld [vmem:[#allocation8 + $0x3e8] ss:$16 sps:$4 sm:$0xff]  }
 0x122   :  { %1945 = vmatprep.subr.bf16.mxu1 %v6194_v40  ;;  %v6263_v40 = vld [vmem:[#allocation8 + $0x40c] ss:$16 sps:$4 sm:$0xff]  }
 0x124   :  { %1905 = vmatpush1.bf16.msra.mxu0 %v7320_v41 }
 0x125   :  { %1946 = vmatpush1.bf16.msra.mxu1 %v6192_v42  ;;  %1906 = vmatprep.subr.bf16.mxu0 %v7323_v46  ;;  %v6266_v42 = vld [vmem:[#allocation8 + $0x60c] ss:$16 sps:$4 sm:$0xff]  }
 0x126   :  { %1947 = vmatprep.subr.bf16.mxu1 %v6200_v47  ;;  %v6261_v47 = vld [vmem:[#allocation8 + $0x408] ss:$16 sps:$4 sm:$0xff]  }
 0x128   :  { %1907 = vmatpush1.bf16.msra.mxu0 %v7326_v50 }
 0x129   :  { %1948 = vmatpush1.bf16.msra.mxu1 %v6198_v51  ;;  %1908 = vmatprep.subr.bf16.mxu0 %v6203_v52  ;;  %v6264_v51 = vld [vmem:[#allocation8 + $0x608] ss:$16 sps:$4 sm:$0xff]   ;;  %v6269_v52 = vld [vmem:[#allocation8 + $0x42c] ss:$16 sps:$4 sm:$0xff]  }
 0x12a   :  { %1949 = vmatprep.subr.bf16.mxu1 %v6206_v53  ;;  %v6272_v53 = vld [vmem:[#allocation8 + $0x62c] ss:$16 sps:$4 sm:$0xff]  }
 0x12c   :  { %1909 = vmatpush1.bf16.msra.mxu0 %v7330_v55 }
 0x12d   :  { %1950 = vmatpush1.bf16.msra.mxu1 %v6204_v56  ;;  %1910 = vmatprep.subr.bf16.mxu0 %v7332_v57  ;;  %v6267_v56 = vld [vmem:[#allocation8 + $0x428] ss:$16 sps:$4 sm:$0xff]  }
 0x12e   :  { %1951 = vmatprep.subr.bf16.mxu1 %v6212_v58  ;;  %v6270_v58 = vld [vmem:[#allocation8 + $0x628] ss:$16 sps:$4 sm:$0xff]  }
 0x130   :  { %1911 = vmatpush1.bf16.msra.mxu0 %v7335_v61 }
 0x131   :  { %1952 = vmatpush1.bf16.msra.mxu1 %v6210_v63  ;;  %1912 = vmatprep.subr.bf16.mxu0 %v7338_v0  ;;  %v6275_v63 = vld [vmem:[#allocation8 + $0x44c] ss:$16 sps:$4 sm:$0xff]  }
 0x132   :  { %1953 = vmatprep.subr.bf16.mxu1 %v6218_v1  ;;  %v6278_v1 = vld [vmem:[#allocation8 + $0x64c] ss:$16 sps:$4 sm:$0xff]  }
 0x134   :  { %1913 = vmatpush1.bf16.msra.mxu0 %v7341_v2 }
 0x135   :  { %1954 = vmatpush1.bf16.msra.mxu1 %v6216_v3  ;;  %1914 = vmatprep.subr.bf16.mxu0 %v7344_v4  ;;  %v6273_v3 = vld [vmem:[#allocation8 + $0x448] ss:$16 sps:$4 sm:$0xff]  }
 0x136   :  { %1955 = vmatprep.subr.bf16.mxu1 %v6224_v5  ;;  %v6276_v5 = vld [vmem:[#allocation8 + $0x648] ss:$16 sps:$4 sm:$0xff]  }
 0x138   :  { %1915 = vmatpush1.bf16.msra.mxu0 %v7347_v6 }
 0x139   :  { %1956 = vmatpush1.bf16.msra.mxu1 %v6222_v7  ;;  %1916 = vmatprep.subr.bf16.mxu0 %v7350_v8  ;;  %v6279_v7 = vld [vmem:[#allocation8 + $0x468] ss:$16 sps:$4 sm:$0xff]  }
 0x13a   :  { %1957 = vmatprep.subr.bf16.mxu1 %v6230_v9  ;;  %v6282_v9 = vld [vmem:[#allocation8 + $0x668] ss:$16 sps:$4 sm:$0xff]  }
 0x13c   :  { %1917 = vmatpush1.bf16.msra.mxu0 %v7353_v10 }
 0x13d   :  { %1958 = vmatpush1.bf16.msra.mxu1 %v6228_v11  ;;  %1918 = vmatprep.subr.bf16.mxu0 %v7356_v12  ;;  %v6287_v11 = vld [vmem:[#allocation8 + $0x48c] ss:$16 sps:$4 sm:$0xff]  }
 0x13e   :  { %1959 = vmatprep.subr.bf16.mxu1 %v6236_v13  ;;  %v6290_v13 = vld [vmem:[#allocation8 + $0x68c] ss:$16 sps:$4 sm:$0xff]  }
 0x140   :  { %1919 = vmatpush1.bf16.msra.mxu0 %v7359_v14 }
 0x141   :  { %1960 = vmatpush1.bf16.msra.mxu1 %v6234_v15  ;;  %1920 = vmatprep.subr.bf16.mxu0 %v7362_v16  ;;  %v6293_v15 = vld [vmem:[#allocation8 + $0x4ac] ss:$16 sps:$4 sm:$0xff]  }
 0x142   :  { %1961 = vmatprep.subr.bf16.mxu1 %v6242_v17  ;;  %v6296_v17 = vld [vmem:[#allocation8 + $0x6ac] ss:$16 sps:$4 sm:$0xff]  }
 0x144   :  { %1921 = vmatpush1.bf16.msra.mxu0 %v7365_v18 }
 0x145   :  { %1962 = vmatpush1.bf16.msra.mxu1 %v6240_v19  ;;  %1922 = vmatprep.subr.bf16.mxu0 %v7368_v20  ;;  %v6291_v19 = vld [vmem:[#allocation8 + $0x4a8] ss:$16 sps:$4 sm:$0xff]  }
 0x146   :  { %1963 = vmatprep.subr.bf16.mxu1 %v6248_v21  ;;  %v6294_v21 = vld [vmem:[#allocation8 + $0x6a8] ss:$16 sps:$4 sm:$0xff]  }
 0x148   :  { %1923 = vmatpush1.bf16.msra.mxu0 %v7371_v22 }
 0x149   :  { %1964 = vmatpush1.bf16.msra.mxu1 %v6246_v23  ;;  %1924 = vmatprep.subr.bf16.mxu0 %v7374_v25  ;;  %v7093_v23 = vmov 0.0  }
 0x14a   :  { %1965 = vmatprep.subr.bf16.mxu1 %v6254_v27  ;;  %140 = vst [vmem:[#allocation2] sm:$0xff] %v7093_v23  ;;  %141 = vst [vmem:[#allocation2 + $0x8] sm:$0xff] %v7093_v23  ;;  %v6299_v27 = vld [vmem:[#allocation8 + $0x4cc] ss:$16 sps:$4 sm:$0xff]  }
 0x14b   :  { %142 = vst [vmem:[#allocation2 + $0x10] sm:$0xff] %v7093_v23  ;;  %143 = vst [vmem:[#allocation2 + $0x18] sm:$0xff] %v7093_v23 }
 0x14c   :  { %1925 = vmatpush1.bf16.msra.mxu0 %v6249_v29  ;;  %v6302_v29 = vld [vmem:[#allocation8 + $0x6cc] ss:$16 sps:$4 sm:$0xff]   ;;  %145 = vst.msk [vmem:[#allocation17] sm:$0x1] %vm144_vm1, %v7093_v23 }
 0x14d   :  { %1966 = vmatpush1.bf16.msra.mxu1 %v6252_v31  ;;  %1926 = vmatprep.subr.bf16.mxu0 %v7378_v33  ;;  %v6297_v31 = vld [vmem:[#allocation8 + $0x4c8] ss:$16 sps:$4 sm:$0xff]  }
 0x14e   :  { %1967 = vmatprep.subr.bf16.mxu1 %v6260_v35  ;;  %v6300_v35 = vld [vmem:[#allocation8 + $0x6c8] ss:$16 sps:$4 sm:$0xff]  }
 0x150   :  { %1927 = vmatpush1.bf16.msra.mxu0 %v6255_v37  ;;  %v6305_v37 = vld [vmem:[#allocation8 + $0x4ec] ss:$16 sps:$4 sm:$0xff]  }
 0x151   :  { %1968 = vmatpush1.bf16.msra.mxu1 %v6258_v59  ;;  %1978 = vmatprep.subr.bf16.mxu0 %v6263_v40  ;;  %v6308_v59 = vld [vmem:[#allocation8 + $0x6ec] ss:$16 sps:$4 sm:$0xff]   ;;  %v6303_v40 = vld [vmem:[#allocation8 + $0x4e8] ss:$16 sps:$4 sm:$0xff]  }
 0x152   :  { %2019 = vmatprep.subr.bf16.mxu1 %v6266_v42  ;;  %v6306_v42 = vld [vmem:[#allocation8 + $0x6e8] ss:$16 sps:$4 sm:$0xff]  }
 0x153   :  { %1929 = vmatmul.mubr.bf16.vlgmr.msra.gmra.mrb[8].mxu0 %v7257_v54  ;;  %v6281_v54 = vld [vmem:[#allocation8 + $0x46c] ss:$16 sps:$4 sm:$0xff]  }
 0x154   :  { %1970 = vmatmul.mubr.bf16.vlgmr.msra.gmra.mrb[8].mxu1 %v7264_v60  ;;  %1979 = vmatpush1.bf16.msra.mxu0 %v6261_v47  ;;  %v6284_v60 = vld [vmem:[#allocation8 + $0x66c] ss:$16 sps:$4 sm:$0xff]  }
 0x155   :  { %2020 = vmatpush1.bf16.msra.mxu1 %v6264_v51  ;;  %1980 = vmatprep.subr.bf16.mxu0 %v6269_v52  ;;  %v6311_v47 = vld [vmem:[#allocation8 + $0x50c] ss:$16 sps:$4 sm:$0xff]   ;;  %v6309_v52 = vld [vmem:[#allocation8 + $0x508] ss:$16 sps:$4 sm:$0xff]  }
 0x156   :  { %2021 = vmatprep.subr.bf16.mxu1 %v6272_v53  ;;  %2010 = vmatprep.mubr.bf16.mxu0 %v7279_v44  ;;  %v6285_v44 = vld [vmem:[#allocation8 + $0x488] ss:$16 sps:$4 sm:$0xff]   ;;  %v6314_v51 = vld [vmem:[#allocation8 + $0x70c] ss:$16 sps:$4 sm:$0xff]  }
 0x157   :  { %2051 = vmatprep.mubr.bf16.mxu1 %v7287_v48  ;;  %v6288_v48 = vld [vmem:[#allocation8 + $0x688] ss:$16 sps:$4 sm:$0xff]  }
 0x158   :  { %1981 = vmatpush1.bf16.msra.mxu0 %v6267_v56  ;;  %v6312_v53 = vld [vmem:[#allocation8 + $0x708] ss:$16 sps:$4 sm:$0xff]   ;;  %v6317_v56 = vld [vmem:[#allocation8 + $0x52c] ss:$16 sps:$4 sm:$0xff]  }
 0x159   :  { %2022 = vmatpush1.bf16.msra.mxu1 %v6270_v58  ;;  %1982 = vmatprep.subr.bf16.mxu0 %v6275_v63  ;;  %v6320_v58 = vld [vmem:[#allocation8 + $0x72c] ss:$16 sps:$4 sm:$0xff]   ;;  %v6315_v63 = vld [vmem:[#allocation8 + $0x528] ss:$16 sps:$4 sm:$0xff]  }
 0x15a   :  { %2023 = vmatprep.subr.bf16.mxu1 %v6278_v1  ;;  %v6318_v1 = vld [vmem:[#allocation8 + $0x728] ss:$16 sps:$4 sm:$0xff]  }
 0x15c   :  { %1983 = vmatpush1.bf16.msra.mxu0 %v6273_v3  ;;  %v6323_v3 = vld [vmem:[#allocation8 + $0x54c] ss:$16 sps:$4 sm:$0xff]  }
 0x15d   :  { %2024 = vmatpush1.bf16.msra.mxu1 %v6276_v5  ;;  %1984 = vmatprep.subr.bf16.mxu0 %v6281_v54  ;;  %v6326_v5 = vld [vmem:[#allocation8 + $0x74c] ss:$16 sps:$4 sm:$0xff]   ;;  %v6321_v54 = vld [vmem:[#allocation8 + $0x548] ss:$16 sps:$4 sm:$0xff]  }
 0x15e   :  { %2025 = vmatprep.subr.bf16.mxu1 %v6284_v60  ;;  %v6324_v60 = vld [vmem:[#allocation8 + $0x748] ss:$16 sps:$4 sm:$0xff]  }
 0x160   :  { %1985 = vmatpush1.bf16.msra.mxu0 %v6279_v7  ;;  %v6329_v7 = vld [vmem:[#allocation8 + $0x56c] ss:$16 sps:$4 sm:$0xff]  }
 0x161   :  { %2026 = vmatpush1.bf16.msra.mxu1 %v6282_v9  ;;  %1986 = vmatprep.subr.bf16.mxu0 %v6287_v11  ;;  %v6332_v9 = vld [vmem:[#allocation8 + $0x76c] ss:$16 sps:$4 sm:$0xff]   ;;  %v6327_v11 = vld [vmem:[#allocation8 + $0x568] ss:$16 sps:$4 sm:$0xff]  }
 0x162   :  { %2027 = vmatprep.subr.bf16.mxu1 %v6290_v13  ;;  %v6330_v13 = vld [vmem:[#allocation8 + $0x768] ss:$16 sps:$4 sm:$0xff]  }
 0x164   :  { %1987 = vmatpush1.bf16.msra.mxu0 %v6285_v44  ;;  %v6335_v44 = vld [vmem:[#allocation8 + $0x58c] ss:$16 sps:$4 sm:$0xff]  }
 0x165   :  { %2028 = vmatpush1.bf16.msra.mxu1 %v6288_v48  ;;  %1988 = vmatprep.subr.bf16.mxu0 %v6293_v15  ;;  %v6338_v48 = vld [vmem:[#allocation8 + $0x78c] ss:$16 sps:$4 sm:$0xff]   ;;  %v6333_v15 = vld [vmem:[#allocation8 + $0x588] ss:$16 sps:$4 sm:$0xff]  }
 0x166   :  { %2029 = vmatprep.subr.bf16.mxu1 %v6296_v17  ;;  %v6336_v17 = vld [vmem:[#allocation8 + $0x788] ss:$16 sps:$4 sm:$0xff]  }
 0x168   :  { %1989 = vmatpush1.bf16.msra.mxu0 %v6291_v19  ;;  %v6341_v19 = vld [vmem:[#allocation8 + $0x5ac] ss:$16 sps:$4 sm:$0xff]  }
 0x169   :  { %2030 = vmatpush1.bf16.msra.mxu1 %v6294_v21  ;;  %1990 = vmatprep.subr.bf16.mxu0 %v6299_v27  ;;  %v6344_v21 = vld [vmem:[#allocation8 + $0x7ac] ss:$16 sps:$4 sm:$0xff]   ;;  %v6339_v27 = vld [vmem:[#allocation8 + $0x5a8] ss:$16 sps:$4 sm:$0xff]  }
 0x16a   :  { %2031 = vmatprep.subr.bf16.mxu1 %v6302_v29  ;;  %v6342_v29 = vld [vmem:[#allocation8 + $0x7a8] ss:$16 sps:$4 sm:$0xff]  }
 0x16c   :  { %1991 = vmatpush1.bf16.msra.mxu0 %v6297_v31  ;;  %v6347_v31 = vld [vmem:[#allocation8 + $0x5cc] ss:$16 sps:$4 sm:$0xff]  }
 0x16d   :  { %2032 = vmatpush1.bf16.msra.mxu1 %v6300_v35  ;;  %1992 = vmatprep.subr.bf16.mxu0 %v6305_v37  ;;  %v6350_v35 = vld [vmem:[#allocation8 + $0x7cc] ss:$16 sps:$4 sm:$0xff]   ;;  %v6345_v37 = vld [vmem:[#allocation8 + $0x5c8] ss:$16 sps:$4 sm:$0xff]  }
 0x16e   :  { %2033 = vmatprep.subr.bf16.mxu1 %v6308_v59  ;;  %v6348_v59 = vld [vmem:[#allocation8 + $0x7c8] ss:$16 sps:$4 sm:$0xff]  }
 0x170   :  { %1993 = vmatpush1.bf16.msra.mxu0 %v6303_v40  ;;  %v6353_v40 = vld [vmem:[#allocation8 + $0x5ec] ss:$16 sps:$4 sm:$0xff]  }
 0x171   :  { %2034 = vmatpush1.bf16.msra.mxu1 %v6306_v42  ;;  %1994 = vmatprep.subr.bf16.mxu0 %v6311_v47  ;;  %v6356_v42 = vld [vmem:[#allocation8 + $0x7ec] ss:$16 sps:$4 sm:$0xff]   ;;  %v7389_v47 = vld [vmem:[#allocation6] sm:$0xff] }
 0x172   :  { %2035 = vmatprep.subr.bf16.mxu1 %v6314_v51  ;;  %v6351_v51 = vld [vmem:[#allocation8 + $0x5e8] ss:$16 sps:$4 sm:$0xff]  }
 0x174   :  { %1995 = vmatpush1.bf16.msra.mxu0 %v6309_v52  ;;  %v6354_v52 = vld [vmem:[#allocation8 + $0x7e8] ss:$16 sps:$4 sm:$0xff]  }
 0x175   :  { %2036 = vmatpush1.bf16.msra.mxu1 %v6312_v53  ;;  %1996 = vmatprep.subr.bf16.mxu0 %v6317_v56  ;;  %v6359_v53 = vld [vmem:[#allocation8 + $0x4] ss:$16 sps:$4 sm:$0xff]   ;;  %v7393_v56 = vrot.slane %v7389_v47, %v7254_v49 }
 0x176   :  { %2037 = vmatprep.subr.bf16.mxu1 %v6320_v58  ;;  %v6357_v58 = vld [vmem:[#allocation8] ss:$16 sps:$4 sm:$0xff]  }
 0x178   :  { %1997 = vmatpush1.bf16.msra.mxu0 %v6315_v63  ;;  %v6362_v63 = vld [vmem:[#allocation8 + $0x24] ss:$16 sps:$4 sm:$0xff]  }
 0x179   :  { %2038 = vmatpush1.bf16.msra.mxu1 %v6318_v1  ;;  %1998 = vmatprep.subr.bf16.mxu0 %v6323_v3  ;;  %v2347_v1 = vcombine.high %v7393_v56, %v7393_v56  ;;  %v6360_v3 = vld [vmem:[#allocation8 + $0x20] ss:$16 sps:$4 sm:$0xff]  }
 0x17a   :  { %2039 = vmatprep.subr.bf16.mxu1 %v6326_v5  ;;  %v6365_v5 = vld [vmem:[#allocation8 + $0x44] ss:$16 sps:$4 sm:$0xff]  }
 0x17c   :  { %1999 = vmatpush1.bf16.msra.mxu0 %v6321_v54  ;;  %v6372_v54 = vld [vmem:[#allocation8 + $0xa0] ss:$16 sps:$4 sm:$0xff]  }
 0x17d   :  { %2040 = vmatpush1.bf16.msra.mxu1 %v6324_v60  ;;  %2000 = vmatprep.subr.bf16.mxu0 %v6329_v7 }
 0x17e   :  { %2041 = vmatprep.subr.bf16.mxu1 %v6332_v9 }
 0x180   :  { %2001 = vmatpush1.bf16.msra.mxu0 %v6327_v11 }
 0x181   :  { %2042 = vmatpush1.bf16.msra.mxu1 %v6330_v13  ;;  %2002 = vmatprep.subr.bf16.mxu0 %v6335_v44 }
 0x182   :  { %2043 = vmatprep.subr.bf16.mxu1 %v6338_v48 }
 0x184   :  { %2003 = vmatpush1.bf16.msra.mxu0 %v6333_v15  ;;  %v6378_v15 = vld [vmem:[#allocation8 + $0xe0] ss:$16 sps:$4 sm:$0xff]  }
 0x185   :  { %2044 = vmatpush1.bf16.msra.mxu1 %v6336_v17  ;;  %2004 = vmatprep.subr.bf16.mxu0 %v6341_v19  ;;  %v6383_v17 = vld [vmem:[#allocation8 + $0x104] ss:$16 sps:$4 sm:$0xff]   ;;  %v6381_v19 = vld [vmem:[#allocation8 + $0x100] ss:$16 sps:$4 sm:$0xff]  }
 0x186   :  { %2045 = vmatprep.subr.bf16.mxu1 %v6344_v21  ;;  %v6384_v21 = vld [vmem:[#allocation8 + $0x120] ss:$16 sps:$4 sm:$0xff]  }
 0x188   :  { %2005 = vmatpush1.bf16.msra.mxu0 %v6339_v27  ;;  %v6864_v27 = vld [vmem:[#allocation8 + $0x1c8] ss:$16 sps:$4 sm:$0xff]  }
 0x189   :  { %2046 = vmatpush1.bf16.msra.mxu1 %v6342_v29  ;;  %2006 = vmatprep.subr.bf16.mxu0 %v6347_v31  ;;  %v6410_v29 = vld [vmem:[#allocation8 + $0x20c] ss:$16 sps:$4 sm:$0xff]  }
 0x18a   :  { %2047 = vmatprep.subr.bf16.mxu1 %v6350_v35  ;;  %v6408_v35 = vld [vmem:[#allocation8 + $0x208] ss:$16 sps:$4 sm:$0xff]  }
 0x18c   :  { %2007 = vmatpush1.bf16.msra.mxu0 %v6345_v37  ;;  %v6413_v37 = vld [vmem:[#allocation8 + $0x224] ss:$16 sps:$4 sm:$0xff]  }
 0x18d   :  { %2048 = vmatpush1.bf16.msra.mxu1 %v6348_v59  ;;  %2008 = vmatprep.subr.bf16.mxu0 %v6353_v40  ;;  %v6416_v59 = vld [vmem:[#allocation8 + $0x22c] ss:$16 sps:$4 sm:$0xff]  }
 0x18e   :  { %2049 = vmatprep.subr.bf16.mxu1 %v6356_v42  ;;  %v6414_v42 = vld [vmem:[#allocation8 + $0x228] ss:$16 sps:$4 sm:$0xff]  }
 0x190   :  { %2009 = vmatpush1.bf16.msra.mxu0 %v6351_v51  ;;  %v6422_v51 = vld [vmem:[#allocation8 + $0x24c] ss:$16 sps:$4 sm:$0xff]  }
 0x191   :  { %2050 = vmatpush1.bf16.msra.mxu1 %v6354_v52  ;;  %3654 = vmatprep.subr.bf16.mxu0 %v6359_v53  ;;  %v6417_v52 = vld [vmem:[#allocation8 + $0x240] ss:$16 sps:$4 sm:$0xff]   ;;  %v6420_v53 = vld [vmem:[#allocation8 + $0x248] ss:$16 sps:$4 sm:$0xff]  }
 0x192   :  { %3818 = vmatprep.subr.bf16.mxu1 %v7290_v24  ;;  %v6363_v24 = vld [vmem:[#allocation8 + $0x40] ss:$16 sps:$4 sm:$0xff]  }
 0x193   :  { %2011 = vmatmul.mubr.bf16.vlgmr.msra.gmra.mrb[12].mxu0 %v7275_v39  ;;  %v6368_v39 = vld [vmem:[#allocation8 + $0x64] ss:$16 sps:$4 sm:$0xff]  }
 0x194   :  { %2052 = vmatmul.mubr.bf16.vlgmr.msra.gmra.mrb[12].mxu1 %v7282_v45  ;;  %3655 = vmatpush1.bf16.msra.mxu0 %v6357_v58  ;;  %v6366_v45 = vld [vmem:[#allocation8 + $0x60] ss:$16 sps:$4 sm:$0xff]   ;;  %v6425_v58 = vld [vmem:[#allocation8 + $0x264] ss:$16 sps:$4 sm:$0xff]  }
 0x195   :  { %3819 = vmatpush1.bf16.msra.mxu1 %v7292_v26  ;;  %3656 = vmatprep.subr.bf16.mxu0 %v6362_v63  ;;  %v6371_v26 = vld [vmem:[#allocation8 + $0x84] ss:$16 sps:$4 sm:$0xff]   ;;  %v6428_v63 = vld [vmem:[#allocation8 + $0x26c] ss:$16 sps:$4 sm:$0xff]  }
 0x196   :  { %3820 = vmatprep.subr.bf16.mxu1 %v7295_v28  ;;  %3686 = vmatprep.mubr.bf16.mxu0 %v2347_v1  ;;  %v6369_v28 = vld [vmem:[#allocation8 + $0x80] ss:$16 sps:$4 sm:$0xff]  }
 0x197   :  { %3850 = vmatprep.mubr.bf16.mxu1 %v2347_v1  ;;  %v6426_v1 = vld [vmem:[#allocation8 + $0x268] ss:$16 sps:$4 sm:$0xff]  }
 0x198   :  { %3657 = vmatpush1.bf16.msra.mxu0 %v6360_v3  ;;  %v6431_v3 = vld [vmem:[#allocation8 + $0x284] ss:$16 sps:$4 sm:$0xff]  }
 0x199   :  { %3821 = vmatpush1.bf16.msra.mxu1 %v7300_v30  ;;  %3658 = vmatprep.subr.bf16.mxu0 %v6365_v5  ;;  %v6374_v30 = vld [vmem:[#allocation8 + $0xa4] ss:$16 sps:$4 sm:$0xff]   ;;  %v6434_v5 = vld [vmem:[#allocation8 + $0x28c] ss:$16 sps:$4 sm:$0xff]  }
 0x19a   :  { %3822 = vmatprep.subr.bf16.mxu1 %v7303_v32  ;;  %v6377_v32 = vld [vmem:[#allocation8 + $0xc4] ss:$16 sps:$4 sm:$0xff]  }
 0x19c   :  { %3659 = vmatpush1.bf16.msra.mxu0 %v6363_v24  ;;  %v6429_v24 = vld [vmem:[#allocation8 + $0x280] ss:$16 sps:$4 sm:$0xff]  }
 0x19d   :  { %3823 = vmatpush1.bf16.msra.mxu1 %v7308_v34  ;;  %3660 = vmatprep.subr.bf16.mxu0 %v6368_v39  ;;  %v6432_v39 = vld [vmem:[#allocation8 + $0x288] ss:$16 sps:$4 sm:$0xff]  }
 0x19e   :  { %3824 = vmatprep.subr.bf16.mxu1 %v7311_v36  ;;  %v6375_v36 = vld [vmem:[#allocation8 + $0xc0] ss:$16 sps:$4 sm:$0xff]  }
 0x1a0   :  { %3661 = vmatpush1.bf16.msra.mxu0 %v6366_v45  ;;  %v6437_v45 = vld [vmem:[#allocation8 + $0x2a4] ss:$16 sps:$4 sm:$0xff]  }
 0x1a1   :  { %3825 = vmatpush1.bf16.msra.mxu1 %v7314_v38  ;;  %3662 = vmatprep.subr.bf16.mxu0 %v6371_v26  ;;  %v6440_v26 = vld [vmem:[#allocation8 + $0x2ac] ss:$16 sps:$4 sm:$0xff]  }
 0x1a2   :  { %3826 = vmatprep.subr.bf16.mxu1 %v7317_v62 }
 0x1a4   :  { %3663 = vmatpush1.bf16.msra.mxu0 %v6369_v28  ;;  %v6435_v28 = vld [vmem:[#allocation8 + $0x2a0] ss:$16 sps:$4 sm:$0xff]  }
 0x1a5   :  { %3827 = vmatpush1.bf16.msra.mxu1 %v7320_v41  ;;  %3664 = vmatprep.subr.bf16.mxu0 %v6374_v30  ;;  %v6863_v41 = vld [vmem:[#allocation8 + $0xcc] ss:$16 sps:$4 sm:$0xff]   ;;  %v6438_v30 = vld [vmem:[#allocation8 + $0x2a8] ss:$16 sps:$4 sm:$0xff]  }
 0x1a6   :  { %3828 = vmatprep.subr.bf16.mxu1 %v7323_v46  ;;  %v1766_v34 = vpop.f32.mrb[0].mxu0  ;;  %v6380_v46 = vld [vmem:[#allocation8 + $0xe4] ss:$16 sps:$4 sm:$0xff]  }
 0x1a7   :  { %v1807_v60 = vpop.f32.mrb[0].mxu1  ;;  %v1768_v9 = vpop.f32.mrb[1].mxu0 }
 0x1a8   :  { %v7410_v7 = vadd.f32 %v1807_v60, %v1766_v34  ;;  %v1809_v38 = vpop.f32.mrb[1].mxu1  ;;  %v1770_v13 = vpop.f32.mrb[2].mxu0  ;;  %3665 = vmatpush1.bf16.msra.mxu0 %v6372_v54  ;;  %v6443_v54 = vld [vmem:[#allocation8 + $0x2c4] ss:$16 sps:$4 sm:$0xff]   ;;  %v146_v60 = vld [vmem:[#allocation2] sm:$0xf] }
 0x1a9   :  { %v7412_v11 = vadd.f32 %v1809_v38, %v1768_v9  ;;  %3829 = vmatpush1.bf16.msra.mxu1 %v7326_v50  ;;  %v1811_v62 = vpop.f32.mrb[2].mxu1  ;;  %v1771_v44 = vpop.f32.mrb[3].mxu0  ;;  %3666 = vmatprep.subr.bf16.mxu0 %v6377_v32  ;;  %v6386_v50 = vld [vmem:[#allocation8 + $0x124] ss:$16 sps:$4 sm:$0xff]   ;;  %v6446_v32 = vld [vmem:[#allocation8 + $0x2cc] ss:$16 sps:$4 sm:$0xff]  }
 0x1aa   :  { %3830 = vmatprep.subr.bf16.mxu1 %v6863_v41  ;;  %v1812_v48 = vpop.f32.mrb[3].mxu1  ;;  %v6441_v9 = vld [vmem:[#allocation8 + $0x2c0] ss:$16 sps:$4 sm:$0xff]   ;;  %v6444_v38 = vld [vmem:[#allocation8 + $0x2c8] ss:$16 sps:$4 sm:$0xff]  }
 0x1ab   :  { %v147_v48 = vld [vmem:[#allocation2 + $0x8] sm:$0xf] }
 0x1ac   :  { %3667 = vmatpush1.bf16.msra.mxu0 %v6375_v36 }
 0x1ad   :  { %3831 = vmatpush1.bf16.msra.mxu1 %v7330_v55  ;;  %3668 = vmatprep.subr.bf16.mxu0 %v6380_v46  ;;  %v6389_v55 = vld [vmem:[#allocation8 + $0x144] ss:$16 sps:$4 sm:$0xff]  }
 0x1ae   :  { %3832 = vmatprep.subr.bf16.mxu1 %v7332_v57  ;;  %v6387_v57 = vld [vmem:[#allocation8 + $0x140] ss:$16 sps:$4 sm:$0xff]  }
 0x1b0   :  { %3669 = vmatpush1.bf16.msra.mxu0 %v6378_v15 }
 0x1b1   :  { %3833 = vmatpush1.bf16.msra.mxu1 %v7335_v61  ;;  %3670 = vmatprep.subr.bf16.mxu0 %v6383_v17  ;;  %v6392_v61 = vld [vmem:[#allocation8 + $0x164] ss:$16 sps:$4 sm:$0xff]  }
 0x1b2   :  { %3834 = vmatprep.subr.bf16.mxu1 %v7338_v0  ;;  %v6390_v0 = vld [vmem:[#allocation8 + $0x160] ss:$16 sps:$4 sm:$0xff]  }
 0x1b4   :  { %3671 = vmatpush1.bf16.msra.mxu0 %v6381_v19 }
 0x1b5   :  { %3835 = vmatpush1.bf16.msra.mxu1 %v7341_v2  ;;  %3672 = vmatprep.subr.bf16.mxu0 %v6386_v50  ;;  %v6395_v2 = vld [vmem:[#allocation8 + $0x184] ss:$16 sps:$4 sm:$0xff]  }
 0x1b6   :  { %3836 = vmatprep.subr.bf16.mxu1 %v7344_v4  ;;  %v6393_v4 = vld [vmem:[#allocation8 + $0x180] ss:$16 sps:$4 sm:$0xff]   ;;  %v6449_v50 = vld [vmem:[#allocation8 + $0x2e4] ss:$16 sps:$4 sm:$0xff]  }
 0x1b8   :  { %3673 = vmatpush1.bf16.msra.mxu0 %v6384_v21  ;;  %v6452_v21 = vld [vmem:[#allocation8 + $0x2ec] ss:$16 sps:$4 sm:$0xff]  }
 0x1b9   :  { %3837 = vmatpush1.bf16.msra.mxu1 %v7347_v6  ;;  %3674 = vmatprep.subr.bf16.mxu0 %v6389_v55  ;;  %v6398_v6 = vld [vmem:[#allocation8 + $0x1a4] ss:$16 sps:$4 sm:$0xff]  }
 0x1ba   :  { %3838 = vmatprep.subr.bf16.mxu1 %v7350_v8  ;;  %v6396_v8 = vld [vmem:[#allocation8 + $0x1a0] ss:$16 sps:$4 sm:$0xff]  }
 0x1bc   :  { %3675 = vmatpush1.bf16.msra.mxu0 %v6387_v57 }
 0x1bd   :  { %3839 = vmatpush1.bf16.msra.mxu1 %v7353_v10  ;;  %3676 = vmatprep.subr.bf16.mxu0 %v6392_v61  ;;  %v6401_v10 = vld [vmem:[#allocation8 + $0x1c4] ss:$16 sps:$4 sm:$0xff]   ;;  %v6447_v61 = vld [vmem:[#allocation8 + $0x2e0] ss:$16 sps:$4 sm:$0xff]  }
 0x1be   :  { %3840 = vmatprep.subr.bf16.mxu1 %v7356_v12  ;;  %v6399_v12 = vld [vmem:[#allocation8 + $0x1c0] ss:$16 sps:$4 sm:$0xff]  }
 0x1c0   :  { %3677 = vmatpush1.bf16.msra.mxu0 %v6390_v0 }
 0x1c1   :  { %3841 = vmatpush1.bf16.msra.mxu1 %v7359_v14  ;;  %3678 = vmatprep.subr.bf16.mxu0 %v6395_v2  ;;  %v6404_v14 = vld [vmem:[#allocation8 + $0x1e4] ss:$16 sps:$4 sm:$0xff]  }
 0x1c2   :  { %3842 = vmatprep.subr.bf16.mxu1 %v7362_v16  ;;  %v2332_v16 = vcombine.high %v7389_v47, %v7389_v47  ;;  %v6419_v47 = vld [vmem:[#allocation8 + $0x244] ss:$16 sps:$4 sm:$0xff]  }
 0x1c4   :  { %3679 = vmatpush1.bf16.msra.mxu0 %v6393_v4  ;;  %v7435_v31 = vrot.slane %v2332_v16, %v7254_v49  ;;  %v6458_v4 = vld [vmem:[#allocation8 + $0x30c] ss:$16 sps:$4 sm:$0xff]   ;;  %v6462_v16 = vld [vmem:[#allocation8 + $0x328] ss:$16 sps:$4 sm:$0xff]  }
 0x1c5   :  { %3843 = vmatpush1.bf16.msra.mxu1 %v7365_v18  ;;  %3680 = vmatprep.subr.bf16.mxu0 %v6398_v6  ;;  %v6402_v18 = vld [vmem:[#allocation8 + $0x1e0] ss:$16 sps:$4 sm:$0xff]  }
 0x1c6   :  { %3844 = vmatprep.subr.bf16.mxu1 %v7368_v20  ;;  %v6407_v20 = vld [vmem:[#allocation8 + $0x204] ss:$16 sps:$4 sm:$0xff]   ;;  %v2348_v40 = vcombine.high %v7435_v31, %v7435_v31  ;;  %v6453_v6 = vld [vmem:[#allocation8 + $0x300] ss:$16 sps:$4 sm:$0xff]  }
 0x1c8   :  { %3681 = vmatpush1.bf16.msra.mxu0 %v6396_v8  ;;  %v6456_v8 = vld [vmem:[#allocation8 + $0x308] ss:$16 sps:$4 sm:$0xff]  }
 0x1c9   :  { %3845 = vmatpush1.bf16.msra.mxu1 %v7371_v22  ;;  %3682 = vmatprep.subr.bf16.mxu0 %v6401_v10  ;;  %v6865_v22 = vld [vmem:[#allocation8 + $0x1e8] ss:$16 sps:$4 sm:$0xff]   ;;  %v6461_v10 = vld [vmem:[#allocation8 + $0x324] ss:$16 sps:$4 sm:$0xff]  }
 0x1ca   :  { %3846 = vmatprep.subr.bf16.mxu1 %v7374_v25  ;;  %v6405_v25 = vld [vmem:[#allocation8 + $0x200] ss:$16 sps:$4 sm:$0xff]  }
 0x1cc   :  { %3683 = vmatpush1.bf16.msra.mxu0 %v6399_v12  ;;  %v6464_v12 = vld [vmem:[#allocation8 + $0x32c] ss:$16 sps:$4 sm:$0xff]  }
 0x1cd   :  { %3847 = vmatpush1.bf16.msra.mxu1 %v6864_v27  ;;  %3684 = vmatprep.subr.bf16.mxu0 %v6404_v14  ;;  %v6459_v14 = vld [vmem:[#allocation8 + $0x320] ss:$16 sps:$4 sm:$0xff]   ;;  %v6467_v27 = vld [vmem:[#allocation8 + $0x344] ss:$16 sps:$4 sm:$0xff]  }
 0x1ce   :  { %3848 = vmatprep.subr.bf16.mxu1 %v7378_v33  ;;  %v6411_v33 = vld [vmem:[#allocation8 + $0x220] ss:$16 sps:$4 sm:$0xff]  }
 0x1d0   :  { %3685 = vmatpush1.bf16.msra.mxu0 %v6402_v18  ;;  %v6470_v18 = vld [vmem:[#allocation8 + $0x34c] ss:$16 sps:$4 sm:$0xff]  }
 0x1d1   :  { %3849 = vmatpush1.bf16.msra.mxu1 %v6865_v22  ;;  %3695 = vmatprep.subr.bf16.mxu0 %v6407_v20  ;;  %v6465_v20 = vld [vmem:[#allocation8 + $0x340] ss:$16 sps:$4 sm:$0xff]   ;;  %v6473_v22 = vld [vmem:[#allocation8 + $0x364] ss:$16 sps:$4 sm:$0xff]  }
 0x1d2   :  { %3859 = vmatprep.subr.bf16.mxu1 %v6410_v29  ;;  %v6468_v29 = vld [vmem:[#allocation8 + $0x348] ss:$16 sps:$4 sm:$0xff]  }
 0x1d3   :  { %3687 = vmatmul.mubr.bf16.vlgmr.msra.gmra.mrb[16].mxu0 %v7393_v56 }
 0x1d4   :  { %3851 = vmatmul.mubr.bf16.vlgmr.msra.gmra.mrb[16].mxu1 %v7393_v56  ;;  %3696 = vmatpush1.bf16.msra.mxu0 %v6405_v25  ;;  %v6423_v56 = vld [vmem:[#allocation8 + $0x260] ss:$16 sps:$4 sm:$0xff]   ;;  %v6476_v25 = vld [vmem:[#allocation8 + $0x36c] ss:$16 sps:$4 sm:$0xff]  }
 0x1d5   :  { %3860 = vmatpush1.bf16.msra.mxu1 %v6408_v35  ;;  %3697 = vmatprep.subr.bf16.mxu0 %v6413_v37  ;;  %v6471_v35 = vld [vmem:[#allocation8 + $0x360] ss:$16 sps:$4 sm:$0xff]   ;;  %v6474_v37 = vld [vmem:[#allocation8 + $0x368] ss:$16 sps:$4 sm:$0xff]  }
 0x1d6   :  { %3861 = vmatprep.subr.bf16.mxu1 %v6416_v59  ;;  %3727 = vmatprep.mubr.bf16.mxu0 %v2348_v40  ;;  %v6479_v59 = vld [vmem:[#allocation8 + $0x384] ss:$16 sps:$4 sm:$0xff]  }
 0x1d7   :  { %3891 = vmatprep.mubr.bf16.mxu1 %v2348_v40  ;;  %v6482_v40 = vld [vmem:[#allocation8 + $0x38c] ss:$16 sps:$4 sm:$0xff]  }
 0x1d8   :  { %3698 = vmatpush1.bf16.msra.mxu0 %v6411_v33  ;;  %v6477_v33 = vld [vmem:[#allocation8 + $0x380] ss:$16 sps:$4 sm:$0xff]  }
 0x1d9   :  { %3862 = vmatpush1.bf16.msra.mxu1 %v6414_v42  ;;  %3699 = vmatprep.subr.bf16.mxu0 %v6419_v47  ;;  %v6480_v42 = vld [vmem:[#allocation8 + $0x388] ss:$16 sps:$4 sm:$0xff]   ;;  %v6485_v47 = vld [vmem:[#allocation8 + $0x3a4] ss:$16 sps:$4 sm:$0xff]  }
 0x1da   :  { %3863 = vmatprep.subr.bf16.mxu1 %v6422_v51  ;;  %v6488_v51 = vld [vmem:[#allocation8 + $0x3ac] ss:$16 sps:$4 sm:$0xff]  }
 0x1dc   :  { %3700 = vmatpush1.bf16.msra.mxu0 %v6417_v52  ;;  %v6483_v52 = vld [vmem:[#allocation8 + $0x3a0] ss:$16 sps:$4 sm:$0xff]  }
 0x1dd   :  { %3864 = vmatpush1.bf16.msra.mxu1 %v6420_v53  ;;  %3701 = vmatprep.subr.bf16.mxu0 %v6425_v58  ;;  %v6486_v53 = vld [vmem:[#allocation8 + $0x3a8] ss:$16 sps:$4 sm:$0xff]   ;;  %v6491_v58 = vld [vmem:[#allocation8 + $0x3c4] ss:$16 sps:$4 sm:$0xff]  }
 0x1de   :  { %3865 = vmatprep.subr.bf16.mxu1 %v6428_v63  ;;  %v6494_v63 = vld [vmem:[#allocation8 + $0x3cc] ss:$16 sps:$4 sm:$0xff]  }
 0x1e0   :  { %3702 = vmatpush1.bf16.msra.mxu0 %v6423_v56  ;;  %v6489_v56 = vld [vmem:[#allocation8 + $0x3c0] ss:$16 sps:$4 sm:$0xff]  }
 0x1e1   :  { %3866 = vmatpush1.bf16.msra.mxu1 %v6426_v1  ;;  %3703 = vmatprep.subr.bf16.mxu0 %v6431_v3  ;;  %v6492_v1 = vld [vmem:[#allocation8 + $0x3c8] ss:$16 sps:$4 sm:$0xff]   ;;  %v6497_v3 = vld [vmem:[#allocation8 + $0x3e4] ss:$16 sps:$4 sm:$0xff]  }
 0x1e2   :  { %3867 = vmatprep.subr.bf16.mxu1 %v6434_v5  ;;  %v6500_v5 = vld [vmem:[#allocation8 + $0x3ec] ss:$16 sps:$4 sm:$0xff]  }
 0x1e4   :  { %3704 = vmatpush1.bf16.msra.mxu0 %v6429_v24  ;;  %v7443_v24 = vld [vmem:[#allocation6 + $0x8] sm:$0xff] }
 0x1e5   :  { %3868 = vmatpush1.bf16.msra.mxu1 %v6432_v39  ;;  %3705 = vmatprep.subr.bf16.mxu0 %v6437_v45  ;;  %v6495_v39 = vld [vmem:[#allocation8 + $0x3e0] ss:$16 sps:$4 sm:$0xff]   ;;  %v6498_v45 = vld [vmem:[#allocation8 + $0x3e8] ss:$16 sps:$4 sm:$0xff]  }
 0x1e6   :  { %3869 = vmatprep.subr.bf16.mxu1 %v6440_v26  ;;  %v1848_v34 = vpop.f32.mrb[4].mxu0  ;;  %v6504_v26 = vld [vmem:[#allocation8 + $0x404] ss:$16 sps:$4 sm:$0xff]  }
 0x1e7   :  { %v1889_v36 = vpop.f32.mrb[4].mxu1  ;;  %v1849_v13 = vadd.f32 %v1848_v34, %v7410_v7  ;;  %v1850_v62 = vpop.f32.mrb[5].mxu0  ;;  %v6450_v7 = vld [vmem:[#allocation8 + $0x2e8] ss:$16 sps:$4 sm:$0xff]   ;;  %v6510_v34 = vld [vmem:[#allocation8 + $0x424] ss:$16 sps:$4 sm:$0xff]  }
 0x1e8   :  { %v1891_v44 = vpop.f32.mrb[5].mxu1  ;;  %v1851_v41 = vadd.f32 %v1850_v62, %v7412_v11  ;;  %v1852_v46 = vpop.f32.mrb[6].mxu0  ;;  %3706 = vmatpush1.bf16.msra.mxu0 %v6435_v28  ;;  %v6455_v11 = vld [vmem:[#allocation8 + $0x304] ss:$16 sps:$4 sm:$0xff]   ;;  %v6507_v28 = vld [vmem:[#allocation8 + $0x40c] ss:$16 sps:$4 sm:$0xff]  }
 0x1e9   :  { %3870 = vmatpush1.bf16.msra.mxu1 %v6438_v30  ;;  %v1893_v15 = vpop.f32.mrb[6].mxu1  ;;  %v1890_v17 = vadd.f32 %v1889_v36, %v1849_v13  ;;  %v1853_v19 = vpop.f32.mrb[7].mxu0  ;;  %3707 = vmatprep.subr.bf16.mxu0 %v6443_v54  ;;  %v7447_v30 = vrot.slane %v7443_v24, %v7254_v49  ;;  %v6502_v54 = vld [vmem:[#allocation8 + $0x400] ss:$16 sps:$4 sm:$0xff]   ;;  %v6516_v13 = vld [vmem:[#allocation8 + $0x444] ss:$16 sps:$4 sm:$0xff]  }
 0x1ea   :  { %3871 = vmatprep.subr.bf16.mxu1 %v6446_v32  ;;  %v1894_v55 = vpop.f32.mrb[7].mxu1  ;;  %v1892_v57 = vadd.f32 %v1891_v44, %v1851_v41  ;;  %v6505_v32 = vld [vmem:[#allocation8 + $0x408] ss:$16 sps:$4 sm:$0xff]   ;;  %v6519_v62 = vld [vmem:[#allocation8 + $0x44c] ss:$16 sps:$4 sm:$0xff]  }
 0x1eb   :  { %v2060_v0 = vadd.f32 %v1890_v17, %v146_v60  ;;  %v6513_v60 = vld [vmem:[#allocation8 + $0x42c] ss:$16 sps:$4 sm:$0xff]   ;;  %v2364_v36 = vcombine.high %v7447_v30, %v7447_v30  ;;  %v6514_v44 = vld [vmem:[#allocation8 + $0x440] ss:$16 sps:$4 sm:$0xff]   ;;  %v6517_v41 = vld [vmem:[#allocation8 + $0x448] ss:$16 sps:$4 sm:$0xff]  }
 0x1ec   :  { %v2061_v2 = vadd.f32 %v1892_v57, %v147_v48  ;;  %3708 = vmatpush1.bf16.msra.mxu0 %v6441_v9  ;;  %v6508_v9 = vld [vmem:[#allocation8 + $0x420] ss:$16 sps:$4 sm:$0xff]   ;;  %v6522_v46 = vld [vmem:[#allocation8 + $0x464] ss:$16 sps:$4 sm:$0xff]   ;;  %v6525_v48 = vld [vmem:[#allocation8 + $0x46c] ss:$16 sps:$4 sm:$0xff]  }
 0x1ed   :  { %3872 = vmatpush1.bf16.msra.mxu1 %v6444_v38  ;;  %2064 = vst [vmem:[#allocation2] sm:$0xf] %v2060_v0  ;;  %3709 = vmatprep.subr.bf16.mxu0 %v6449_v50  ;;  %v6511_v38 = vld [vmem:[#allocation8 + $0x428] ss:$16 sps:$4 sm:$0xff]   ;;  %v6528_v17 = vld [vmem:[#allocation8 + $0x484] ss:$16 sps:$4 sm:$0xff]  }
 0x1ee   :  { %3873 = vmatprep.subr.bf16.mxu1 %v6452_v21  ;;  %2065 = vst [vmem:[#allocation2 + $0x8] sm:$0xf] %v2061_v2  ;;  %v6523_v15 = vld [vmem:[#allocation8 + $0x468] ss:$16 sps:$4 sm:$0xff]   ;;  %v6531_v19 = vld [vmem:[#allocation8 + $0x48c] ss:$16 sps:$4 sm:$0xff]  }
 0x1ef   :  { %v6526_v50 = vld [vmem:[#allocation8 + $0x480] ss:$16 sps:$4 sm:$0xff]   ;;  %v6529_v21 = vld [vmem:[#allocation8 + $0x488] ss:$16 sps:$4 sm:$0xff]   ;;  %v6534_v55 = vld [vmem:[#allocation8 + $0x4a4] ss:$16 sps:$4 sm:$0xff]  }
 0x1f0   :  { %3710 = vmatpush1.bf16.msra.mxu0 %v6447_v61  ;;  %v6537_v57 = vld [vmem:[#allocation8 + $0x4ac] ss:$16 sps:$4 sm:$0xff]   ;;  %v6532_v61 = vld [vmem:[#allocation8 + $0x4a0] ss:$16 sps:$4 sm:$0xff]   ;;  %v6535_v0 = vld [vmem:[#allocation8 + $0x4a8] ss:$16 sps:$4 sm:$0xff]  }
 0x1f1   :  { %3874 = vmatpush1.bf16.msra.mxu1 %v6450_v7  ;;  %3711 = vmatprep.subr.bf16.mxu0 %v6455_v11  ;;  %v6540_v7 = vld [vmem:[#allocation8 + $0x4c4] ss:$16 sps:$4 sm:$0xff]   ;;  %v6543_v2 = vld [vmem:[#allocation8 + $0x4cc] ss:$16 sps:$4 sm:$0xff]  }
 0x1f2   :  { %3875 = vmatprep.subr.bf16.mxu1 %v6458_v4 }
 0x1f4   :  { %3712 = vmatpush1.bf16.msra.mxu0 %v6453_v6 }
 0x1f5   :  { %3876 = vmatpush1.bf16.msra.mxu1 %v6456_v8  ;;  %3713 = vmatprep.subr.bf16.mxu0 %v6461_v10 }
 0x1f6   :  { %3877 = vmatprep.subr.bf16.mxu1 %v6464_v12 }
 0x1f8   :  { %3714 = vmatpush1.bf16.msra.mxu0 %v6459_v14 }
 0x1f9   :  { %3878 = vmatpush1.bf16.msra.mxu1 %v6462_v16  ;;  %3715 = vmatprep.subr.bf16.mxu0 %v6467_v27  ;;  %v6538_v16 = vld [vmem:[#allocation8 + $0x4c0] ss:$16 sps:$4 sm:$0xff]   ;;  %v6541_v27 = vld [vmem:[#allocation8 + $0x4c8] ss:$16 sps:$4 sm:$0xff]  }
 0x1fa   :  { %3879 = vmatprep.subr.bf16.mxu1 %v6470_v18 }
 0x1fc   :  { %3716 = vmatpush1.bf16.msra.mxu0 %v6465_v20 }
 0x1fd   :  { %3880 = vmatpush1.bf16.msra.mxu1 %v6468_v29  ;;  %3717 = vmatprep.subr.bf16.mxu0 %v6473_v22  ;;  %v6546_v29 = vld [vmem:[#allocation8 + $0x4e4] ss:$16 sps:$4 sm:$0xff]   ;;  %v6549_v22 = vld [vmem:[#allocation8 + $0x4ec] ss:$16 sps:$4 sm:$0xff]  }
 0x1fe   :  { %3881 = vmatprep.subr.bf16.mxu1 %v6476_v25 }
 0x200   :  { %3718 = vmatpush1.bf16.msra.mxu0 %v6471_v35  ;;  %v6544_v35 = vld [vmem:[#allocation8 + $0x4e0] ss:$16 sps:$4 sm:$0xff]  }
 0x201   :  { %3882 = vmatpush1.bf16.msra.mxu1 %v6474_v37  ;;  %3719 = vmatprep.subr.bf16.mxu0 %v6479_v59  ;;  %v6547_v37 = vld [vmem:[#allocation8 + $0x4e8] ss:$16 sps:$4 sm:$0xff]   ;;  %v6552_v59 = vld [vmem:[#allocation8 + $0x504] ss:$16 sps:$4 sm:$0xff]  }
 0x202   :  { %3883 = vmatprep.subr.bf16.mxu1 %v6482_v40  ;;  %v6555_v40 = vld [vmem:[#allocation8 + $0x50c] ss:$16 sps:$4 sm:$0xff]  }
 0x204   :  { %3720 = vmatpush1.bf16.msra.mxu0 %v6477_v33  ;;  %v6550_v33 = vld [vmem:[#allocation8 + $0x500] ss:$16 sps:$4 sm:$0xff]  }
 0x205   :  { %3884 = vmatpush1.bf16.msra.mxu1 %v6480_v42  ;;  %3721 = vmatprep.subr.bf16.mxu0 %v6485_v47  ;;  %v6553_v42 = vld [vmem:[#allocation8 + $0x508] ss:$16 sps:$4 sm:$0xff]   ;;  %v6558_v47 = vld [vmem:[#allocation8 + $0x524] ss:$16 sps:$4 sm:$0xff]  }
 0x206   :  { %3885 = vmatprep.subr.bf16.mxu1 %v6488_v51  ;;  %v6561_v51 = vld [vmem:[#allocation8 + $0x52c] ss:$16 sps:$4 sm:$0xff]  }
 0x208   :  { %3722 = vmatpush1.bf16.msra.mxu0 %v6483_v52  ;;  %v6556_v52 = vld [vmem:[#allocation8 + $0x520] ss:$16 sps:$4 sm:$0xff]  }
 0x209   :  { %3886 = vmatpush1.bf16.msra.mxu1 %v6486_v53  ;;  %3723 = vmatprep.subr.bf16.mxu0 %v6491_v58  ;;  %v6559_v53 = vld [vmem:[#allocation8 + $0x528] ss:$16 sps:$4 sm:$0xff]   ;;  %v6564_v58 = vld [vmem:[#allocation8 + $0x544] ss:$16 sps:$4 sm:$0xff]  }
 0x20a   :  { %3887 = vmatprep.subr.bf16.mxu1 %v6494_v63  ;;  %v6567_v63 = vld [vmem:[#allocation8 + $0x54c] ss:$16 sps:$4 sm:$0xff]  }
 0x20c   :  { %3724 = vmatpush1.bf16.msra.mxu0 %v6489_v56  ;;  %v6562_v56 = vld [vmem:[#allocation8 + $0x540] ss:$16 sps:$4 sm:$0xff]  }
 0x20d   :  { %3888 = vmatpush1.bf16.msra.mxu1 %v6492_v1  ;;  %3725 = vmatprep.subr.bf16.mxu0 %v6497_v3  ;;  %v6565_v1 = vld [vmem:[#allocation8 + $0x548] ss:$16 sps:$4 sm:$0xff]   ;;  %v6570_v3 = vld [vmem:[#allocation8 + $0x564] ss:$16 sps:$4 sm:$0xff]  }
 0x20e   :  { %3889 = vmatprep.subr.bf16.mxu1 %v6500_v5  ;;  %v6573_v5 = vld [vmem:[#allocation8 + $0x56c] ss:$16 sps:$4 sm:$0xff]  }
 0x210   :  { %3726 = vmatpush1.bf16.msra.mxu0 %v6495_v39  ;;  %v6568_v39 = vld [vmem:[#allocation8 + $0x560] ss:$16 sps:$4 sm:$0xff]  }
 0x211   :  { %3890 = vmatpush1.bf16.msra.mxu1 %v6498_v45  ;;  %3736 = vmatprep.subr.bf16.mxu0 %v6504_v26  ;;  %v6571_v45 = vld [vmem:[#allocation8 + $0x568] ss:$16 sps:$4 sm:$0xff]   ;;  %v6576_v26 = vld [vmem:[#allocation8 + $0x584] ss:$16 sps:$4 sm:$0xff]  }
 0x212   :  { %3900 = vmatprep.subr.bf16.mxu1 %v6507_v28  ;;  %v6579_v28 = vld [vmem:[#allocation8 + $0x58c] ss:$16 sps:$4 sm:$0xff]  }
 0x213   :  { %3728 = vmatmul.mubr.bf16.vlgmr.msra.gmra.mrb[16].mxu0 %v7435_v31 }
 0x214   :  { %3892 = vmatmul.mubr.bf16.vlgmr.msra.gmra.mrb[16].mxu1 %v7435_v31  ;;  %3737 = vmatpush1.bf16.msra.mxu0 %v6502_v54  ;;  %v6520_v31 = vld [vmem:[#allocation8 + $0x460] ss:$16 sps:$4 sm:$0xff]  }
 0x215   :  { %3901 = vmatpush1.bf16.msra.mxu1 %v6505_v32  ;;  %3738 = vmatprep.subr.bf16.mxu0 %v6510_v34  ;;  %v6574_v54 = vld [vmem:[#allocation8 + $0x580] ss:$16 sps:$4 sm:$0xff]   ;;  %v6577_v32 = vld [vmem:[#allocation8 + $0x588] ss:$16 sps:$4 sm:$0xff]   ;;  %v6582_v34 = vld [vmem:[#allocation8 + $0x5a4] ss:$16 sps:$4 sm:$0xff]  }
 0x216   :  { %3902 = vmatprep.subr.bf16.mxu1 %v6513_v60  ;;  %3768 = vmatprep.mubr.bf16.mxu0 %v2364_v36  ;;  %v6585_v60 = vld [vmem:[#allocation8 + $0x5ac] ss:$16 sps:$4 sm:$0xff]  }
 0x217   :  { %3932 = vmatprep.mubr.bf16.mxu1 %v2364_v36  ;;  %v6580_v36 = vld [vmem:[#allocation8 + $0x5a0] ss:$16 sps:$4 sm:$0xff]  }
 0x218   :  { %3739 = vmatpush1.bf16.msra.mxu0 %v6508_v9  ;;  %v6583_v9 = vld [vmem:[#allocation8 + $0x5a8] ss:$16 sps:$4 sm:$0xff]  }
 0x219   :  { %3903 = vmatpush1.bf16.msra.mxu1 %v6511_v38  ;;  %3740 = vmatprep.subr.bf16.mxu0 %v6516_v13  ;;  %v6588_v38 = vld [vmem:[#allocation8 + $0x5c4] ss:$16 sps:$4 sm:$0xff]   ;;  %v6591_v13 = vld [vmem:[#allocation8 + $0x5cc] ss:$16 sps:$4 sm:$0xff]  }
 0x21a   :  { %3904 = vmatprep.subr.bf16.mxu1 %v6519_v62  ;;  %v6586_v62 = vld [vmem:[#allocation8 + $0x5c0] ss:$16 sps:$4 sm:$0xff]  }
 0x21c   :  { %3741 = vmatpush1.bf16.msra.mxu0 %v6514_v44  ;;  %v6589_v44 = vld [vmem:[#allocation8 + $0x5c8] ss:$16 sps:$4 sm:$0xff]  }
 0x21d   :  { %3905 = vmatpush1.bf16.msra.mxu1 %v6517_v41  ;;  %3742 = vmatprep.subr.bf16.mxu0 %v6522_v46  ;;  %v6594_v41 = vld [vmem:[#allocation8 + $0x5e4] ss:$16 sps:$4 sm:$0xff]   ;;  %v6597_v46 = vld [vmem:[#allocation8 + $0x5ec] ss:$16 sps:$4 sm:$0xff]  }
 0x21e   :  { %3906 = vmatprep.subr.bf16.mxu1 %v6525_v48  ;;  %v2349_v48 = vcombine.high %v7443_v24, %v7443_v24 }
 0x220   :  { %3743 = vmatpush1.bf16.msra.mxu0 %v6520_v31  ;;  %v6592_v31 = vld [vmem:[#allocation8 + $0x5e0] ss:$16 sps:$4 sm:$0xff]  }
 0x221   :  { %3907 = vmatpush1.bf16.msra.mxu1 %v6523_v15  ;;  %3744 = vmatprep.subr.bf16.mxu0 %v6528_v17  ;;  %v6595_v15 = vld [vmem:[#allocation8 + $0x5e8] ss:$16 sps:$4 sm:$0xff]   ;;  %v6600_v17 = vld [vmem:[#allocation8 + $0x604] ss:$16 sps:$4 sm:$0xff]  }
 0x222   :  { %3908 = vmatprep.subr.bf16.mxu1 %v6531_v19  ;;  %v6603_v19 = vld [vmem:[#allocation8 + $0x60c] ss:$16 sps:$4 sm:$0xff]  }
 0x224   :  { %3745 = vmatpush1.bf16.msra.mxu0 %v6526_v50  ;;  %v7460_v50 = vrot.slane %v2349_v48, %v7254_v49  ;;  %v6607_v49 = vld [vmem:[#allocation8 + $0x628] ss:$16 sps:$4 sm:$0xff]   ;;  %v6663_v48 = vld [vmem:[#allocation8 + $0x74c] ss:$16 sps:$4 sm:$0xff]  }
 0x225   :  { %3909 = vmatpush1.bf16.msra.mxu1 %v6529_v21  ;;  %3746 = vmatprep.subr.bf16.mxu0 %v6534_v55  ;;  %v6598_v21 = vld [vmem:[#allocation8 + $0x600] ss:$16 sps:$4 sm:$0xff]   ;;  %v6601_v55 = vld [vmem:[#allocation8 + $0x608] ss:$16 sps:$4 sm:$0xff]  }
 0x226   :  { %3910 = vmatprep.subr.bf16.mxu1 %v6537_v57  ;;  %v1930_v11 = vpop.f32.mrb[8].mxu0  ;;  %v6606_v57 = vld [vmem:[#allocation8 + $0x624] ss:$16 sps:$4 sm:$0xff]   ;;  %v2365_v24 = vcombine.high %v7460_v50, %v7460_v50 }
 0x227   :  { %v1971_v4 = vpop.f32.mrb[8].mxu1  ;;  %v1932_v8 = vpop.f32.mrb[9].mxu0 }
 0x228   :  { %v7453_v6 = vadd.f32 %v1971_v4, %v1930_v11  ;;  %v1973_v10 = vpop.f32.mrb[9].mxu1  ;;  %v1934_v14 = vpop.f32.mrb[10].mxu0  ;;  %3747 = vmatpush1.bf16.msra.mxu0 %v6532_v61  ;;  %v6609_v61 = vld [vmem:[#allocation8 + $0x62c] ss:$16 sps:$4 sm:$0xff]   ;;  %v6610_v11 = vld [vmem:[#allocation8 + $0x640] ss:$16 sps:$4 sm:$0xff]  }
 0x229   :  { %v7455_v12 = vadd.f32 %v1973_v10, %v1932_v8  ;;  %3911 = vmatpush1.bf16.msra.mxu1 %v6535_v0  ;;  %v1975_v18 = vpop.f32.mrb[10].mxu1  ;;  %v1935_v20 = vpop.f32.mrb[11].mxu0  ;;  %3748 = vmatprep.subr.bf16.mxu0 %v6540_v7  ;;  %v6604_v0 = vld [vmem:[#allocation8 + $0x620] ss:$16 sps:$4 sm:$0xff]   ;;  %v6612_v7 = vld [vmem:[#allocation8 + $0x644] ss:$16 sps:$4 sm:$0xff]  }
 0x22a   :  { %3912 = vmatprep.subr.bf16.mxu1 %v6543_v2  ;;  %v1976_v25 = vpop.f32.mrb[11].mxu1  ;;  %v6615_v2 = vld [vmem:[#allocation8 + $0x64c] ss:$16 sps:$4 sm:$0xff]   ;;  %v6613_v4 = vld [vmem:[#allocation8 + $0x648] ss:$16 sps:$4 sm:$0xff]  }
 0x22b   :  { %v6618_v8 = vld [vmem:[#allocation8 + $0x664] ss:$16 sps:$4 sm:$0xff]   ;;  %v6621_v10 = vld [vmem:[#allocation8 + $0x66c] ss:$16 sps:$4 sm:$0xff]   ;;  %v6619_v14 = vld [vmem:[#allocation8 + $0x668] ss:$16 sps:$4 sm:$0xff]  }
 0x22c   :  { %3749 = vmatpush1.bf16.msra.mxu0 %v6538_v16  ;;  %v6624_v16 = vld [vmem:[#allocation8 + $0x684] ss:$16 sps:$4 sm:$0xff]   ;;  %v6622_v18 = vld [vmem:[#allocation8 + $0x680] ss:$16 sps:$4 sm:$0xff]   ;;  %v6625_v20 = vld [vmem:[#allocation8 + $0x688] ss:$16 sps:$4 sm:$0xff]  }
 0x22d   :  { %3913 = vmatpush1.bf16.msra.mxu1 %v6541_v27  ;;  %3750 = vmatprep.subr.bf16.mxu0 %v6546_v29  ;;  %v6627_v27 = vld [vmem:[#allocation8 + $0x68c] ss:$16 sps:$4 sm:$0xff]   ;;  %v6630_v29 = vld [vmem:[#allocation8 + $0x6a4] ss:$16 sps:$4 sm:$0xff]   ;;  %v6628_v25 = vld [vmem:[#allocation8 + $0x6a0] ss:$16 sps:$4 sm:$0xff]  }
 0x22e   :  { %3914 = vmatprep.subr.bf16.mxu1 %v6549_v22  ;;  %v6633_v22 = vld [vmem:[#allocation8 + $0x6ac] ss:$16 sps:$4 sm:$0xff]  }
 0x230   :  { %3751 = vmatpush1.bf16.msra.mxu0 %v6544_v35  ;;  %v6631_v35 = vld [vmem:[#allocation8 + $0x6a8] ss:$16 sps:$4 sm:$0xff]  }
 0x231   :  { %3915 = vmatpush1.bf16.msra.mxu1 %v6547_v37  ;;  %3752 = vmatprep.subr.bf16.mxu0 %v6552_v59  ;;  %v6636_v37 = vld [vmem:[#allocation8 + $0x6c4] ss:$16 sps:$4 sm:$0xff]   ;;  %v6639_v59 = vld [vmem:[#allocation8 + $0x6cc] ss:$16 sps:$4 sm:$0xff]  }
 0x232   :  { %3916 = vmatprep.subr.bf16.mxu1 %v6555_v40 }
 0x234   :  { %3753 = vmatpush1.bf16.msra.mxu0 %v6550_v33 }
 0x235   :  { %3917 = vmatpush1.bf16.msra.mxu1 %v6553_v42  ;;  %3754 = vmatprep.subr.bf16.mxu0 %v6558_v47 }
 0x236   :  { %3918 = vmatprep.subr.bf16.mxu1 %v6561_v51  ;;  %v148_v51 = vld [vmem:[#allocation2 + $0x10] sm:$0xf] }
 0x238   :  { %3755 = vmatpush1.bf16.msra.mxu0 %v6556_v52 }
 0x239   :  { %3919 = vmatpush1.bf16.msra.mxu1 %v6559_v53  ;;  %3756 = vmatprep.subr.bf16.mxu0 %v6564_v58  ;;  %v6634_v53 = vld [vmem:[#allocation8 + $0x6c0] ss:$16 sps:$4 sm:$0xff]  }
 0x23a   :  { %3920 = vmatprep.subr.bf16.mxu1 %v6567_v63 }
 0x23c   :  { %3757 = vmatpush1.bf16.msra.mxu0 %v6562_v56  ;;  %v149_v56 = vld [vmem:[#allocation2 + $0x18] sm:$0xf] }
 0x23d   :  { %3921 = vmatpush1.bf16.msra.mxu1 %v6565_v1  ;;  %3758 = vmatprep.subr.bf16.mxu0 %v6570_v3  ;;  %v6637_v1 = vld [vmem:[#allocation8 + $0x6c8] ss:$16 sps:$4 sm:$0xff]  }
 0x23e   :  { %3922 = vmatprep.subr.bf16.mxu1 %v6573_v5 }
 0x240   :  { %3759 = vmatpush1.bf16.msra.mxu0 %v6568_v39 }
 0x241   :  { %3923 = vmatpush1.bf16.msra.mxu1 %v6571_v45  ;;  %3760 = vmatprep.subr.bf16.mxu0 %v6576_v26  ;;  %v6642_v45 = vld [vmem:[#allocation8 + $0x6e4] ss:$16 sps:$4 sm:$0xff]   ;;  %v6645_v26 = vld [vmem:[#allocation8 + $0x6ec] ss:$16 sps:$4 sm:$0xff]  }
 0x242   :  { %3924 = vmatprep.subr.bf16.mxu1 %v6579_v28 }
 0x244   :  { %3761 = vmatpush1.bf16.msra.mxu0 %v6574_v54 }
 0x245   :  { %3925 = vmatpush1.bf16.msra.mxu1 %v6577_v32  ;;  %3762 = vmatprep.subr.bf16.mxu0 %v6582_v34  ;;  %v6640_v34 = vld [vmem:[#allocation8 + $0x6e0] ss:$16 sps:$4 sm:$0xff]  }
 0x246   :  { %3926 = vmatprep.subr.bf16.mxu1 %v6585_v60  ;;  %v6648_v60 = vld [vmem:[#allocation8 + $0x704] ss:$16 sps:$4 sm:$0xff]  }
 0x248   :  { %3763 = vmatpush1.bf16.msra.mxu0 %v6580_v36  ;;  %v6651_v36 = vld [vmem:[#allocation8 + $0x70c] ss:$16 sps:$4 sm:$0xff]  }
 0x249   :  { %3927 = vmatpush1.bf16.msra.mxu1 %v6583_v9  ;;  %3764 = vmatprep.subr.bf16.mxu0 %v6588_v38  ;;  %v6646_v9 = vld [vmem:[#allocation8 + $0x700] ss:$16 sps:$4 sm:$0xff]   ;;  %v6649_v38 = vld [vmem:[#allocation8 + $0x708] ss:$16 sps:$4 sm:$0xff]  }
 0x24a   :  { %3928 = vmatprep.subr.bf16.mxu1 %v6591_v13  ;;  %v6654_v13 = vld [vmem:[#allocation8 + $0x724] ss:$16 sps:$4 sm:$0xff]  }
 0x24c   :  { %3765 = vmatpush1.bf16.msra.mxu0 %v6586_v62  ;;  %v6657_v62 = vld [vmem:[#allocation8 + $0x72c] ss:$16 sps:$4 sm:$0xff]  }
 0x24d   :  { %3929 = vmatpush1.bf16.msra.mxu1 %v6589_v44  ;;  %3766 = vmatprep.subr.bf16.mxu0 %v6594_v41  ;;  %v6652_v44 = vld [vmem:[#allocation8 + $0x720] ss:$16 sps:$4 sm:$0xff]   ;;  %v6655_v41 = vld [vmem:[#allocation8 + $0x728] ss:$16 sps:$4 sm:$0xff]  }
 0x24e   :  { %3930 = vmatprep.subr.bf16.mxu1 %v6597_v46  ;;  %v6660_v46 = vld [vmem:[#allocation8 + $0x744] ss:$16 sps:$4 sm:$0xff]  }
 0x250   :  { %3767 = vmatpush1.bf16.msra.mxu0 %v6592_v31  ;;  %v6658_v31 = vld [vmem:[#allocation8 + $0x740] ss:$16 sps:$4 sm:$0xff]  }
 0x251   :  { %3931 = vmatpush1.bf16.msra.mxu1 %v6595_v15  ;;  %3777 = vmatprep.subr.bf16.mxu0 %v6600_v17  ;;  %v6661_v15 = vld [vmem:[#allocation8 + $0x748] ss:$16 sps:$4 sm:$0xff]   ;;  %v6666_v17 = vld [vmem:[#allocation8 + $0x764] ss:$16 sps:$4 sm:$0xff]  }
 0x252   :  { %3941 = vmatprep.subr.bf16.mxu1 %v6603_v19  ;;  %v6669_v19 = vld [vmem:[#allocation8 + $0x76c] ss:$16 sps:$4 sm:$0xff]  }
 0x253   :  { %3769 = vmatmul.mubr.bf16.vlgmr.msra.gmra.mrb[16].mxu0 %v7447_v30 }
 0x254   :  { %3933 = vmatmul.mubr.bf16.vlgmr.msra.gmra.mrb[16].mxu1 %v7447_v30  ;;  %3778 = vmatpush1.bf16.msra.mxu0 %v6598_v21  ;;  %v6616_v30 = vld [vmem:[#allocation8 + $0x660] ss:$16 sps:$4 sm:$0xff]  }
 0x255   :  { %3942 = vmatpush1.bf16.msra.mxu1 %v6601_v55  ;;  %3779 = vmatprep.subr.bf16.mxu0 %v6606_v57  ;;  %v6664_v21 = vld [vmem:[#allocation8 + $0x760] ss:$16 sps:$4 sm:$0xff]   ;;  %v6667_v55 = vld [vmem:[#allocation8 + $0x768] ss:$16 sps:$4 sm:$0xff]   ;;  %v6672_v57 = vld [vmem:[#allocation8 + $0x784] ss:$16 sps:$4 sm:$0xff]  }
 0x256   :  { %3943 = vmatprep.subr.bf16.mxu1 %v6609_v61  ;;  %3809 = vmatprep.mubr.bf16.mxu0 %v2365_v24  ;;  %v6675_v61 = vld [vmem:[#allocation8 + $0x78c] ss:$16 sps:$4 sm:$0xff]  }
 0x257   :  { %3973 = vmatprep.mubr.bf16.mxu1 %v2365_v24  ;;  %v6670_v24 = vld [vmem:[#allocation8 + $0x780] ss:$16 sps:$4 sm:$0xff]  }
 0x258   :  { %3780 = vmatpush1.bf16.msra.mxu0 %v6604_v0  ;;  %v6673_v0 = vld [vmem:[#allocation8 + $0x788] ss:$16 sps:$4 sm:$0xff]  }
 0x259   :  { %3944 = vmatpush1.bf16.msra.mxu1 %v6607_v49  ;;  %3781 = vmatprep.subr.bf16.mxu0 %v6612_v7  ;;  %v6678_v49 = vld [vmem:[#allocation8 + $0x7a4] ss:$16 sps:$4 sm:$0xff]   ;;  %v6681_v7 = vld [vmem:[#allocation8 + $0x7ac] ss:$16 sps:$4 sm:$0xff]  }
 0x25a   :  { %3945 = vmatprep.subr.bf16.mxu1 %v6615_v2  ;;  %v6676_v2 = vld [vmem:[#allocation8 + $0x7a0] ss:$16 sps:$4 sm:$0xff]  }
 0x25c   :  { %3782 = vmatpush1.bf16.msra.mxu0 %v6610_v11  ;;  %v6679_v11 = vld [vmem:[#allocation8 + $0x7a8] ss:$16 sps:$4 sm:$0xff]  }
 0x25d   :  { %3946 = vmatpush1.bf16.msra.mxu1 %v6613_v4  ;;  %3783 = vmatprep.subr.bf16.mxu0 %v6618_v8  ;;  %v6684_v4 = vld [vmem:[#allocation8 + $0x7c4] ss:$16 sps:$4 sm:$0xff]   ;;  %v6687_v8 = vld [vmem:[#allocation8 + $0x7cc] ss:$16 sps:$4 sm:$0xff]  }
 0x25e   :  { %3947 = vmatprep.subr.bf16.mxu1 %v6621_v10  ;;  %v6682_v10 = vld [vmem:[#allocation8 + $0x7c0] ss:$16 sps:$4 sm:$0xff]  }
 0x260   :  { %3784 = vmatpush1.bf16.msra.mxu0 %v6616_v30  ;;  %v6685_v30 = vld [vmem:[#allocation8 + $0x7c8] ss:$16 sps:$4 sm:$0xff]  }
 0x261   :  { %3948 = vmatpush1.bf16.msra.mxu1 %v6619_v14  ;;  %3785 = vmatprep.subr.bf16.mxu0 %v6624_v16  ;;  %v6690_v14 = vld [vmem:[#allocation8 + $0x7e4] ss:$16 sps:$4 sm:$0xff]   ;;  %v6693_v16 = vld [vmem:[#allocation8 + $0x7ec] ss:$16 sps:$4 sm:$0xff]  }
 0x262   :  { %3949 = vmatprep.subr.bf16.mxu1 %v6627_v27  ;;  %v6688_v27 = vld [vmem:[#allocation8 + $0x7e0] ss:$16 sps:$4 sm:$0xff]  }
 0x264   :  { %3786 = vmatpush1.bf16.msra.mxu0 %v6622_v18  ;;  %v6691_v18 = vld [vmem:[#allocation8 + $0x7e8] ss:$16 sps:$4 sm:$0xff]  }
 0x265   :  { %3950 = vmatpush1.bf16.msra.mxu1 %v6625_v20  ;;  %3787 = vmatprep.subr.bf16.mxu0 %v6630_v29  ;;  %v6697_v20 = vld [vmem:[#allocation9 + $0x4] ss:$8 sps:$4 sm:$0xff]   ;;  %v6695_v29 = vld [vmem:[#allocation9] ss:$8 sps:$4 sm:$0xff]  }
 0x266   :  { %3951 = vmatprep.subr.bf16.mxu1 %v6633_v22  ;;  %v2012_v40 = vpop.f32.mrb[12].mxu0  ;;  %v6700_v22 = vld [vmem:[#allocation9 + $0x14] ss:$8 sps:$4 sm:$0xff]  }
 0x267   :  { %v2053_v33 = vpop.f32.mrb[12].mxu1  ;;  %v2013_v42 = vadd.f32 %v2012_v40, %v7453_v6  ;;  %v2014_v47 = vpop.f32.mrb[13].mxu0  ;;  %v6704_v40 = vld [vmem:[#allocation9 + $0x30] ss:$8 sps:$4 sm:$0xff]  }
 0x268   :  { %v2055_v52 = vpop.f32.mrb[13].mxu1  ;;  %v2015_v58 = vadd.f32 %v2014_v47, %v7455_v12  ;;  %v2016_v63 = vpop.f32.mrb[14].mxu0  ;;  %3788 = vmatpush1.bf16.msra.mxu0 %v6628_v25  ;;  %v6643_v12 = vld [vmem:[#allocation8 + $0x6e8] ss:$16 sps:$4 sm:$0xff]   ;;  %v6712_v47 = vld [vmem:[#allocation9 + $0x54] ss:$8 sps:$4 sm:$0xff]  }
 0x269   :  { %3952 = vmatpush1.bf16.msra.mxu1 %v6631_v35  ;;  %v2057_v3 = vpop.f32.mrb[14].mxu1  ;;  %v2054_v5 = vadd.f32 %v2053_v33, %v2013_v42  ;;  %v2017_v39 = vpop.f32.mrb[15].mxu0  ;;  %3789 = vmatprep.subr.bf16.mxu0 %v6636_v37  ;;  %v6698_v25 = vld [vmem:[#allocation9 + $0x10] ss:$8 sps:$4 sm:$0xff]   ;;  %v6703_v35 = vld [vmem:[#allocation9 + $0x24] ss:$8 sps:$4 sm:$0xff]  }
 0x26a   :  { %3953 = vmatprep.subr.bf16.mxu1 %v6639_v59  ;;  %v2058_v28 = vpop.f32.mrb[15].mxu1  ;;  %v2056_v6 = vadd.f32 %v2055_v52, %v2015_v58  ;;  %v6701_v37 = vld [vmem:[#allocation9 + $0x20] ss:$8 sps:$4 sm:$0xff]   ;;  %v6706_v59 = vld [vmem:[#allocation9 + $0x34] ss:$8 sps:$4 sm:$0xff]  }
 0x26b   :  { %v2062_v54 = vadd.f32 %v2054_v5, %v148_v51  ;;  %v6709_v33 = vld [vmem:[#allocation9 + $0x44] ss:$8 sps:$4 sm:$0xff]   ;;  %v6707_v42 = vld [vmem:[#allocation9 + $0x40] ss:$8 sps:$4 sm:$0xff]   ;;  %v6710_v51 = vld [vmem:[#allocation9 + $0x50] ss:$8 sps:$4 sm:$0xff]  }
 0x26c   :  { %v2063_v32 = vadd.f32 %v2056_v6, %v149_v56  ;;  %3790 = vmatpush1.bf16.msra.mxu0 %v6634_v53  ;;  %v6713_v52 = vld [vmem:[#allocation9 + $0x60] ss:$8 sps:$4 sm:$0xff]   ;;  %v6718_v53 = vld [vmem:[#allocation9 + $0x74] ss:$8 sps:$4 sm:$0xff]   ;;  %v6716_v58 = vld [vmem:[#allocation9 + $0x70] ss:$8 sps:$4 sm:$0xff]  }
 0x26d   :  { %3954 = vmatpush1.bf16.msra.mxu1 %v6637_v1  ;;  %2066 = vst [vmem:[#allocation2 + $0x10] sm:$0xf] %v2062_v54  ;;  %3791 = vmatprep.subr.bf16.mxu0 %v6642_v45  ;;  %v6721_v63 = vld [vmem:[#allocation9 + $0x84] ss:$8 sps:$4 sm:$0xff]   ;;  %v6719_v56 = vld [vmem:[#allocation9 + $0x80] ss:$8 sps:$4 sm:$0xff]  }
 0x26e   :  { %3955 = vmatprep.subr.bf16.mxu1 %v6645_v26  ;;  %2067 = vst [vmem:[#allocation2 + $0x18] sm:$0xf] %v2063_v32  ;;  %v6724_v1 = vld [vmem:[#allocation9 + $0x94] ss:$8 sps:$4 sm:$0xff]   ;;  %v6722_v3 = vld [vmem:[#allocation9 + $0x90] ss:$8 sps:$4 sm:$0xff]  }
 0x26f   :  { %v6727_v5 = vld [vmem:[#allocation9 + $0xa4] ss:$8 sps:$4 sm:$0xff]   ;;  %v6725_v39 = vld [vmem:[#allocation9 + $0xa0] ss:$8 sps:$4 sm:$0xff]   ;;  %v6730_v45 = vld [vmem:[#allocation9 + $0xb4] ss:$8 sps:$4 sm:$0xff]  }
 0x270   :  { %3792 = vmatpush1.bf16.msra.mxu0 %v6640_v34  ;;  %v6728_v26 = vld [vmem:[#allocation9 + $0xb0] ss:$8 sps:$4 sm:$0xff]   ;;  %v6733_v28 = vld [vmem:[#allocation9 + $0xc4] ss:$8 sps:$4 sm:$0xff]   ;;  %v6731_v6 = vld [vmem:[#allocation9 + $0xc0] ss:$8 sps:$4 sm:$0xff]  }
 0x271   :  { %3956 = vmatpush1.bf16.msra.mxu1 %v6643_v12  ;;  %3793 = vmatprep.subr.bf16.mxu0 %v6648_v60  ;;  %v6734_v54 = vld [vmem:[#allocation9 + $0xd0] ss:$8 sps:$4 sm:$0xff]   ;;  %v6736_v32 = vld [vmem:[#allocation9 + $0xd4] ss:$8 sps:$4 sm:$0xff]   ;;  %v6739_v34 = vld [vmem:[#allocation9 + $0xe4] ss:$8 sps:$4 sm:$0xff]  }
 0x272   :  { %3957 = vmatprep.subr.bf16.mxu1 %v6651_v36  ;;  %v6737_v12 = vld [vmem:[#allocation9 + $0xe0] ss:$8 sps:$4 sm:$0xff]   ;;  %v6742_v60 = vld [vmem:[#allocation9 + $0xf4] ss:$8 sps:$4 sm:$0xff]   ;;  %v6740_v36 = vld [vmem:[#allocation9 + $0xf0] ss:$8 sps:$4 sm:$0xff]  }
 0x274   :  { %3794 = vmatpush1.bf16.msra.mxu0 %v6646_v9  ;;  %v6745_v9 = vld [vmem:[#allocation9 + $0x104] ss:$8 sps:$4 sm:$0xff]  }
 0x275   :  { %3958 = vmatpush1.bf16.msra.mxu1 %v6649_v38  ;;  %3795 = vmatprep.subr.bf16.mxu0 %v6654_v13  ;;  %v2068_v38 = vld [vmem:[#allocation2] sm:$0xf0] }
 0x276   :  { %3959 = vmatprep.subr.bf16.mxu1 %v6657_v62  ;;  %v2070_v62 = vld [vmem:[#allocation2 + $0x10] sm:$0xf0] }
 0x278   :  { %3796 = vmatpush1.bf16.msra.mxu0 %v6652_v44 }
 0x279   :  { %3960 = vmatpush1.bf16.msra.mxu1 %v6655_v41  ;;  %3797 = vmatprep.subr.bf16.mxu0 %v6660_v46  ;;  %v2069_v41 = vld [vmem:[#allocation2 + $0x8] sm:$0xf0] }
 0x27a   :  { %3961 = vmatprep.subr.bf16.mxu1 %v6663_v48 }
 0x27c   :  { %3798 = vmatpush1.bf16.msra.mxu0 %v6658_v31 }
 0x27d   :  { %3962 = vmatpush1.bf16.msra.mxu1 %v6661_v15  ;;  %3799 = vmatprep.subr.bf16.mxu0 %v6666_v17  ;;  %v2071_v15 = vld [vmem:[#allocation2 + $0x18] sm:$0xf0] }
 0x27e   :  { %3963 = vmatprep.subr.bf16.mxu1 %v6669_v19 }
 0x280   :  { %3800 = vmatpush1.bf16.msra.mxu0 %v6664_v21 }
 0x281   :  { %3964 = vmatpush1.bf16.msra.mxu1 %v6667_v55  ;;  %3801 = vmatprep.subr.bf16.mxu0 %v6672_v57 }
 0x282   :  { %3965 = vmatprep.subr.bf16.mxu1 %v6675_v61 }
 0x284   :  { %3802 = vmatpush1.bf16.msra.mxu0 %v6670_v24 }
 0x285   :  { %3966 = vmatpush1.bf16.msra.mxu1 %v6673_v0  ;;  %3803 = vmatprep.subr.bf16.mxu0 %v6678_v49 }
 0x286   :  { %3967 = vmatprep.subr.bf16.mxu1 %v6681_v7 }
 0x288   :  { %3804 = vmatpush1.bf16.msra.mxu0 %v6676_v2 }
 0x289   :  { %3968 = vmatpush1.bf16.msra.mxu1 %v6679_v11  ;;  %3805 = vmatprep.subr.bf16.mxu0 %v6684_v4  ;;  %v7471_v11 = vsub.s32 0, %v7251_v43  ;;  %v7473_v4 = vld [vmem:[#allocation15] ss:$8 sm:$0xf] }
 0x28a   :  { %3969 = vmatprep.subr.bf16.mxu1 %v6687_v8  ;;  %v7476_v8 = vsub.s32 1, %v7251_v43 }
 0x28c   :  { %3806 = vmatpush1.bf16.msra.mxu0 %v6682_v10  ;;  %v4025_v10 = vsub.s32 3, %v7251_v43 }
 0x28d   :  { %3970 = vmatpush1.bf16.msra.mxu1 %v6685_v30  ;;  %3807 = vmatprep.subr.bf16.mxu0 %v6690_v14  ;;  %v4014_v30 = vrot.slane %v7473_v4, %v7471_v11  ;;  %v4018_v14 = vrot.slane %v7473_v4, %v7476_v8 }
 0x28e   :  { %3971 = vmatprep.subr.bf16.mxu1 %v6693_v16  ;;  %v4026_v16 = vrot.slane %v7473_v4, %v4025_v10  ;;  %v6798_v10 = vld [vmem:[#allocation11 + $0x18] sm:$0xff]  }
 0x290   :  { %3808 = vmatpush1.bf16.msra.mxu0 %v6688_v27 }
 0x291   :  { %3972 = vmatpush1.bf16.msra.mxu1 %v6691_v18  ;;  %4440 = vmatprep.subr.bf16.mxu0 %v6697_v20 }
 0x293   :  { %3810 = vmatmul.mubr.bf16.vlgmr.msra.gmra.mrb[16].mxu0 %v7460_v50 }
 0x294   :  { %3974 = vmatmul.mubr.bf16.vlgmr.msra.gmra.mrb[16].mxu1 %v7460_v50  ;;  %4441 = vmatpush1.bf16.msra.mxu0 %v6695_v29  ;;  %v6715_v50 = vld [vmem:[#allocation9 + $0x64] ss:$8 sps:$4 sm:$0xff]  }
 0x295   :  { %4442 = vmatprep.subr.bf16.mxu0 %v6700_v22 }
 0x298   :  { %4443 = vmatpush1.bf16.msra.mxu0 %v6698_v25 }
 0x299   :  { %4444 = vmatprep.subr.bf16.mxu0 %v6703_v35 }
 0x29c   :  { %4445 = vmatpush1.bf16.msra.mxu0 %v6701_v37 }
 0x29d   :  { %4446 = vmatprep.subr.bf16.mxu0 %v6706_v59 }
 0x2a0   :  { %4447 = vmatpush1.bf16.msra.mxu0 %v6704_v40 }
 0x2a1   :  { %4448 = vmatprep.subr.bf16.mxu0 %v6709_v33  ;;  %v6743_v33 = vld [vmem:[#allocation9 + $0x100] ss:$8 sps:$4 sm:$0xff]  }
 0x2a4   :  { %4449 = vmatpush1.bf16.msra.mxu0 %v6707_v42 }
 0x2a5   :  { %4450 = vmatprep.subr.bf16.mxu0 %v6712_v47  ;;  %v6748_v47 = vld [vmem:[#allocation9 + $0x114] ss:$8 sps:$4 sm:$0xff]  }
 0x2a8   :  { %4451 = vmatpush1.bf16.msra.mxu0 %v6710_v51 }
 0x2a9   :  { %4452 = vmatprep.subr.bf16.mxu0 %v6715_v50  ;;  %v6746_v50 = vld [vmem:[#allocation9 + $0x110] ss:$8 sps:$4 sm:$0xff]  }
 0x2ac   :  { %4453 = vmatpush1.bf16.msra.mxu0 %v6713_v52  ;;  %v6751_v52 = vld [vmem:[#allocation9 + $0x124] ss:$8 sps:$4 sm:$0xff]  }
 0x2ad   :  { %4454 = vmatprep.subr.bf16.mxu0 %v6718_v53  ;;  %v6749_v53 = vld [vmem:[#allocation9 + $0x120] ss:$8 sps:$4 sm:$0xff]  }
 0x2b0   :  { %4455 = vmatpush1.bf16.msra.mxu0 %v6716_v58  ;;  %v6754_v58 = vld [vmem:[#allocation9 + $0x134] ss:$8 sps:$4 sm:$0xff]  }
 0x2b1   :  { %4456 = vmatprep.subr.bf16.mxu0 %v6721_v63  ;;  %v6752_v63 = vld [vmem:[#allocation9 + $0x130] ss:$8 sps:$4 sm:$0xff]  }
 0x2b4   :  { %4457 = vmatpush1.bf16.msra.mxu0 %v6719_v56  ;;  %v6757_v56 = vld [vmem:[#allocation9 + $0x144] ss:$8 sps:$4 sm:$0xff]  }
 0x2b5   :  { %4458 = vmatprep.subr.bf16.mxu0 %v6724_v1  ;;  %v6755_v1 = vld [vmem:[#allocation9 + $0x140] ss:$8 sps:$4 sm:$0xff]  }
 0x2b8   :  { %4459 = vmatpush1.bf16.msra.mxu0 %v6722_v3  ;;  %v6760_v3 = vld [vmem:[#allocation9 + $0x154] ss:$8 sps:$4 sm:$0xff]  }
 0x2b9   :  { %4460 = vmatprep.subr.bf16.mxu0 %v6727_v5  ;;  %v6758_v5 = vld [vmem:[#allocation9 + $0x150] ss:$8 sps:$4 sm:$0xff]  }
 0x2bc   :  { %4461 = vmatpush1.bf16.msra.mxu0 %v6725_v39  ;;  %v6763_v39 = vld [vmem:[#allocation9 + $0x164] ss:$8 sps:$4 sm:$0xff]  }
 0x2bd   :  { %4462 = vmatprep.subr.bf16.mxu0 %v6730_v45  ;;  %v6761_v45 = vld [vmem:[#allocation9 + $0x160] ss:$8 sps:$4 sm:$0xff]  }
 0x2c0   :  { %4463 = vmatpush1.bf16.msra.mxu0 %v6728_v26  ;;  %v6766_v26 = vld [vmem:[#allocation9 + $0x174] ss:$8 sps:$4 sm:$0xff]  }
 0x2c1   :  { %4464 = vmatprep.subr.bf16.mxu0 %v6733_v28  ;;  %v6764_v28 = vld [vmem:[#allocation9 + $0x170] ss:$8 sps:$4 sm:$0xff]  }
 0x2c4   :  { %4465 = vmatpush1.bf16.msra.mxu0 %v6731_v6  ;;  %v6769_v6 = vld [vmem:[#allocation9 + $0x184] ss:$8 sps:$4 sm:$0xff]  }
 0x2c5   :  { %4466 = vmatprep.subr.bf16.mxu0 %v6736_v32  ;;  %v6772_v32 = vld [vmem:[#allocation9 + $0x194] ss:$8 sps:$4 sm:$0xff]  }
 0x2c8   :  { %4467 = vmatpush1.bf16.msra.mxu0 %v6734_v54  ;;  %v6767_v54 = vld [vmem:[#allocation9 + $0x180] ss:$8 sps:$4 sm:$0xff]  }
 0x2c9   :  { %4468 = vmatprep.subr.bf16.mxu0 %v6739_v34  ;;  %v6770_v34 = vld [vmem:[#allocation9 + $0x190] ss:$8 sps:$4 sm:$0xff]  }
 0x2cc   :  { %4469 = vmatpush1.bf16.msra.mxu0 %v6737_v12  ;;  %v6775_v12 = vld [vmem:[#allocation9 + $0x1a4] ss:$8 sps:$4 sm:$0xff]  }
 0x2cd   :  { %4470 = vmatprep.subr.bf16.mxu0 %v6742_v60  ;;  %v6773_v60 = vld [vmem:[#allocation9 + $0x1a0] ss:$8 sps:$4 sm:$0xff]  }
 0x2d0   :  { %4471 = vmatpush1.bf16.msra.mxu0 %v6740_v36  ;;  %v6778_v36 = vld [vmem:[#allocation9 + $0x1b4] ss:$8 sps:$4 sm:$0xff]  }
 0x2d1   :  { %4481 = vmatprep.subr.bf16.mxu0 %v6745_v9  ;;  %v6776_v9 = vld [vmem:[#allocation9 + $0x1b0] ss:$8 sps:$4 sm:$0xff]  }
 0x366   :  { %v3811_v13 = vpop.f32.mrb[16].mxu0 }
 0x367   :  { %v3975_v44 = vpop.f32.mrb[16].mxu1  ;;  %v3986_v46 = vrot.slane %v3811_v13, 4  ;;  %v3813_v31 = vpop.f32.mrb[17].mxu0  ;;  %v6779_v13 = vld [vmem:[#allocation9 + $0x1c0] ss:$8 sps:$4 sm:$0xff]  }
 0x368   :  { %v3988_v48 = vrot.slane %v3975_v44, 4  ;;  %v3977_v17 = vpop.f32.mrb[17].mxu1  ;;  %v3987_v19 = vrot.slane %v3813_v31, 4  ;;  %v3815_v55 = vpop.f32.mrb[18].mxu0  ;;  %v4021_v44 = vsub.s32 2, %v7251_v43 }
 0x369   :  { %v3989_v21 = vrot.slane %v3977_v17, 4  ;;  %v3979_v57 = vpop.f32.mrb[18].mxu1  ;;  %v3994_v61 = vadd.f32 %v3986_v46, %v2068_v38  ;;  %v3816_v0 = vpop.f32.mrb[19].mxu0  ;;  %v6781_v38 = vld [vmem:[#allocation9 + $0x1c4] ss:$8 sps:$4 sm:$0xff]  }
 0x36a   :  { %v3996_v24 = vadd.f32 %v3988_v48, %v2070_v62  ;;  %v3980_v49 = vpop.f32.mrb[19].mxu1  ;;  %v3995_v7 = vadd.f32 %v3987_v19, %v2069_v41  ;;  %v6784_v62 = vld [vmem:[#allocation9 + $0x1d4] ss:$8 sps:$4 sm:$0xff]   ;;  %v6782_v41 = vld [vmem:[#allocation9 + $0x1d0] ss:$8 sps:$4 sm:$0xff]   ;;  %v4022_v48 = vrot.slane %v7473_v4, %v4021_v44  ;;  %v6793_v0 = vld [vmem:[#allocation11 + $0x48] sm:$0xff]  }
 0x36b   :  { %v3997_v2 = vadd.f32 %v3989_v21, %v2071_v15  ;;  %3998 = vst [vmem:[#allocation2] sm:$0xf0] %v3994_v61  ;;  %v6787_v46 = vld [vmem:[#allocation9 + $0x1e4] ss:$8 sps:$4 sm:$0xff]   ;;  %v6785_v15 = vld [vmem:[#allocation9 + $0x1e0] ss:$8 sps:$4 sm:$0xff]  }
 0x36c   :  { %4000 = vst [vmem:[#allocation2 + $0x10] sm:$0xf0] %v3996_v24  ;;  %3999 = vst [vmem:[#allocation2 + $0x8] sm:$0xf0] %v3995_v7  ;;  %v6790_v17 = vld [vmem:[#allocation9 + $0x1f4] ss:$8 sps:$4 sm:$0xff]  }
 0x36d   :  { %4001 = vst [vmem:[#allocation2 + $0x18] sm:$0xf0] %v3997_v2  ;;  %v6788_v21 = vld [vmem:[#allocation9 + $0x1f0] ss:$8 sps:$4 sm:$0xff]   ;;  %v6791_v61 = vld [vmem:[#allocation11 + $0x40] sm:$0xff]   ;;  %v6794_v49 = vld [vmem:[#allocation11 + $0x8] sm:$0xff]  }
 0x36e   :  { %v6792_v24 = vld [vmem:[#allocation11] sm:$0xff]   ;;  %5877 = vmatprep.subr.bf16.mxu1 %v6791_v61  ;;  %v6795_v7 = vld [vmem:[#allocation11 + $0x50] sm:$0xff]   ;;  %v6797_v4 = vld [vmem:[#allocation11 + $0x58] sm:$0xff]  }
 0x36f   :  { %5878 = vmatpush3.bf16.msra.mxu1 %v6792_v24  ;;  %v6796_v2 = vld [vmem:[#allocation11 + $0x10] sm:$0xff]  }
 0x370   :  { %5879 = vmatprep.subr.bf16.mxu1 %v6793_v0 }
 0x372   :  { %v4005_v27 = vld [vmem:[#allocation2] sm:$0xff] }
 0x373   :  { %v4006_v18 = vld [vmem:[#allocation2 + $0x8] sm:$0xff]  ;;  %v4031_v20 = vadd.f32 %v4014_v30, %v4005_v27  ;;  %v4007_v31 = vld [vmem:[#allocation2 + $0x10] sm:$0xff]  ;;  %5880 = vmatpush3.bf16.msra.mxu1 %v6794_v49  ;;  %v6799_v30 = vld [vmem:[#allocation11 + $0x60] sm:$0xff]  }
 0x374   :  { %v4008_v29 = vld [vmem:[#allocation2 + $0x18] sm:$0xff]  ;;  %v4032_v22 = vadd.f32 %v4018_v14, %v4006_v18  ;;  %v4033_v19 = vadd.f32 %v4022_v48, %v4007_v31  ;;  %5881 = vmatprep.subr.bf16.mxu1 %v6795_v7  ;;  %v6800_v14 = vld [vmem:[#allocation11 + $0x20] sm:$0xff]   ;;  %v6802_v27 = vld [vmem:[#allocation11 + $0x28] sm:$0xff]  }
 0x375   :  { %v4034_v25 = vadd.f32 %v4026_v16, %v4008_v29  ;;  %v4035_v35 = vmax.f32 %v4031_v20, 0.0  ;;  %v6801_v16 = vld [vmem:[#allocation11 + $0x68] sm:$0xff]   ;;  %v6803_v18 = vld [vmem:[#allocation11 + $0x70] sm:$0xff]   ;;  %v6805_v29 = vld [vmem:[#allocation11 + $0x78] sm:$0xff]  }
 0x376   :  { %v4036_v37 = vmax.f32 %v4032_v22, 0.0  ;;  %v4037_v55 = vmax.f32 %v4033_v19, 0.0  ;;  %v6804_v20 = vld [vmem:[#allocation11 + $0x30] sm:$0xff]   ;;  %v6806_v22 = vld [vmem:[#allocation11 + $0x38] sm:$0xff]  }
 0x377   :  { %v4038_v59 = vmax.f32 %v4034_v25, 0.0  ;;  %v4041_v42 = vpack.c.bf16 %v4035_v35, %v4035_v35  ;;  %5882 = vmatpush3.bf16.msra.mxu1 %v6796_v2  ;;  %v6809_v25 = vld [vmem:[#allocation12 + $0x4] ss:$8 sps:$4 sm:$0xff]   ;;  %v4040_v35 = vld [vmem:[#allocation15 + $0x1] ss:$8 sm:$0x3] }
 0x378   :  { %v4042_v40 = vpack.c.bf16 %v4036_v37, %v4036_v37  ;;  %v4043_v57 = vpack.c.bf16 %v4037_v55, %v4037_v55  ;;  %5883 = vmatprep.subr.bf16.mxu1 %v6797_v4  ;;  %v4113_v37 = vrot.slane %v4040_v35, %v7471_v11 }
 0x379   :  { %v4044_v51 = vpack.c.bf16 %v4038_v59, %v4038_v59  ;;  %v4117_v59 = vrot.slane %v4040_v35, %v7476_v8 }
 0x37a   :  { %4472 = vmatprep.mubr.bf16.mxu0 %v4042_v40 }
 0x37b   :  { %4473 = vmatmul.mubr.bf16.vlgmr.msra.gmra.mrb[20].mxu0 %v4041_v42  ;;  %5884 = vmatpush3.bf16.msra.mxu1 %v6798_v10 }
 0x37c   :  { %4482 = vmatpush1.bf16.msra.mxu0 %v6743_v33  ;;  %4513 = vmatprep.mubr.bf16.mxu0 %v4044_v51 }
 0x37d   :  { %4483 = vmatprep.subr.bf16.mxu0 %v6748_v47  ;;  %5885 = vmatprep.subr.bf16.mxu1 %v6799_v30 }
 0x37f   :  { %5886 = vmatpush3.bf16.msra.mxu1 %v6800_v14 }
 0x380   :  { %4484 = vmatpush1.bf16.msra.mxu0 %v6746_v50  ;;  %5887 = vmatprep.subr.bf16.mxu1 %v6801_v16 }
 0x381   :  { %4485 = vmatprep.subr.bf16.mxu0 %v6751_v52 }
 0x383   :  { %5888 = vmatpush3.bf16.msra.mxu1 %v6802_v27 }
 0x384   :  { %4486 = vmatpush1.bf16.msra.mxu0 %v6749_v53  ;;  %5889 = vmatprep.subr.bf16.mxu1 %v6803_v18 }
 0x385   :  { %4487 = vmatprep.subr.bf16.mxu0 %v6754_v58 }
 0x387   :  { %5890 = vmatpush3.bf16.msra.mxu1 %v6804_v20 }
 0x388   :  { %4488 = vmatpush1.bf16.msra.mxu0 %v6752_v63  ;;  %5891 = vmatprep.subr.bf16.mxu1 %v6805_v29 }
 0x389   :  { %4489 = vmatprep.subr.bf16.mxu0 %v6757_v56 }
 0x38b   :  { %5892 = vmatpush3.bf16.msra.mxu1 %v6806_v22 }
 0x38c   :  { %4490 = vmatpush1.bf16.msra.mxu0 %v6755_v1  ;;  %4920 = vmatprep.subr.bf16.mxu1 %v6809_v25 }
 0x38d   :  { %4491 = vmatprep.subr.bf16.mxu0 %v6760_v3 }
 0x390   :  { %4492 = vmatpush1.bf16.msra.mxu0 %v6758_v5 }
 0x391   :  { %4493 = vmatprep.subr.bf16.mxu0 %v6763_v39 }
 0x394   :  { %4494 = vmatpush1.bf16.msra.mxu0 %v6761_v45 }
 0x395   :  { %4495 = vmatprep.subr.bf16.mxu0 %v6766_v26 }
 0x398   :  { %4496 = vmatpush1.bf16.msra.mxu0 %v6764_v28 }
 0x399   :  { %4497 = vmatprep.subr.bf16.mxu0 %v6769_v6 }
 0x39c   :  { %4498 = vmatpush1.bf16.msra.mxu0 %v6767_v54 }
 0x39d   :  { %4499 = vmatprep.subr.bf16.mxu0 %v6772_v32 }
 0x3a0   :  { %4500 = vmatpush1.bf16.msra.mxu0 %v6770_v34 }
 0x3a1   :  { %4501 = vmatprep.subr.bf16.mxu0 %v6775_v12 }
 0x3a4   :  { %4502 = vmatpush1.bf16.msra.mxu0 %v6773_v60 }
 0x3a5   :  { %4503 = vmatprep.subr.bf16.mxu0 %v6778_v36 }
 0x3a8   :  { %4504 = vmatpush1.bf16.msra.mxu0 %v6776_v9 }
 0x3a9   :  { %4505 = vmatprep.subr.bf16.mxu0 %v6781_v38 }
 0x3ac   :  { %4506 = vmatpush1.bf16.msra.mxu0 %v6779_v13 }
 0x3ad   :  { %4507 = vmatprep.subr.bf16.mxu0 %v6784_v62 }
 0x3b0   :  { %4508 = vmatpush1.bf16.msra.mxu0 %v6782_v41 }
 0x3b1   :  { %4509 = vmatprep.subr.bf16.mxu0 %v6787_v46 }
 0x3b4   :  { %4510 = vmatpush1.bf16.msra.mxu0 %v6785_v15 }
 0x3b5   :  { %4511 = vmatprep.subr.bf16.mxu0 %v6790_v17 }
 0x3b8   :  { %4512 = vmatpush1.bf16.msra.mxu0 %v6788_v21 }
 0x3bb   :  { %4514 = vmatmul.mubr.bf16.vlgmr.msra.gmra.mrb[20].mxu0 %v4043_v57 }
 0x48e   :  { %v4515_v40 = vpop.f32.mrb[20].mxu0 }
 0x48f   :  { %v5921_v33 = vadd.f32 %v4515_v40, %v4113_v37  ;;  %v4517_v42 = vpop.f32.mrb[21].mxu0 }
 0x490   :  { %v5922_v47 = vadd.f32 %v4517_v42, %v4117_v59  ;;  %v4519_v51 = vpop.f32.mrb[22].mxu0 }
 0x491   :  { %v4525_v50 = vsel %vm4524_vm0, %v5921_v33, 0.0  ;;  %v4541_v52 = vsel %vm4524_vm0, 0.0, %v5921_v33  ;;  %v4520_v53 = vpop.f32.mrb[23].mxu0 }
 0x492   :  { %v4527_v58 = vrot.slane %v4525_v50, 4  ;;  %v4543_v63 = vrot.slane %v4541_v52, 4  ;;  %v4526_v56 = vsel %vm4524_vm0, %v5922_v47, 0.0  ;;  %v4542_v1 = vsel %vm4524_vm0, 0.0, %v5922_v47 }
 0x493   :  { %v4533_v3 = vrot.slane %v4526_v56, 4  ;;  %v4549_v5 = vrot.slane %v4542_v1, 4 }
 0x494   :  { %v4528_v39 = vadd.f32 %v4527_v58, %v4525_v50  ;;  %v4544_v45 = vadd.f32 %v4543_v63, %v4541_v52 }
 0x495   :  { %v4534_v26 = vadd.f32 %v4533_v3, %v4526_v56  ;;  %v4550_v28 = vadd.f32 %v4549_v5, %v4542_v1 }
 0x496   :  { %v4529_v6 = vrot.slane %v4528_v39, 2  ;;  %v4545_v54 = vrot.slane %v4544_v45, 2 }
 0x497   :  { %v4535_v32 = vrot.slane %v4534_v26, 2  ;;  %v4551_v34 = vrot.slane %v4550_v28, 2 }
 0x498   :  { %v4530_v12 = vadd.f32 %v4529_v6, %v4528_v39  ;;  %v4546_v60 = vadd.f32 %v4545_v54, %v4544_v45 }
 0x499   :  { %v4536_v36 = vadd.f32 %v4535_v32, %v4534_v26  ;;  %v4552_v9 = vadd.f32 %v4551_v34, %v4550_v28  ;;  %v4608_v32 = vld [vmem:[#allocation15 + $0x2] ss:$8 sm:$0x3] }
 0x49a   :  { %v4531_v38 = vrot.slane %v4530_v12, 1  ;;  %v4547_v13 = vrot.slane %v4546_v60, 1 }
 0x49b   :  { %v4537_v62 = vrot.slane %v4536_v36, 1  ;;  %v4553_v44 = vrot.slane %v4552_v9, 1 }
 0x49c   :  { %v4532_v41 = vadd.f32 %v4531_v38, %v4530_v12  ;;  %v4548_v46 = vadd.f32 %v4547_v13, %v4546_v60  ;;  %v4623_v12 = vld [vmem:[#allocation15 + $0x3] ss:$8 sm:$0x3] }
 0x49d   :  { %v4538_v48 = vadd.f32 %v4537_v62, %v4536_v36  ;;  %v4554_v31 = vadd.f32 %v4553_v44, %v4552_v9  ;;  %v4613_v36 = vrot.slane %v4608_v32, %v7471_v11  ;;  %v4617_v44 = vrot.slane %v4608_v32, %v7476_v8  ;;  %v6845_v32 = vld [vmem:[#allocation14 + $0x78] sm:$0xff]  }
 0x49e   :  { %v4539_v15 = vmul.f32 0.25, %v4532_v41  ;;  %v4555_v17 = vmul.f32 0.25, %v4548_v46  ;;  %v4628_v41 = vrot.slane %v4623_v12, %v7471_v11 }
 0x49f   :  { %v4540_v19 = vmul.f32 0.25, %v4538_v48  ;;  %v4556_v21 = vmul.f32 0.25, %v4554_v31 }
 0x4a0   :  { %v4557_v55 = vsel %vm4524_vm0, %v4539_v15, %v4555_v17  ;;  %v4632_v15 = vrot.slane %v4623_v12, %v7476_v8  ;;  %v4811_v12 = vld [vmem:[#allocation15 + $0x5] ss:$8 sm:$0x3] }
 0x4a1   :  { %v4559_v57 = vsub.f32 %v5921_v33, %v4557_v55  ;;  %v4558_v61 = vsel %vm4524_vm0, %v4540_v19, %v4556_v21 }
 0x4a2   :  { %v4560_v24 = vsub.f32 %v5922_v47, %v4558_v61 }
 0x4a3   :  { %v4561_v0 = vmul.f32 %v4559_v57, %v4559_v57 }
 0x4a4   :  { %v4562_v49 = vmul.f32 %v4560_v24, %v4560_v24 }
 0x4a5   :  { %v4563_v7 = vsel %vm4524_vm0, %v4561_v0, 0.0  ;;  %v4579_v2 = vsel %vm4524_vm0, 0.0, %v4561_v0 }
 0x4a6   :  { %v4565_v4 = vrot.slane %v4563_v7, 4  ;;  %v4581_v10 = vrot.slane %v4579_v2, 4  ;;  %v4564_v30 = vsel %vm4524_vm0, %v4562_v49, 0.0  ;;  %v4580_v14 = vsel %vm4524_vm0, 0.0, %v4562_v49  ;;  %v6807_v49 = vld [vmem:[#allocation12] ss:$8 sps:$4 sm:$0xff]  }
 0x4a7   :  { %v4571_v16 = vrot.slane %v4564_v30, 4  ;;  %v4587_v27 = vrot.slane %v4580_v14, 4 }
 0x4a8   :  { %v4566_v18 = vadd.f32 %v4565_v4, %v4563_v7  ;;  %v4582_v20 = vadd.f32 %v4581_v10, %v4579_v2  ;;  %v6810_v2 = vld [vmem:[#allocation12 + $0x10] ss:$8 sps:$4 sm:$0xff]   ;;  %v6815_v4 = vld [vmem:[#allocation12 + $0x24] ss:$8 sps:$4 sm:$0xff]   ;;  %v6813_v10 = vld [vmem:[#allocation12 + $0x20] ss:$8 sps:$4 sm:$0xff]  }
 0x4a9   :  { %v4572_v29 = vadd.f32 %v4571_v16, %v4564_v30  ;;  %v4588_v22 = vadd.f32 %v4587_v27, %v4580_v14  ;;  %v6816_v30 = vld [vmem:[#allocation12 + $0x30] ss:$8 sps:$4 sm:$0xff]   ;;  %v6821_v14 = vld [vmem:[#allocation12 + $0x44] ss:$8 sps:$4 sm:$0xff]   ;;  %v6819_v16 = vld [vmem:[#allocation12 + $0x40] ss:$8 sps:$4 sm:$0xff]  }
 0x4aa   :  { %v4567_v25 = vrot.slane %v4566_v18, 2  ;;  %v4583_v35 = vrot.slane %v4582_v20, 2  ;;  %v6824_v27 = vld [vmem:[#allocation12 + $0x54] ss:$8 sps:$4 sm:$0xff]  }
 0x4ab   :  { %v4573_v37 = vrot.slane %v4572_v29, 2  ;;  %v4589_v59 = vrot.slane %v4588_v22, 2 }
 0x4ac   :  { %v4568_v40 = vadd.f32 %v4567_v25, %v4566_v18  ;;  %v4584_v33 = vadd.f32 %v4583_v35, %v4582_v20  ;;  %v6822_v18 = vld [vmem:[#allocation12 + $0x50] ss:$8 sps:$4 sm:$0xff]   ;;  %v6827_v20 = vld [vmem:[#allocation12 + $0x64] ss:$8 sps:$4 sm:$0xff]   ;;  %v7094_v35 = vmov 0  }
 0x4ad   :  { %v4574_v42 = vadd.f32 %v4573_v37, %v4572_v29  ;;  %v4590_v47 = vadd.f32 %v4589_v59, %v4588_v22  ;;  %v6825_v29 = vld [vmem:[#allocation12 + $0x60] ss:$8 sps:$4 sm:$0xff]   ;;  %v6830_v22 = vld [vmem:[#allocation12 + $0x74] ss:$8 sps:$4 sm:$0xff]   ;;  %v6828_v25 = vld [vmem:[#allocation12 + $0x70] ss:$8 sps:$4 sm:$0xff]  }
 0x4ae   :  { %v4569_v51 = vrot.slane %v4568_v40, 1  ;;  %v4585_v50 = vrot.slane %v4584_v33, 1  ;;  %v4639_v59 = vld [vmem:[#allocation15 + $0x4] ss:$0 sm:$0xff] }
 0x4af   :  { %v4575_v52 = vrot.slane %v4574_v42, 1  ;;  %v4591_v53 = vrot.slane %v4590_v47, 1 }
 0x4b0   :  { %v4570_v58 = vadd.f32 %v4569_v51, %v4568_v40  ;;  %v4586_v63 = vadd.f32 %v4585_v50, %v4584_v33 }
 0x4b1   :  { %v4576_v56 = vadd.f32 %v4575_v52, %v4574_v42  ;;  %v4592_v1 = vadd.f32 %v4591_v53, %v4590_v47  ;;  %v6831_v52 = vld [vmem:[#allocation14 + $0x40] sm:$0xff]  }
 0x4b2   :  { %v4577_v3 = vmul.f32 0.25, %v4570_v58  ;;  %v4593_v5 = vmul.f32 0.25, %v4586_v63  ;;  %v6832_v53 = vld [vmem:[#allocation14] sm:$0xff]   ;;  %v6833_v58 = vld [vmem:[#allocation14 + $0x48] sm:$0xff]  }
 0x4b3   :  { %v4578_v39 = vmul.f32 0.25, %v4576_v56  ;;  %v4594_v45 = vmul.f32 0.25, %v4592_v1  ;;  %v6834_v63 = vld [vmem:[#allocation14 + $0x8] sm:$0xff]   ;;  %v6835_v56 = vld [vmem:[#allocation14 + $0x50] sm:$0xff]  }
 0x4b4   :  { %v4595_v26 = vadd.f32 1e-05, %v4577_v3  ;;  %v4599_v28 = vadd.f32 1e-05, %v4593_v5  ;;  %v6836_v1 = vld [vmem:[#allocation14 + $0x10] sm:$0xff]   ;;  %v6837_v3 = vld [vmem:[#allocation14 + $0x58] sm:$0xff]  }
 0x4b5   :  { %v4596_v6 = vadd.f32 1e-05, %v4578_v39  ;;  %v4600_v54 = vadd.f32 1e-05, %v4594_v45  ;;  %v6838_v5 = vld [vmem:[#allocation14 + $0x18] sm:$0xff]   ;;  %v6839_v39 = vld [vmem:[#allocation14 + $0x60] sm:$0xff]  }
 0x4b6   :  { %6847 = vrsqrt.f32 %v4595_v26  ;;  %v6840_v45 = vld [vmem:[#allocation14 + $0x20] sm:$0xff]   ;;  %v6841_v26 = vld [vmem:[#allocation14 + $0x68] sm:$0xff]  }
 0x4b7   :  { %6849 = vrsqrt.f32 %v4599_v28  ;;  %v6842_v28 = vld [vmem:[#allocation14 + $0x28] sm:$0xff]  }
 0x4b8   :  { %6851 = vrsqrt.f32 %v4596_v6  ;;  %v6843_v6 = vld [vmem:[#allocation14 + $0x70] sm:$0xff]  }
 0x4b9   :  { %6853 = vrsqrt.f32 %v4600_v54  ;;  %v6844_v54 = vld [vmem:[#allocation14 + $0x30] sm:$0xff]  }
 0x4c0   :  { %v6848_v34 = vpop.eup %6847 }
 0x4c1   :  { %v6850_v60 = vpop.eup %6849 }
 0x4c2   :  { %v6852_v9 = vpop.eup %6851  ;;  %v4603_v38 = vsel %vm4524_vm0, %v6848_v34, %v6850_v60  ;;  %v6846_v34 = vld [vmem:[#allocation14 + $0x38] sm:$0xff]   ;;  %v4833_v60 = vrot.slane %v4811_v12, %v7471_v11 }
 0x4c3   :  { %v6854_v13 = vpop.eup %6853  ;;  %v4605_v62 = vmul.f32 %v4603_v38, %v4559_v57  ;;  %v6812_v57 = vld [vmem:[#allocation12 + $0x14] ss:$8 sps:$4 sm:$0xff]  }
 0x4c4   :  { %v4604_v46 = vsel %vm4524_vm0, %v6852_v9, %v6854_v13 }
 0x4c5   :  { %v4620_v48 = vmul.f32 %v4613_v36, %v4605_v62  ;;  %v4606_v31 = vmul.f32 %v4604_v46, %v4560_v24  ;;  %v6818_v24 = vld [vmem:[#allocation12 + $0x34] ss:$8 sps:$4 sm:$0xff]   ;;  %v4837_v36 = vrot.slane %v4811_v12, %v7476_v8 }
 0x4c7   :  { %v4621_v17 = vmul.f32 %v4617_v44, %v4606_v31  ;;  %v4635_v19 = vadd.f32 %v4628_v41, %v4620_v48 }
 0x4c9   :  { %v4636_v21 = vadd.f32 %v4632_v15, %v4621_v17  ;;  %v4637_v55 = vmax.f32 %v4635_v19, 0.0 }
 0x4cb   :  { %v4638_v61 = vmax.f32 %v4636_v21, 0.0  ;;  %v4640_v7 = vpack.c.bf16 %v4637_v55, %v4637_v55 }
 0x4cd   :  { %v4641_v0 = vpack.c.bf16 %v4638_v61, %v4638_v61 }
 0x4cf   :  { %4802 = vmatprep.mubr.bf16.mxu1 %v4641_v0 }
 0x4d0   :  { %4803 = vmatmul.mubr.bf16.vlgmr.msra.gmra.mrb[20].mxu1 %v4640_v7 }
 0x4d1   :  { %4921 = vmatpush1.bf16.msra.mxu1 %v6807_v49  ;;  %4952 = vmatprep.mubr.bf16.mxu1 %v7094_v35 }
 0x4d2   :  { %4922 = vmatprep.subr.bf16.mxu1 %v6812_v57 }
 0x4d5   :  { %4923 = vmatpush1.bf16.msra.mxu1 %v6810_v2 }
 0x4d6   :  { %4924 = vmatprep.subr.bf16.mxu1 %v6815_v4 }
 0x4d9   :  { %4925 = vmatpush1.bf16.msra.mxu1 %v6813_v10 }
 0x4da   :  { %4926 = vmatprep.subr.bf16.mxu1 %v6818_v24 }
 0x4dd   :  { %4927 = vmatpush1.bf16.msra.mxu1 %v6816_v30 }
 0x4de   :  { %4928 = vmatprep.subr.bf16.mxu1 %v6821_v14 }
 0x4e1   :  { %4929 = vmatpush1.bf16.msra.mxu1 %v6819_v16 }
 0x4e2   :  { %4930 = vmatprep.subr.bf16.mxu1 %v6824_v27 }
 0x4e5   :  { %4931 = vmatpush1.bf16.msra.mxu1 %v6822_v18 }
 0x4e6   :  { %4932 = vmatprep.subr.bf16.mxu1 %v6827_v20 }
 0x4e9   :  { %4933 = vmatpush1.bf16.msra.mxu1 %v6825_v29 }
 0x4ea   :  { %4934 = vmatprep.subr.bf16.mxu1 %v6830_v22 }
 0x4ed   :  { %4935 = vmatpush1.bf16.msra.mxu1 %v6828_v25 }
 0x4ee   :  { %5899 = vmatprep.subr.bf16.mxu1 %v6831_v52 }
 0x5a3   :  { %v5893_v37 = vpop.f32.mrb[20].mxu1 }
 0x5a4   :  { %v5894_v40 = vpop.f32.mrb[21].mxu1 }
 0x5a5   :  { %v5895_v33 = vadd.f32 %v5894_v40, %v5893_v37  ;;  %v5896_v42 = vpop.f32.mrb[22].mxu1 }
 0x5a6   :  { %v5897_v47 = vpop.f32.mrb[23].mxu1 }
 0x5a7   :  { %v7517_v51 = vadd.f32 %v5895_v33, %v4639_v59 }
 0x5a9   :  { %v4812_v50 = vpack.c.bf16 %v7517_v51, %v7517_v51 }
 0x5ab   :  { %4953 = vmatmul.mubr.bf16.vlgmr.msra.gmra.mrb[24].mxu1 %v4812_v50 }
 0x5ac   :  { %5900 = vmatpush3.bf16.msra.mxu1 %v6832_v53 }
 0x5ad   :  { %5901 = vmatprep.subr.bf16.mxu1 %v6833_v58 }
 0x5b0   :  { %5902 = vmatpush3.bf16.msra.mxu1 %v6834_v63 }
 0x5b1   :  { %5903 = vmatprep.subr.bf16.mxu1 %v6835_v56  ;;  %v5004_v56 = vld [vmem:[#allocation15 + $0x6] ss:$8 sm:$0x3] }
 0x5b4   :  { %5904 = vmatpush3.bf16.msra.mxu1 %v6836_v1  ;;  %v5019_v1 = vld [vmem:[#allocation15 + $0x7] ss:$8 sm:$0x3] }
 0x5b5   :  { %5905 = vmatprep.subr.bf16.mxu1 %v6837_v3  ;;  %v5009_v3 = vrot.slane %v5004_v56, %v7471_v11 }
 0x5b8   :  { %5906 = vmatpush3.bf16.msra.mxu1 %v6838_v5 }
 0x5b9   :  { %5907 = vmatprep.subr.bf16.mxu1 %v6839_v39  ;;  %v5013_v39 = vrot.slane %v5004_v56, %v7476_v8 }
 0x5bc   :  { %5908 = vmatpush3.bf16.msra.mxu1 %v6840_v45 }
 0x5bd   :  { %5909 = vmatprep.subr.bf16.mxu1 %v6841_v26 }
 0x5c0   :  { %5910 = vmatpush3.bf16.msra.mxu1 %v6842_v28  ;;  %v5024_v28 = vrot.slane %v5019_v1, %v7471_v11 }
 0x5c1   :  { %5911 = vmatprep.subr.bf16.mxu1 %v6843_v6 }
 0x5c4   :  { %5912 = vmatpush3.bf16.msra.mxu1 %v6844_v54  ;;  %v5028_v54 = vrot.slane %v5019_v1, %v7476_v8  ;;  %v5212_v8 = vmul.f32 %v7517_v51, %v7517_v51 }
 0x5c5   :  { %5913 = vmatprep.subr.bf16.mxu1 %v6845_v32 }
 0x5c8   :  { %5914 = vmatpush3.bf16.msra.mxu1 %v6846_v34 }
 0x67e   :  { %v4954_v9 = vpop.f32.mrb[24].mxu1 }
 0x67f   :  { %v4955_v38 = vadd.f32 %v4954_v9, %v4833_v60  ;;  %v4956_v13 = vpop.f32.mrb[25].mxu1 }
 0x680   :  { %v4957_v62 = vadd.f32 %v4956_v13, %v4837_v36  ;;  %v4958_v44 = vpop.f32.mrb[26].mxu1 }
 0x681   :  { %v4961_v41 = vsel %vm4524_vm0, %v4955_v38, 0.0  ;;  %v4959_v46 = vpop.f32.mrb[27].mxu1 }
 0x682   :  { %v4963_v48 = vrot.slane %v4961_v41, 4  ;;  %v4962_v31 = vsel %vm4524_vm0, %v4957_v62, 0.0 }
 0x683   :  { %v4969_v15 = vrot.slane %v4962_v31, 4 }
 0x684   :  { %v4964_v17 = vadd.f32 %v4963_v48, %v4961_v41  ;;  %v5035_v41 = vld [vmem:[#allocation15 + $0x20] ss:$0 sm:$0xff] }
 0x685   :  { %v4970_v19 = vadd.f32 %v4969_v15, %v4962_v31 }
 0x686   :  { %v4965_v21 = vrot.slane %v4964_v17, 2 }
 0x687   :  { %v4971_v55 = vrot.slane %v4970_v19, 2 }
 0x688   :  { %v4966_v61 = vadd.f32 %v4965_v21, %v4964_v17 }
 0x689   :  { %v4972_v0 = vadd.f32 %v4971_v55, %v4970_v19 }
 0x68a   :  { %v4967_v49 = vrot.slane %v4966_v61, 1 }
 0x68b   :  { %v4973_v7 = vrot.slane %v4972_v0, 1 }
 0x68c   :  { %v4968_v57 = vadd.f32 %v4967_v49, %v4966_v61 }
 0x68d   :  { %v4974_v2 = vadd.f32 %v4973_v7, %v4972_v0 }
 0x68e   :  { %v4975_v4 = vmul.f32 0.25, %v4968_v57 }
 0x68f   :  { %v4976_v10 = vmul.f32 0.25, %v4974_v2 }
 0x690   :  { %v4977_v24 = vsub.f32 %v4955_v38, %v4975_v4 }
 0x691   :  { %v4978_v30 = vsub.f32 %v4957_v62, %v4976_v10 }
 0x692   :  { %v4979_v14 = vmul.f32 %v4977_v24, %v4977_v24 }
 0x693   :  { %v4980_v16 = vmul.f32 %v4978_v30, %v4978_v30 }
 0x694   :  { %v4981_v27 = vsel %vm4524_vm0, %v4979_v14, 0.0 }
 0x695   :  { %v4983_v18 = vrot.slane %v4981_v27, 4  ;;  %v4982_v20 = vsel %vm4524_vm0, %v4980_v16, 0.0 }
 0x696   :  { %v4989_v29 = vrot.slane %v4982_v20, 4 }
 0x697   :  { %v4984_v22 = vadd.f32 %v4983_v18, %v4981_v27 }
 0x698   :  { %v4990_v25 = vadd.f32 %v4989_v29, %v4982_v20 }
 0x699   :  { %v4985_v35 = vrot.slane %v4984_v22, 2 }
 0x69a   :  { %v4991_v37 = vrot.slane %v4990_v25, 2 }
 0x69b   :  { %v4986_v59 = vadd.f32 %v4985_v35, %v4984_v22 }
 0x69c   :  { %v4992_v40 = vadd.f32 %v4991_v37, %v4990_v25 }
 0x69d   :  { %v4987_v33 = vrot.slane %v4986_v59, 1 }
 0x69e   :  { %v4993_v42 = vrot.slane %v4992_v40, 1 }
 0x69f   :  { %v4988_v47 = vadd.f32 %v4987_v33, %v4986_v59 }
 0x6a0   :  { %v4994_v50 = vadd.f32 %v4993_v42, %v4992_v40 }
 0x6a1   :  { %v4995_v52 = vmul.f32 0.25, %v4988_v47 }
 0x6a2   :  { %v4996_v53 = vmul.f32 0.25, %v4994_v50 }
 0x6a3   :  { %v4997_v58 = vadd.f32 1e-05, %v4995_v52 }
 0x6a4   :  { %v4998_v63 = vadd.f32 1e-05, %v4996_v53 }
 0x6a5   :  { %6855 = vrsqrt.f32 %v4997_v58 }
 0x6a6   :  { %6857 = vrsqrt.f32 %v4998_v63 }
 0x6af   :  { %v6856_v5 = vpop.eup %6855 }
 0x6b0   :  { %v6858_v45 = vpop.eup %6857  ;;  %v5001_v26 = vmul.f32 %v6856_v5, %v4977_v24 }
 0x6b1   :  { %v5002_v6 = vmul.f32 %v6858_v45, %v4978_v30 }
 0x6b2   :  { %v5016_v32 = vmul.f32 %v5009_v3, %v5001_v26 }
 0x6b3   :  { %v5017_v34 = vmul.f32 %v5013_v39, %v5002_v6 }
 0x6b4   :  { %v5031_v12 = vadd.f32 %v5024_v28, %v5016_v32 }
 0x6b5   :  { %v5032_v60 = vadd.f32 %v5028_v54, %v5017_v34 }
 0x6b6   :  { %v5033_v36 = vmax.f32 %v5031_v12, 0.0 }
 0x6b7   :  { %v5034_v9 = vmax.f32 %v5032_v60, 0.0 }
 0x6b8   :  { %v5036_v13 = vpack.c.bf16 %v5033_v36, %v5033_v36 }
 0x6b9   :  { %v5037_v38 = vpack.c.bf16 %v5034_v9, %v5034_v9 }
 0x6bb   :  { %5198 = vmatprep.mubr.bf16.mxu1 %v5037_v38 }
 0x6bc   :  { %5199 = vmatmul.mubr.bf16.vlgmr.msra.gmra.mrb[28].mxu1 %v5036_v13 }
 0x78f   :  { %v5915_v62 = vpop.f32.mrb[28].mxu1 }
 0x790   :  { %v5916_v44 = vpop.f32.mrb[29].mxu1 }
 0x791   :  { %v5917_v46 = vadd.f32 %v5916_v44, %v5915_v62  ;;  %v5918_v48 = vpop.f32.mrb[30].mxu1 }
 0x792   :  { %v5919_v31 = vpop.f32.mrb[31].mxu1 }
 0x793   :  { %v5201_v11 = vadd.f32 %v5917_v46, %v5035_v41 }
 0x795   :  { %v5206_v15 = vmul.f32 %v5201_v11, %v5201_v11 }
 0x797   :  { %5207 = vadd.xlane.f32.xlu0 %v5206_v15 }
 0x79b   :  { %5213 = vadd.xlane.f32.xlu0 %v5212_v8 }
 0x824   :  { %v5208_v17 = vpop.xlane.xlu0 %5207 }
 0x825   :  { %v5209_v19 = vmax.f32 %v5208_v17, 1e-24 }
 0x827   :  { %6859 = vrsqrt.f32 %v5209_v19 }
 0x828   :  { %v5214_v21 = vpop.xlane.xlu0 %5213 }
 0x829   :  { %v5215_v55 = vmax.f32 %v5214_v21, 1e-24 }
 0x82b   :  { %6861 = vrsqrt.f32 %v5215_v55 }
 0x831   :  { %v6860_v61 = vpop.eup %6859 }
 0x832   :  { %v5211_v0 = vmul.f32 %v6860_v61, %v5201_v11 }
 0x834   :  { %v5218_v57 = vrot.slane %v5211_v0, 4 }
 0x835   :  { %v6862_v49 = vpop.eup %6861 }
 0x836   :  { %v5217_v7 = vmul.f32 %v6862_v49, %v7517_v51 }
 0x838   :  { %v5219_v2 = vmul.f32 %v5218_v57, %v5217_v7 }
 0x83a   :  { %5220 = vadd.xlane.f32.xlu1 %v5219_v2 }
 0x8c7   :  { %v5221_v4 = vpop.xlane.xlu1 %5220 }
 0x8c8   :  { %v5223_v10 = vsel %vm5222_vm2, %v5221_v4, 0.0 }
 0x8c9   :  { %v5224_v24 = vrot.slane %v5223_v10, 4 }
 0x8cb   :  { %v5225_v30 = vadd.f32 %v5224_v24, %v5223_v10 }
 0x8cd   :  { %v5226_v14 = vrot.slane %v5225_v30, 2 }
 0x8cf   :  { %v5227_v16 = vadd.f32 %v5226_v14, %v5225_v30 }
 0x8d1   :  { %v5228_v27 = vrot.slane %v5227_v16, 1 }
 0x8d3   :  { %v5229_v18 = vadd.f32 %v5228_v27, %v5227_v16 }
 0x8d5   :  { %v5230_v51 = vmul.f32 0.5, %v5229_v18 }
 0x8d7   :  { %v5231_v20 = vsub.f32 2.0, %v5230_v51 }
 0x8d9   :  { %5233 = vst.msk [vmem:[#allocation17] sm:$0x1] %vm144_vm1, %v5231_v20 }
 0x8da   :  { %7053 = shalt.err (!%p7050_p12)
}
 0x8db   :  { %s7054_s11 = scalar_lea.hbm %s7562_s8, 16 }
 0x8dc   :  { %p7055_p13 = scmp.ne.s32.totalorder %s7562_s8, %s7054_s11  ;;  %p7058_p0 = scmp.lt.u32.totalorder %s7054_s11, %s7562_s8 }
 0x8de   :  { %p7060_p1 = pnand %p7058_p0, %p7055_p13 }
 0x8e0   :  { %7063 = shalt.err (!%p7060_p1)
}
 0x8e1   :  { %5243 = dma.vmem_to_hbm [thread:$0]  %s5241_s5, 16, %s7562_s8, [#allocation5]  }
 0x8e2   :  { %7074 = dma.done.wait [#allocation5], 16  }
 0x8e3   :  { %7075 = vsyncadd [#allocation5], 4294967280 }
 0x8e4   :  { %5247 = vsyncpa [#allocation4], 1 }
 0x8e5   :  { %5248 = vsyncpa [#allocation7], 1 }
 0x8e6   :  { %5249 = vsyncpa [#allocation10], 1 }
 0x8e7   :  { %5250 = vsyncpa [#allocation13], 1 }
 0x8e8   :  { %5251 = vsyncpa [#allocation16], 1 }
 0x8e9   :  { %5252 = vsyncpa [#allocation5], 1 }

</bundles_post_ra>
